<compile_context>
chip_gen: v6e
topology: v6e:2x2x1
jax: 0.10.0
libtpu: 0.0.40
codegen_flags: <defaults>
</compile_context>

<pallas_src>
import functools

import jax
import jax.numpy as jnp
from jax import lax
from jax.experimental import pallas as pl
from jax.experimental.pallas import tpu as pltpu


def _round_up(x, m):
    return (x + m - 1) // m * m


def _default_dw_dtype():
    """bf16 depthwise math on chips with a bf16 VALU (v6e/v7x), f32 otherwise."""
    try:
        kind = jax.devices()[0].device_kind.lower()
    except Exception:
        return jnp.float32
    return jnp.bfloat16 if ("v6" in kind or "v7" in kind) else jnp.float32


def _inverted_residual_kernel(x_hbm, mask_ref, w1_ref, b1_ref, wdw_ref,
                              bdw_ref, w2_ref, b2_ref, o_ref,
                              xbuf, dma_sem, *rest,
                              ks, stride, pad, Hp, TRo, num_row_blocks,
                              use_expand, use_res, dw_dtype):
    """One (image, output-row-block) grid step.

    x_hbm : (N*Hp, Wp, Cpi) bf16 HBM  (spatially zero-padded, channel-padded)
    mask  : (Hp, Wp) f32 spatial validity mask (1 inside the HxW image)
    o_ref : (1, TRo, Wo_pad, Cpo) f32 VMEM output block
    xbuf  : (2, TRin, Wp, Cpi) bf16 VMEM double buffer for the halo'd row slab
    rest  : (hbuf,) VMEM scratch, present only when stride > 1
    """
    n = pl.program_id(0)
    r = pl.program_id(1)
    _, TRin, Wp, Cpi = xbuf.shape
    Cph = w2_ref.shape[0]
    Wo, Cpo = o_ref.shape[2], o_ref.shape[3]

    def start_slab_copy(row_block_idx, to_slot):
        row0 = n * Hp + row_block_idx * (TRo * stride)
        pltpu.make_async_copy(x_hbm.at[pl.ds(row0, TRin)],
                              xbuf.at[to_slot],
                              dma_sem.at[to_slot]).start()

    # --- double-buffered slab DMA, chained within one image ------------------
    if num_row_blocks == 1:
        slot = 0
        row_lo = 0
        start_slab_copy(0, 0)
    else:
        slot = r % 2
        row_lo = r * (TRo * stride)

        @pl.when(r == 0)           # prime this image's chain
        def _():
            start_slab_copy(0, slot)

        @pl.when(r + 1 < num_row_blocks)   # prefetch next row block behind compute
        def _():
            start_slab_copy(r + 1, 1 - slot)

    pltpu.make_async_copy(x_hbm.at[pl.ds(0, TRin)], xbuf.at[slot],
                          dma_sem.at[slot]).wait()

    # ---- 1x1 expansion (+ folded BN) + ReLU : bf16 MXU, f32 accumulate ------
    if use_expand:
        h = jnp.dot(xbuf[slot].reshape(TRin * Wp, Cpi), w1_ref[...],
                    preferred_element_type=jnp.float32)
        h = jnp.maximum(h + b1_ref[...], 0.0)
        h = h.reshape(TRin, Wp, Cph).astype(dw_dtype)
        # Re-zero spatially padded positions with the precomputed mask (exact
        # even when the folded BN bias b1 != 0).
        m = mask_ref[pl.ds(row_lo, TRin), :]
        h = h * m[:, :, None].astype(dw_dtype)
    else:
        # hidden == Cin; wrapper padding is already zero.
        h = xbuf[slot].astype(dw_dtype)

    # ---- depthwise ks x ks conv (+ folded BN) + ReLU : VPU ------------------
    # acc starts at the folded bias (saves a full-slab add and a zero fill).
    acc = jnp.broadcast_to(bdw_ref[...], (TRo, Wo, Cph)).astype(dw_dtype)
    if stride == 1:
        for ki in range(ks):
            for kj in range(ks):
                idx = ki * ks + kj
                win = h[ki:ki + TRo, kj:kj + Wo, :]
                acc = acc + win * wdw_ref[idx:idx + 1, :]
    else:
        hbuf = rest[0]
        hbuf[...] = h
        # Decimate once per (row, col) parity; taps then read unit-stride
        # windows instead of ks*ks strided reads.
        planes = {}
        for pr in range(stride):
            nr_ = (TRin - pr + stride - 1) // stride
            for pc in range(stride):
                nc_ = (Wp - pc + stride - 1) // stride
                planes[(pr, pc)] = hbuf[pl.ds(pr, nr_, stride=stride),
                                        pl.ds(pc, nc_, stride=stride), :]
        for ki in range(ks):
            for kj in range(ks):
                idx = ki * ks + kj
                p = planes[(ki % stride, kj % stride)]
                ro, co = ki // stride, kj // stride
                win = p[ro:ro + TRo, co:co + Wo, :]
                acc = acc + win * wdw_ref[idx:idx + 1, :]
    dw = jnp.maximum(acc, 0.0)

    # ---- 1x1 projection (+ folded BN) : bf16 MXU, f32 accumulate ------------
    y = jnp.dot(dw.reshape(TRo * Wo, Cph).astype(jnp.bfloat16), w2_ref[...],
                preferred_element_type=jnp.float32)
    y = (y + b2_ref[...]).reshape(TRo, Wo, Cpo)

    if use_res:
        # Re-read the residual rows from the slab right before the add
        # (short live range). Padded channels of x are zero.
        res = xbuf[slot, pad:pad + TRo, pad:pad + Wo, :]
        y = y + res.astype(jnp.float32)

    o_ref[0] = y.astype(o_ref.dtype)


def inverted_residual_pallas(x_nchw, params, *, ks, stride, expand_ratio,
                             row_block=32, lane=128, sublane=8,
                             dw_dtype=None, vmem_budget_bytes=20 * 2**20):
    """x_nchw: (N, Cin, H, W) float32. Returns (N, Cout, Ho, Wo) float32."""
    N, Cin, H, W = x_nchw.shape
    w1, b1, wdw, bdw, w2, b2 = (params["w1"], params["b1"], params["wdw"],
                                params["bdw"], params["w2"], params["b2"])
    hidden, Cout = w2.shape
    pad = ks // 2
    Ho = (H + 2 * pad - ks) // stride + 1
    Wo = (W + 2 * pad - ks) // stride + 1
    use_res = (stride == 1) and (Cin == Cout)
    use_expand = (expand_ratio != 1)
    if not use_expand:
        assert hidden == Cin

    if dw_dtype is None:
        dw_dtype = _default_dw_dtype()
    if stride > 1:
        # TODO(synk): keep the stride>1 parity-plane scratch in f32 for lowering
        # safety (packed-bf16 strided sublane reads); costs extra VMEM on v7x.
        dw_dtype = jnp.float32
    dw_sz = jnp.dtype(dw_dtype).itemsize

    # lane-dense channel padding (multiples of 128)
    Cpi = _round_up(Cin, lane)
    Cph = _round_up(hidden, lane)
    Cpo = _round_up(Cout, lane)

    # sublane-dense widths: pad output width to a multiple of 8 and make the
    # padded input wide enough for every (padded) output column's window.
    Wo_pad = _round_up(Wo, sublane)
    Wp = _round_up(max(W + 2 * pad, (Wo_pad - 1) * stride + ks), sublane)

    def footprint(tro):
        trin = (tro - 1) * stride + ks
        b = 2 * trin * Wp * Cpi * 2              # double-buffered bf16 slab
        b += 2 * tro * Wo_pad * Cpo * 4          # pipelined f32 output block
        b += trin * Wp * Cph * (4 + dw_sz)       # expanded slab (f32 + dw copy)
        b += tro * Wo_pad * Cph * (dw_sz + 4)    # depthwise acc + projection operands
        if stride > 1:
            b += trin * Wp * Cph * dw_sz         # hbuf scratch
        return b

    # output-row tiling with tail handling (never degenerates to TRo == 1
    # unless required by the VMEM budget)
    TRo = max(1, min(row_block, Ho))
    while TRo > 1 and footprint(TRo) > vmem_budget_bytes:
        TRo = (TRo + 1) // 2
    R = -(-Ho // TRo)                  # cdiv
    Ho_pad = R * TRo
    TRin = (TRo - 1) * stride + ks     # input slab rows incl. halo
    Hp = max(H + 2 * pad, (Ho_pad - 1) * stride + ks)

    # NCHW -> NHWC in bf16 (cast first), zero-pad spatially + channels,
    # flatten to (N*Hp) rows for contiguous row-slab DMAs.
    x = jnp.transpose(x_nchw.astype(jnp.bfloat16), (0, 2, 3, 1))
    x = jnp.pad(x, ((0, 0), (pad, Hp - H - pad), (pad, Wp - W - pad),
                    (0, Cpi - Cin)))
    x = x.reshape(N * Hp, Wp, Cpi)

    # precomputed spatial validity mask (1 inside the original HxW image)
    rr = jnp.arange(Hp)[:, None]
    cc = jnp.arange(Wp)[None, :]
    mask = ((rr >= pad) & (rr < pad + H) &
            (cc >= pad) & (cc < pad + W)).astype(jnp.float32)

    # pad weights once outside the kernel; MXU operands cast to bf16
    w1p = jnp.pad(w1, ((0, Cpi - Cin), (0, Cph - hidden))).astype(jnp.bfloat16)
    b1p = jnp.pad(b1, ((0, 0), (0, Cph - hidden)))
    wdwp = jnp.pad(wdw, ((0, 0), (0, Cph - hidden))).astype(dw_dtype)
    bdwp = jnp.pad(bdw, ((0, 0), (0, Cph - hidden))).astype(dw_dtype)
    w2p = jnp.pad(w2, ((0, Cph - hidden), (0, Cpo - Cout))).astype(jnp.bfloat16)
    b2p = jnp.pad(b2, ((0, 0), (0, Cpo - Cout)))

    fixed = (2 * (Cpi * Cph * 2 + Cph * 4 + ks * ks * Cph * dw_sz
                  + Cph * dw_sz + Cph * Cpo * 2 + Cpo * 4)
             + 2 * Hp * Wp * 4)
    vmem_limit = int(min(48 * 2**20,
                         max(1.5 * (footprint(TRo) + fixed) + 8 * 2**20,
                             16 * 2**20)))

    kernel = functools.partial(
        _inverted_residual_kernel,
        ks=ks, stride=stride, pad=pad, Hp=Hp, TRo=TRo, num_row_blocks=R,
        use_expand=use_expand, use_res=use_res, dw_dtype=dw_dtype)

    scratch = [pltpu.VMEM((2, TRin, Wp, Cpi), jnp.bfloat16),
               pltpu.SemaphoreType.DMA((2,))]
    if stride > 1:
        scratch.append(pltpu.VMEM((TRin, Wp, Cph), dw_dtype))

    out_nhwc = pl.pallas_call(
        kernel,
        out_shape=jax.ShapeDtypeStruct((N, Ho_pad, Wo_pad, Cpo), jnp.float32),
        grid=(N, R),
        in_specs=[
            pl.BlockSpec(memory_space=pl.ANY),                   # padded x, HBM
            pl.BlockSpec((Hp, Wp), lambda n, r: (0, 0)),         # spatial mask
            pl.BlockSpec((Cpi, Cph), lambda n, r: (0, 0)),       # w1
            pl.BlockSpec((1, Cph), lambda n, r: (0, 0)),         # b1
            pl.BlockSpec((ks * ks, Cph), lambda n, r: (0, 0)),   # wdw
            pl.BlockSpec((1, Cph), lambda n, r: (0, 0)),         # bdw
            pl.BlockSpec((Cph, Cpo), lambda n, r: (0, 0)),       # w2
            pl.BlockSpec((1, Cpo), lambda n, r: (0, 0)),         # b2
        ],
        out_specs=pl.BlockSpec((1, TRo, Wo_pad, Cpo), lambda n, r: (n, r, 0, 0)),
        scratch_shapes=scratch,
        compiler_params=pltpu.CompilerParams(
            # batch axis shards across TensorCores; the row axis carries the
            # per-image double-buffered DMA chain, so it stays "arbitrary".
            dimension_semantics=("parallel", "arbitrary"),
            vmem_limit_bytes=vmem_limit),
    )(x, mask, w1p, b1p, wdwp, bdwp, w2p, b2p)

    out_nhwc = out_nhwc[:, :Ho, :Wo, :Cout]      # drop alignment/channel padding
    return jnp.transpose(out_nhwc, (0, 3, 1, 2))


def make_params(key, inp, oup, ks, expand_ratio):
    """Deterministic parameter init mirroring the module's __init__ shapes.

    Conv weights ~ N(0, 0.1); BN: gamma=1, beta=0, mean=0, var=1, eps=1e-5
    (folded into the conv weights / biases)."""
    eps = 1e-5
    hidden = int(round(inp * expand_ratio))
    k1, k2, k3 = jax.random.split(key, 3)

    scale = 1.0 / jnp.sqrt(1.0 + eps)   # gamma / sqrt(var + eps)

    # expand 1x1 conv: torch weight (hidden, inp, 1, 1)
    w1_t = jax.random.normal(k1, (hidden, inp), jnp.float32) * 0.1
    w1 = (w1_t * scale).T                                  # (inp, hidden) folded
    b1 = jnp.zeros((1, hidden), jnp.float32)               # beta - mean*scale = 0

    # depthwise conv: torch weight (hidden, 1, ks, ks)
    dw_t = jax.random.normal(k2, (hidden, ks, ks), jnp.float32) * 0.1
    wdw = jnp.transpose(dw_t * scale, (1, 2, 0)).reshape(ks * ks, hidden)
    bdw = jnp.zeros((1, hidden), jnp.float32)

    # project 1x1 conv: torch weight (oup, hidden, 1, 1)
    w2_t = jax.random.normal(k3, (oup, hidden), jnp.float32) * 0.1
    w2 = (w2_t * scale).T                                  # (hidden, oup) folded
    b2 = jnp.zeros((1, oup), jnp.float32)

    return dict(w1=w1, b1=b1, wdw=wdw, bdw=bdw, w2=w2, b2=b2)


def reference_forward(x_nchw, params, *, ks, stride, expand_ratio):
    """Pure-JAX f32 reference (NHWC internally) for validation."""
    w1, b1, wdw, bdw, w2, b2 = (params["w1"], params["b1"], params["wdw"],
                                params["bdw"], params["w2"], params["b2"])
    hidden = w2.shape[0]
    pad = ks // 2
    Cin = x_nchw.shape[1]
    Cout = w2.shape[1]
    use_res = (stride == 1) and (Cin == Cout)

    x = jnp.transpose(x_nchw, (0, 2, 3, 1)).astype(jnp.float32)  # NHWC
    if expand_ratio != 1:
        h = jnp.einsum("nhwc,co->nhwo", x, w1, precision="highest") + b1
        h = jax.nn.relu(h)
    else:
        h = x
    dw_kernel = wdw.reshape(ks, ks, 1, hidden)                   # HWIO, I=1
    d = lax.conv_general_dilated(
        h, dw_kernel, window_strides=(stride, stride),
        padding=[(pad, pad), (pad, pad)],
        dimension_numbers=("NHWC", "HWIO", "NHWC"),
        feature_group_count=hidden,
        precision=lax.Precision.HIGHEST)
    d = jax.nn.relu(d + bdw)
    y = jnp.einsum("nhwc,co->nhwo", d, w2, precision="highest") + b2
    if use_res:
        y = y + x
    return jnp.transpose(y, (0, 3, 1, 2))


if __name__ == "__main__":
    # Small config consistent with the module: inp=oup=4, ks=3, stride=1,
    # expand_ratio=2 -> hidden=8, residual connection active.
    N, INP, OUP, H, W = 2, 4, 4, 16, 16
    KS, STRIDE, EXPAND = 3, 1, 2

    key = jax.random.PRNGKey(0)
    kx, kp = jax.random.split(key)
    x = jax.random.normal(kx, (N, INP, H, W), jnp.float32)
    params = make_params(kp, INP, OUP, KS, EXPAND)

    ref = reference_forward(x, params, ks=KS, stride=STRIDE,
                            expand_ratio=EXPAND)
    ref = jax.block_until_ready(ref)

    # Config A: whole-image row tile (grid (2, 1)).
    # Config B: row_block=8 -> TRo=8, grid (2, 2): exercises the halo'd slab
    # tiling and the double-buffered cross-step DMA prefetch path.
    for rb in (32, 8):
        out = inverted_residual_pallas(x, params, ks=KS, stride=STRIDE,
                                       expand_ratio=EXPAND, row_block=rb)
        out = jax.block_until_ready(out)
        assert out.shape == (N, OUP, H, W), out.shape
        max_err = float(jnp.max(jnp.abs(out - ref)))
        # bf16 MXU operands / bf16 residual (f32 accumulate) error budget.
        assert max_err < 5e-2, (rb, max_err)

    print("KERNEL_OK")
</pallas_src>

<mosaic_0001>
module attributes {stable_mosaic.version = 11 : i64} {
  func.func @_inverted_residual_kernel(%arg0: i32, %arg1: i32, %arg2: memref<36x24x128xbf16, #tpu.memory_space<any>>, %arg3: memref<18x24xf32, #tpu.memory_space<vmem>>, %arg4: memref<128x128xbf16, #tpu.memory_space<vmem>>, %arg5: memref<1x128xf32, #tpu.memory_space<vmem>>, %arg6: memref<9x128xf32, #tpu.memory_space<vmem>>, %arg7: memref<1x128xf32, #tpu.memory_space<vmem>>, %arg8: memref<128x128xbf16, #tpu.memory_space<vmem>>, %arg9: memref<1x128xf32, #tpu.memory_space<vmem>>, %arg10: memref<1x16x16x128xf32, #tpu.memory_space<vmem>>, %arg11: memref<2x18x24x128xbf16, #tpu.memory_space<vmem>>, %arg12: memref<2x!tpu.dma_semaphore, #tpu.memory_space<semaphore_mem>>) attributes {dimension_semantics = [#tpu.dimension_semantics<parallel>, #tpu.dimension_semantics<arbitrary>], iteration_bounds = array<i64: 2, 1>, scalar_prefetch = 0 : i64, scratch_operands = 2 : i64, tpu.core_type = #tpu.core_type<tc>, window_params = [{}, {pipeline_mode = #tpu.pipeline_mode<synchronous>, transform_indices = @transform_1, window_bounds = array<i64: 18, 24>}, {pipeline_mode = #tpu.pipeline_mode<synchronous>, transform_indices = @transform_2, window_bounds = array<i64: 128, 128>}, {pipeline_mode = #tpu.pipeline_mode<synchronous>, transform_indices = @transform_3, window_bounds = array<i64: 1, 128>}, {pipeline_mode = #tpu.pipeline_mode<synchronous>, transform_indices = @transform_4, window_bounds = array<i64: 9, 128>}, {pipeline_mode = #tpu.pipeline_mode<synchronous>, transform_indices = @transform_5, window_bounds = array<i64: 1, 128>}, {pipeline_mode = #tpu.pipeline_mode<synchronous>, transform_indices = @transform_6, window_bounds = array<i64: 128, 128>}, {pipeline_mode = #tpu.pipeline_mode<synchronous>, transform_indices = @transform_7, window_bounds = array<i64: 1, 128>}, {transform_indices = @transform_8, window_bounds = array<i64: 1, 16, 16, 128>}]} {
    %c18_i32 = arith.constant 18 : i32
    %0 = arith.muli %arg0, %c18_i32 : i32
    %c0_i32 = arith.constant 0 : i32
    %1 = arith.addi %0, %c0_i32 : i32
    %c0_i32_0 = arith.constant 0 : i32
    %c0_i32_1 = arith.constant 0 : i32
    %c0_i32_2 = arith.constant 0 : i32
    %c0_i32_3 = arith.constant 0 : i32
    %2 = tpu.memref_slice %arg2[%1, %c0_i32_2, %c0_i32_3] : memref<36x24x128xbf16, #tpu.memory_space<any>> -> memref<18x24x128xbf16, #tpu.memory_space<any>>
    %c0_i32_4 = arith.constant 0 : i32
    %c0_i32_5 = arith.constant 0 : i32
    %c0_i32_6 = arith.constant 0 : i32
    %3 = tpu.memref_slice %arg11[%c0_i32_0, %c0_i32_4, %c0_i32_5, %c0_i32_6] : memref<2x18x24x128xbf16, #tpu.memory_space<vmem>> -> memref<1x18x24x128xbf16, #tpu.memory_space<vmem>>
    %4 = tpu.memref_squeeze %3 : memref<1x18x24x128xbf16, #tpu.memory_space<vmem>> -> memref<18x24x128xbf16, #tpu.memory_space<vmem>>
    %5 = tpu.memref_slice %arg12[%c0_i32_1] : memref<2x!tpu.dma_semaphore, #tpu.memory_space<semaphore_mem>> -> memref<1x!tpu.dma_semaphore, #tpu.memory_space<semaphore_mem>>
    %6 = tpu.memref_squeeze %5 : memref<1x!tpu.dma_semaphore, #tpu.memory_space<semaphore_mem>> -> memref<!tpu.dma_semaphore, #tpu.memory_space<semaphore_mem>>
    tpu.enqueue_dma source(%2 : memref<18x24x128xbf16, #tpu.memory_space<any>>) target(%4 : memref<18x24x128xbf16, #tpu.memory_space<vmem>>) target_semaphore(%6 : memref<!tpu.dma_semaphore, #tpu.memory_space<semaphore_mem>>)
    %c0_i32_7 = arith.constant 0 : i32
    %c0_i32_8 = arith.constant 0 : i32
    %c0_i32_9 = arith.constant 0 : i32
    %c0_i32_10 = arith.constant 0 : i32
    %c0_i32_11 = arith.constant 0 : i32
    %7 = tpu.memref_slice %arg2[%c0_i32_9, %c0_i32_10, %c0_i32_11] : memref<36x24x128xbf16, #tpu.memory_space<any>> -> memref<18x24x128xbf16, #tpu.memory_space<any>>
    %c0_i32_12 = arith.constant 0 : i32
    %c0_i32_13 = arith.constant 0 : i32
    %c0_i32_14 = arith.constant 0 : i32
    %8 = tpu.memref_slice %arg11[%c0_i32_7, %c0_i32_12, %c0_i32_13, %c0_i32_14] : memref<2x18x24x128xbf16, #tpu.memory_space<vmem>> -> memref<1x18x24x128xbf16, #tpu.memory_space<vmem>>
    %9 = tpu.memref_squeeze %8 : memref<1x18x24x128xbf16, #tpu.memory_space<vmem>> -> memref<18x24x128xbf16, #tpu.memory_space<vmem>>
    %10 = tpu.memref_slice %arg12[%c0_i32_8] : memref<2x!tpu.dma_semaphore, #tpu.memory_space<semaphore_mem>> -> memref<1x!tpu.dma_semaphore, #tpu.memory_space<semaphore_mem>>
    %11 = tpu.memref_squeeze %10 : memref<1x!tpu.dma_semaphore, #tpu.memory_space<semaphore_mem>> -> memref<!tpu.dma_semaphore, #tpu.memory_space<semaphore_mem>>
    tpu.wait_dma2 semaphore(%11 : memref<!tpu.dma_semaphore, #tpu.memory_space<semaphore_mem>>) src(%7 : memref<18x24x128xbf16, #tpu.memory_space<any>>) dst(%9 : memref<18x24x128xbf16, #tpu.memory_space<vmem>>)
    %c0 = arith.constant 0 : index
    %c0_15 = arith.constant 0 : index
    %c0_16 = arith.constant 0 : index
    %c0_17 = arith.constant 0 : index
    %12 = vector.load %arg11[%c0, %c0_15, %c0_16, %c0_17] : memref<2x18x24x128xbf16, #tpu.memory_space<vmem>>, vector<1x18x24x128xbf16>
    %13 = vector.shape_cast %12 : vector<1x18x24x128xbf16> to vector<18x24x128xbf16>
    %14 = vector.shape_cast %13 : vector<18x24x128xbf16> to vector<432x128xbf16>
    %c0_18 = arith.constant 0 : index
    %c0_19 = arith.constant 0 : index
    %15 = vector.load %arg4[%c0_18, %c0_19] : memref<128x128xbf16, #tpu.memory_space<vmem>>, vector<128x128xbf16>
    %cst = arith.constant dense<0.000000e+00> : vector<432x128xf32>
    %16 = tpu.matmul %14, %15, %cst {dimension_numbers = #tpu.dot_dimension_numbers<[1], [0], [0], [1], [0, 0, 1, 1], [], []>} : vector<432x128xbf16>, vector<128x128xbf16>, vector<432x128xf32> -> vector<432x128xf32>
    %c0_20 = arith.constant 0 : index
    %c0_21 = arith.constant 0 : index
    %17 = vector.load %arg5[%c0_20, %c0_21] : memref<1x128xf32, #tpu.memory_space<vmem>>, vector<1x128xf32>
    %18 = vector.broadcast %17 : vector<1x128xf32> to vector<432x128xf32>
    %19 = arith.addf %16, %18 : vector<432x128xf32>
    %cst_22 = arith.constant 0.000000e+00 : f32
    %20 = vector.broadcast %cst_22 : f32 to vector<432x128xf32>
    %21 = arith.maximumf %19, %20 : vector<432x128xf32>
    %22 = vector.shape_cast %21 : vector<432x128xf32> to vector<18x24x128xf32>
    %c0_23 = arith.constant 0 : index
    %c0_24 = arith.constant 0 : index
    %23 = vector.load %arg3[%c0_23, %c0_24] : memref<18x24xf32, #tpu.memory_space<vmem>>, vector<18x24xf32>
    %24 = vector.shape_cast %23 : vector<18x24xf32> to vector<18x24x1xf32>
    %25 = vector.broadcast %24 : vector<18x24x1xf32> to vector<18x24x128xf32>
    %26 = arith.mulf %22, %25 : vector<18x24x128xf32>
    %c0_25 = arith.constant 0 : index
    %c0_26 = arith.constant 0 : index
    %27 = vector.load %arg7[%c0_25, %c0_26] : memref<1x128xf32, #tpu.memory_space<vmem>>, vector<1x128xf32>
    %28 = vector.shape_cast %27 : vector<1x128xf32> to vector<1x1x128xf32>
    %29 = vector.broadcast %28 : vector<1x1x128xf32> to vector<16x16x128xf32>
    %30 = vector.extract_strided_slice %26 {offsets = [0, 0, 0], sizes = [16, 16, 128], strides = [1, 1, 1]} : vector<18x24x128xf32> to vector<16x16x128xf32>
    %c0_27 = arith.constant 0 : index
    %c0_28 = arith.constant 0 : index
    %31 = vector.load %arg6[%c0_27, %c0_28] : memref<9x128xf32, #tpu.memory_space<vmem>>, vector<1x128xf32>
    %32 = vector.shape_cast %31 : vector<1x128xf32> to vector<1x1x128xf32>
    %33 = vector.broadcast %32 : vector<1x1x128xf32> to vector<16x16x128xf32>
    %34 = arith.mulf %30, %33 : vector<16x16x128xf32>
    %35 = arith.addf %29, %34 : vector<16x16x128xf32>
    %36 = vector.extract_strided_slice %26 {offsets = [0, 1, 0], sizes = [16, 16, 128], strides = [1, 1, 1]} : vector<18x24x128xf32> to vector<16x16x128xf32>
    %c1 = arith.constant 1 : index
    %c0_29 = arith.constant 0 : index
    %37 = vector.load %arg6[%c1, %c0_29] : memref<9x128xf32, #tpu.memory_space<vmem>>, vector<1x128xf32>
    %38 = vector.shape_cast %37 : vector<1x128xf32> to vector<1x1x128xf32>
    %39 = vector.broadcast %38 : vector<1x1x128xf32> to vector<16x16x128xf32>
    %40 = arith.mulf %36, %39 : vector<16x16x128xf32>
    %41 = arith.addf %35, %40 : vector<16x16x128xf32>
    %42 = vector.extract_strided_slice %26 {offsets = [0, 2, 0], sizes = [16, 16, 128], strides = [1, 1, 1]} : vector<18x24x128xf32> to vector<16x16x128xf32>
    %c2 = arith.constant 2 : index
    %c0_30 = arith.constant 0 : index
    %43 = vector.load %arg6[%c2, %c0_30] : memref<9x128xf32, #tpu.memory_space<vmem>>, vector<1x128xf32>
    %44 = vector.shape_cast %43 : vector<1x128xf32> to vector<1x1x128xf32>
    %45 = vector.broadcast %44 : vector<1x1x128xf32> to vector<16x16x128xf32>
    %46 = arith.mulf %42, %45 : vector<16x16x128xf32>
    %47 = arith.addf %41, %46 : vector<16x16x128xf32>
    %48 = vector.extract_strided_slice %26 {offsets = [1, 0, 0], sizes = [16, 16, 128], strides = [1, 1, 1]} : vector<18x24x128xf32> to vector<16x16x128xf32>
    %c3 = arith.constant 3 : index
    %c0_31 = arith.constant 0 : index
    %49 = vector.load %arg6[%c3, %c0_31] : memref<9x128xf32, #tpu.memory_space<vmem>>, vector<1x128xf32>
    %50 = vector.shape_cast %49 : vector<1x128xf32> to vector<1x1x128xf32>
    %51 = vector.broadcast %50 : vector<1x1x128xf32> to vector<16x16x128xf32>
    %52 = arith.mulf %48, %51 : vector<16x16x128xf32>
    %53 = arith.addf %47, %52 : vector<16x16x128xf32>
    %54 = vector.extract_strided_slice %26 {offsets = [1, 1, 0], sizes = [16, 16, 128], strides = [1, 1, 1]} : vector<18x24x128xf32> to vector<16x16x128xf32>
    %c4 = arith.constant 4 : index
    %c0_32 = arith.constant 0 : index
    %55 = vector.load %arg6[%c4, %c0_32] : memref<9x128xf32, #tpu.memory_space<vmem>>, vector<1x128xf32>
    %56 = vector.shape_cast %55 : vector<1x128xf32> to vector<1x1x128xf32>
    %57 = vector.broadcast %56 : vector<1x1x128xf32> to vector<16x16x128xf32>
    %58 = arith.mulf %54, %57 : vector<16x16x128xf32>
    %59 = arith.addf %53, %58 : vector<16x16x128xf32>
    %60 = vector.extract_strided_slice %26 {offsets = [1, 2, 0], sizes = [16, 16, 128], strides = [1, 1, 1]} : vector<18x24x128xf32> to vector<16x16x128xf32>
    %c5 = arith.constant 5 : index
    %c0_33 = arith.constant 0 : index
    %61 = vector.load %arg6[%c5, %c0_33] : memref<9x128xf32, #tpu.memory_space<vmem>>, vector<1x128xf32>
    %62 = vector.shape_cast %61 : vector<1x128xf32> to vector<1x1x128xf32>
    %63 = vector.broadcast %62 : vector<1x1x128xf32> to vector<16x16x128xf32>
    %64 = arith.mulf %60, %63 : vector<16x16x128xf32>
    %65 = arith.addf %59, %64 : vector<16x16x128xf32>
    %66 = vector.extract_strided_slice %26 {offsets = [2, 0, 0], sizes = [16, 16, 128], strides = [1, 1, 1]} : vector<18x24x128xf32> to vector<16x16x128xf32>
    %c6 = arith.constant 6 : index
    %c0_34 = arith.constant 0 : index
    %67 = vector.load %arg6[%c6, %c0_34] : memref<9x128xf32, #tpu.memory_space<vmem>>, vector<1x128xf32>
    %68 = vector.shape_cast %67 : vector<1x128xf32> to vector<1x1x128xf32>
    %69 = vector.broadcast %68 : vector<1x1x128xf32> to vector<16x16x128xf32>
    %70 = arith.mulf %66, %69 : vector<16x16x128xf32>
    %71 = arith.addf %65, %70 : vector<16x16x128xf32>
    %72 = vector.extract_strided_slice %26 {offsets = [2, 1, 0], sizes = [16, 16, 128], strides = [1, 1, 1]} : vector<18x24x128xf32> to vector<16x16x128xf32>
    %c7 = arith.constant 7 : index
    %c0_35 = arith.constant 0 : index
    %73 = vector.load %arg6[%c7, %c0_35] : memref<9x128xf32, #tpu.memory_space<vmem>>, vector<1x128xf32>
    %74 = vector.shape_cast %73 : vector<1x128xf32> to vector<1x1x128xf32>
    %75 = vector.broadcast %74 : vector<1x1x128xf32> to vector<16x16x128xf32>
    %76 = arith.mulf %72, %75 : vector<16x16x128xf32>
    %77 = arith.addf %71, %76 : vector<16x16x128xf32>
    %78 = vector.extract_strided_slice %26 {offsets = [2, 2, 0], sizes = [16, 16, 128], strides = [1, 1, 1]} : vector<18x24x128xf32> to vector<16x16x128xf32>
    %c8 = arith.constant 8 : index
    %c0_36 = arith.constant 0 : index
    %79 = vector.load %arg6[%c8, %c0_36] : memref<9x128xf32, #tpu.memory_space<vmem>>, vector<1x128xf32>
    %80 = vector.shape_cast %79 : vector<1x128xf32> to vector<1x1x128xf32>
    %81 = vector.broadcast %80 : vector<1x1x128xf32> to vector<16x16x128xf32>
    %82 = arith.mulf %78, %81 : vector<16x16x128xf32>
    %83 = arith.addf %77, %82 : vector<16x16x128xf32>
    %cst_37 = arith.constant 0.000000e+00 : f32
    %84 = vector.broadcast %cst_37 : f32 to vector<16x16x128xf32>
    %85 = arith.maximumf %83, %84 : vector<16x16x128xf32>
    %86 = vector.shape_cast %85 : vector<16x16x128xf32> to vector<256x128xf32>
    %87 = arith.truncf %86 : vector<256x128xf32> to vector<256x128xbf16>
    %c0_38 = arith.constant 0 : index
    %c0_39 = arith.constant 0 : index
    %88 = vector.load %arg8[%c0_38, %c0_39] : memref<128x128xbf16, #tpu.memory_space<vmem>>, vector<128x128xbf16>
    %cst_40 = arith.constant dense<0.000000e+00> : vector<256x128xf32>
    %89 = tpu.matmul %87, %88, %cst_40 {dimension_numbers = #tpu.dot_dimension_numbers<[1], [0], [0], [1], [0, 0, 1, 1], [], []>} : vector<256x128xbf16>, vector<128x128xbf16>, vector<256x128xf32> -> vector<256x128xf32>
    %c0_41 = arith.constant 0 : index
    %c0_42 = arith.constant 0 : index
    %90 = vector.load %arg9[%c0_41, %c0_42] : memref<1x128xf32, #tpu.memory_space<vmem>>, vector<1x128xf32>
    %91 = vector.broadcast %90 : vector<1x128xf32> to vector<256x128xf32>
    %92 = arith.addf %89, %91 : vector<256x128xf32>
    %93 = vector.shape_cast %92 : vector<256x128xf32> to vector<16x16x128xf32>
    %c0_43 = arith.constant 0 : index
    %c1_44 = arith.constant 1 : index
    %c1_45 = arith.constant 1 : index
    %c0_46 = arith.constant 0 : index
    %94 = vector.load %arg11[%c0_43, %c1_44, %c1_45, %c0_46] : memref<2x18x24x128xbf16, #tpu.memory_space<vmem>>, vector<1x16x16x128xbf16>
    %95 = vector.shape_cast %94 : vector<1x16x16x128xbf16> to vector<16x16x128xbf16>
    %96 = arith.extf %95 : vector<16x16x128xbf16> to vector<16x16x128xf32>
    %97 = arith.addf %93, %96 : vector<16x16x128xf32>
    %c0_47 = arith.constant 0 : index
    %c0_48 = arith.constant 0 : index
    %c0_49 = arith.constant 0 : index
    %c0_50 = arith.constant 0 : index
    %98 = vector.load %arg10[%c0_47, %c0_48, %c0_49, %c0_50] : memref<1x16x16x128xf32, #tpu.memory_space<vmem>>, vector<1x16x16x128xf32>
    %99 = vector.shape_cast %98 : vector<1x16x16x128xf32> to vector<16x16x128xf32>
    %100 = vector.shape_cast %97 : vector<16x16x128xf32> to vector<1x16x16x128xf32>
    tpu.vector_store %arg10[%c0_47, %c0_48, %c0_49, %c0_50], %100 {strides = array<i32>} : memref<1x16x16x128xf32, #tpu.memory_space<vmem>>, vector<1x16x16x128xf32>,
    return
  }
  func.func @transform_1(%arg0: i32, %arg1: i32) -> (i32, i32) {
    %c0_i32 = arith.constant 0 : i32
    %c0_i32_0 = arith.constant 0 : i32
    %c0_i32_1 = arith.constant 0 : i32
    return %c0_i32, %c0_i32_0 : i32, i32
  }
  func.func @transform_2(%arg0: i32, %arg1: i32) -> (i32, i32) {
    %c0_i32 = arith.constant 0 : i32
    %c0_i32_0 = arith.constant 0 : i32
    %c0_i32_1 = arith.constant 0 : i32
    return %c0_i32, %c0_i32_0 : i32, i32
  }
  func.func @transform_3(%arg0: i32, %arg1: i32) -> (i32, i32) {
    %c0_i32 = arith.constant 0 : i32
    %c0_i32_0 = arith.constant 0 : i32
    %c0_i32_1 = arith.constant 0 : i32
    return %c0_i32, %c0_i32_0 : i32, i32
  }
  func.func @transform_4(%arg0: i32, %arg1: i32) -> (i32, i32) {
    %c0_i32 = arith.constant 0 : i32
    %c0_i32_0 = arith.constant 0 : i32
    %c0_i32_1 = arith.constant 0 : i32
    return %c0_i32, %c0_i32_0 : i32, i32
  }
  func.func @transform_5(%arg0: i32, %arg1: i32) -> (i32, i32) {
    %c0_i32 = arith.constant 0 : i32
    %c0_i32_0 = arith.constant 0 : i32
    %c0_i32_1 = arith.constant 0 : i32
    return %c0_i32, %c0_i32_0 : i32, i32
  }
  func.func @transform_6(%arg0: i32, %arg1: i32) -> (i32, i32) {
    %c0_i32 = arith.constant 0 : i32
    %c0_i32_0 = arith.constant 0 : i32
    %c0_i32_1 = arith.constant 0 : i32
    return %c0_i32, %c0_i32_0 : i32, i32
  }
  func.func @transform_7(%arg0: i32, %arg1: i32) -> (i32, i32) {
    %c0_i32 = arith.constant 0 : i32
    %c0_i32_0 = arith.constant 0 : i32
    %c0_i32_1 = arith.constant 0 : i32
    return %c0_i32, %c0_i32_0 : i32, i32
  }
  func.func @transform_8(%arg0: i32, %arg1: i32) -> (i32, i32, i32, i32) {
    %c0_i32 = arith.constant 0 : i32
    %c0_i32_0 = arith.constant 0 : i32
    %c0_i32_1 = arith.constant 0 : i32
    return %arg0, %arg1, %c0_i32, %c0_i32_0 : i32, i32, i32, i32
  }
}

</mosaic_0001>

<bundles_post_ra>
// kernel: tpu_custom_call.1
= control target key start
LH: loop header
LB: loop body
LE: loop exit
PB: predicated region body
PF: predicated region fallthrough
CT: control target
= control target key end

     0   :  { %s6566_s0 = inlined_call_operand.hbm [shape: bf16[36,24,128], index: 0, kind: input, shape index: {}]   ;;  %s6567_s1 = inlined_call_operand.hbm [shape: f32[18,24], index: 1, kind: input, shape index: {}]   ;;  %s6568_s2 = inlined_call_operand.hbm [shape: bf16[128,128], index: 2, kind: input, shape index: {}]   ;;  %s6569_s3 = inlined_call_operand.vmem [shape: f32[1,128], index: 3, kind: input, shape index: {}]   ;;  %s6570_s4 = inlined_call_operand.hbm [shape: f32[9,128], index: 4, kind: input, shape index: {}]   ;;  %s6571_s5 = inlined_call_operand.vmem [shape: f32[1,128], index: 5, kind: input, shape index: {}]   ;;  %s6572_s6 = inlined_call_operand.hbm [shape: bf16[128,128], index: 6, kind: input, shape index: {}]   ;;  %s6573_s7 = inlined_call_operand.vmem [shape: f32[1,128], index: 7, kind: input, shape index: {}]   ;;  %s6574_s8 = inlined_call_operand.hbm [shape: f32[2,16,16,128], index: 8, kind: output, shape index: {}]  }
   0x1   :  { %6610 = sst [smem:[#allocation52_spill]] %s6568_s2 }
   0x2   :  { %13 = vsyncpa [#allocation5], 0 }
   0x3   :  { %14 = vsyncpa [#allocation8], 0 }
   0x4   :  { %15 = vsyncpa [#allocation11], 0 }
   0x5   :  { %16 = vsyncpa [#allocation6], 0 }
   0x6   :  { %18 = vsyncpa [#allocation6 + $0x1], 0  ;;  %s4503_s27 = smov 0   ;;  %s4505_s28 = smov 0  }
   0x7   :  { %s4507_s29 = smov 0   ;;  %s4509_s30 = smov 0  }
   0x8   :  { %s4511_s9 = smov 0   ;;  %s4513_s10 = smov 0  }
   0x9 LB: > { %s3691_s11 = sadd.s32 4294967295, %s4442_s10   ;;  %s3692_s12 = sadd.s32 4294967294, %s4442_s10   ;;  %s4442_s10 = sphi %s4513_s10, %s24_s10   ;;  %s4438_s9 = sphi %s4511_s9, %s6772_s9   ;;  %s4434_s30 = sphi %s4509_s30, %s6771_s30   ;;  %s4430_s29 = sphi %s4507_s29, %s6770_s29   ;;  %s4426_s28 = sphi %s4505_s28, %s6769_s28   ;;  %s4422_s27 = sphi %s4503_s27, %s6768_s27  }
   0xa   : > { %s36_s13 = sadd.s32 1, %s4438_s9  ;;  %s192_s14 = sadd.s32 1, %s4430_s29 }
   0xb   : > { %p38_p0 = scmp.ge.s32.totalorder %s36_s13, 2  ;;  %p202_p1 = scmp.ne.s32.totalorder %s4430_s29, %s4426_s28 }
   0xc   : > { %p203_p2 = scmp.eq.s32.totalorder %s3691_s11, 1  ;;  %p208_p3 = scmp.ne.s32.totalorder %s4426_s28, %s4422_s27 }
   0xd   : > { %s6774_s13 = smov (%p38_p0, %s36_s13), 0  ;;  %p209_p5 = scmp.eq.s32.totalorder %s3692_s12, 1 }
   0xe   : > { %6611 = sst [smem:[#allocation22_spill]] %s6774_s13  ;;  %p4543_p4 = por %p203_p2, %p202_p1 }
   0xf   : > { %s187_s16 = ssub.s32 %s4438_s9, %s6774_s13  ;;  %p3693_p6 = scmp.ge.s32.totalorder %s4442_s10, 1 }
  0x10   : > { %s6612_s15 = scalar_select %p4543_p4, 1, 0 }
  0x11   : > { %p190_p7 = scmp.eq.s32.totalorder %s187_s16, 0  ;;  %p4550_p8 = por %p209_p5, %p208_p3 }
  0x12   : > { %p216_p9 = scmp.lt.s32.totalorder %s4442_s10, 3  ;;  %p4562_p11 = scmp.eq.s32.totalorder %s3691_s11, 0 }
  0x13   : > { %s6613_s17 = scalar_select %p4550_p8, 1, 0 }
  0x14   : > { %s4556_s18 = scalar_select %p190_p7, %s4430_s29, %s192_s14  }
  0x15   : > { %p4558_p10 = pnand %p3693_p6, %p216_p9  ;;  %s4444_s21 = smov [#allocation7]  }
  0x16   : > { %s6615_s20 = scalar_select %p4562_p11, 1, 0 }
  0x17   : > { %p4075_p12 = pneg %p4558_p10  ;;  %s241_s22 = sshll.u32 %s4444_s21, 4  ;;  %s242_s22 = int_to_ptr.vmem [resolvable:$true] %s241_s22 }
  0x18   : > { %s4445_s24 = smov [#allocation4]   ;;  %s4237_s26 = scalar_lea.vmem %s242_s22, 1024 }
  0x19   : > { %p4570_p13 = pnand %p4562_p11, %p4075_p12  ;;  %s228_s25 = sshll.u32 %s4445_s24, 4  ;;  %s229_s25 = int_to_ptr.vmem [resolvable:$true] %s228_s25 }
  0x1a   : > { %p4238_p1 = scmp.ne.s32.totalorder %s242_s22, %s4237_s26  ;;  %p4245_p5 = scmp.lt.s32.totalorder %s242_s22, %s242_s22 }
  0x1b   : > { %p4228_p0 = pneg %p4570_p13  ;;  %p4246_p6 = scmp.lt.s32.totalorder %s4237_s26, %s4237_s26 }
  0x1d   : > { %p4240_p2 = pnand %p4238_p1, %p4228_p0  ;;  %p4247_p7 = por %p4246_p6, %p4245_p5 }
  0x1f   : > { %p4241_p3 = pneg %p4240_p2 }
  0x21   : > { %p4248_p9 = pnand %p4247_p7, %p4241_p3 }
  0x23   : > { %4251 = shalt.err (!%p4248_p9)
}
  0x24   : > { %s6576_s11 = smov 64   ;;  %s6577_s12 = smov 4  }
  0x25   : > { %s6617_s2 = sld [smem:[#allocation52_spill]]  ;;  %s4263_s21 = scalar_lea.vmem %s229_s25, 384 }
  0x26   : > { %p4264_p12 = scmp.ne.s32.totalorder %s229_s25, %s4263_s21  ;;  %p4271_p3 = scmp.lt.s32.totalorder %s229_s25, %s229_s25 }
  0x27   : > { %p4272_p5 = scmp.lt.s32.totalorder %s4263_s21, %s4263_s21 }
  0x28   : > { %p4266_p1 = pnand %p4264_p12, %p4228_p0 }
  0x29   : > { %p4273_p6 = por %p4272_p5, %p4271_p3 }
  0x2a   : > { %p4267_p2 = pneg %p4266_p1 }
  0x2b   : > { %4081 = dma.hbm_to_vmem [thread:$0]  (!%p4570_p13), %s6617_s2, 1024, %s242_s22, [#allocation8], %s6576_s11, %s6576_s11, %s6577_s12  }
  0x2c   : > { %p4274_p7 = pnand %p4273_p6, %p4267_p2 }
  0x2e   : > { %4277 = shalt.err (!%p4274_p7)
}
  0x2f   : > { %s4448_s24 = smov 128   ;;  %s4449_s26 = smov 8  }
  0x30   : > { %4078 = dma.hbm_to_vmem [thread:$0]  (!%p4570_p13), %s6567_s1, 384, %s229_s25, [#allocation5], %s4448_s24, %s4448_s24, %s4449_s26  }
  0x31   : > { %s4450_s22 = smov [#allocation9]   ;;  %s4451_s11 = smov [#allocation10]  }
  0x32   : > { %s257_s16 = sshll.u32 %s4450_s22, 4  ;;  %s273_s12 = sshll.u32 %s4451_s11, 4  ;;  %s258_s16 = int_to_ptr.vmem [resolvable:$true] %s257_s16  ;;  %s274_s12 = int_to_ptr.vmem [resolvable:$true] %s273_s12 }
  0x33   : > { %s4289_s2 = scalar_lea.vmem %s258_s16, 256  ;;  %p4297_p2 = scmp.lt.s32.totalorder %s258_s16, %s258_s16 }
  0x34   : > { %p4290_p9 = scmp.ne.s32.totalorder %s258_s16, %s4289_s2  ;;  %p4298_p3 = scmp.lt.s32.totalorder %s4289_s2, %s4289_s2 }
  0x36   : > { %p4292_p12 = pnand %p4290_p9, %p4228_p0  ;;  %p4299_p5 = por %p4298_p3, %p4297_p2 }
  0x38   : > { %p4293_p1 = pneg %p4292_p12 }
  0x3a   : > { %p4300_p6 = pnand %p4299_p5, %p4293_p1 }
  0x3c   : > { %4303 = shalt.err (!%p4300_p6)
}
  0x3d   : > { %4084 = dma.hbm_to_vmem [thread:$0]  (!%p4570_p13), %s6570_s4, 256, %s258_s16, [#allocation8], %s4448_s24, %s4448_s24, %s4449_s26  }
  0x3e   : > { %s4315_s11 = scalar_lea.vmem %s274_s12, 1024  ;;  %p4323_p12 = scmp.lt.s32.totalorder %s274_s12, %s274_s12 }
  0x3f   : > { %p4316_p7 = scmp.ne.s32.totalorder %s274_s12, %s4315_s11  ;;  %p4324_p4 = scmp.lt.s32.totalorder %s4315_s11, %s4315_s11 }
  0x41   : > { %p4318_p8 = pnand %p4316_p7, %p4228_p0  ;;  %p4325_p11 = por %p4324_p4, %p4323_p12 }
  0x43   : > { %p4319_p9 = pneg %p4318_p8 }
  0x45   : > { %p4326_p2 = pnand %p4325_p11, %p4319_p9 }
  0x47   : > { %4329 = shalt.err (!%p4326_p2)
}
  0x48   : > { %s6618_s2 = smov 4   ;;  %s6619_s21 = smov 64  }
  0x49   : > { %4087 = dma.hbm_to_vmem [thread:$0]  (!%p4570_p13), %s6572_s6, 1024, %s274_s12, [#allocation11], %s6619_s21, %s6619_s21, %s6618_s2  }
  0x4a   : > { %292 = sbr.rel (%p4558_p10) target bundleno = 908 (0x38c), region = 48 }
  0x4f   : > { %p6620_p0 = scmp.ne.s32.totalorder %s6615_s20, 0 }
  0x51   : > { %4403 = dma.done.wait (%p6620_p0), [#allocation5], 384  }
  0x52   : > { %4405 = vsyncadd (%p6620_p0), [#allocation5], 4294966912 }
  0x53   : > { %4407 = dma.done.wait (%p6620_p0), [#allocation8], 1280  }
  0x54   : > { %4409 = vsyncadd (%p6620_p0), [#allocation8], 4294966016 }
  0x55   : > { %4411 = dma.done.wait (%p6620_p0), [#allocation11], 1024  }
  0x56   : > { %4413 = vsyncadd (%p6620_p0), [#allocation11], 4294966272  ;;  %s6581_s19 = sand.u32 1, %s4426_s28   ;;  %s3768_s23 = smul.u32 3456, %s4434_s30 }
  0x57   : > { %s3703_s12 = sshll.u32 %s6581_s19, 8  ;;  %s4452_s13 = smov [#allocation2]  }
  0x58   : > { %s336_s16 = scalar_lea.hbm %s6566_s0, %s3768_s23  ;;  %s344_s25 = sshll.u32 %s4452_s13, 4  ;;  %s345_s25 = int_to_ptr.vmem [resolvable:$true] %s344_s25 }
  0x59   : > { %s4330_s11 = scalar_lea.hbm %s336_s16, 3456  ;;  %s4332_s20 = scalar_lea.hbm %s6566_s0, 6912 }
  0x5a   : > { %p4331_p4 = scmp.ne.s32.totalorder %s336_s16, %s4330_s11  ;;  %p4333_p8 = scmp.lt.s32.totalorder %s336_s16, %s6566_s0 }
  0x5b   : > { %p4334_p10 = scmp.lt.s32.totalorder %s4332_s20, %s4330_s11 }
  0x5d   : > { %p4335_p11 = por %p4334_p10, %p4333_p8 }
  0x5f   : > { %p4336_p13 = pnand %p4335_p11, %p4331_p4 }
  0x61   : > { %4339 = shalt.err (!%p4336_p13)  }
  0x62   : > { %s4340_s19 = scalar_lea.vmem %s345_s25, 3456  ;;  %s4344_s23 = scalar_lea.vmem %s345_s25, 6912 }
  0x63   : > { %p4341_p1 = scmp.ne.s32.totalorder %s345_s25, %s4340_s19  ;;  %p4345_p3 = scmp.lt.s32.totalorder %s345_s25, %s345_s25 }
  0x64   : > { %p4346_p5 = scmp.lt.s32.totalorder %s4344_s23, %s4340_s19 }
  0x66   : > { %p4347_p6 = por %p4346_p5, %p4345_p3 }
  0x68   : > { %p4348_p7 = pnand %p4347_p6, %p4341_p1 }
  0x6a   : > { %4351 = shalt.err (!%p4348_p7)  }
  0x6b   : > { %347 = dma.hbm_to_vmem [thread:$0]  %s336_s16, 3456, %s345_s25, [#allocation3] }
  0x6c   : > { %s4641_s24 = scalar_lea.vmem [#allocation12], %s3703_s12 }
  0x6d   : > { %4414 = dma.done.wait [#allocation3], 3456 }
  0x6e   : > { %4415 = vsyncadd [#allocation3], 4294963840  ;;  %v4453_v0 = vmov 0.0   ;;  %vm4454_vm0 = vmmov 0   ;;  %v4162_v1 = vld [vmem:[#allocation7 + $0x38] sm:$0xff]   ;;  %v4163_v2 = vld [vmem:[#allocation7 + $0x30] sm:$0xff]   ;;  %v946_v4 = vlaneseq }
  0x6f   : > { %3869 = vmatprep.subr.bf16.mxu0 %v4453_v0  ;;  %3885 = vmatprep.mubr.msk.bf16.mxu0 %vm4454_vm0, %v4453_v0  ;;  %v4164_v3 = vld [vmem:[#allocation7 + $0x28] sm:$0xff]   ;;  %v4165_v5 = vld [vmem:[#allocation7 + $0x20] sm:$0xff]   ;;  %v4166_v7 = vld [vmem:[#allocation7 + $0x18] sm:$0xff]   ;;  %vm1447_vm1 = vcmask 1046528   ;;  %vm1693_vm2 = vcmask 1045504   ;;  %s3769_s23 = sshll.u32 %s4434_s30, 12 }
  0x70   : > { %4041 = vmatprep.subr.bf16.mxu1 %v4453_v0  ;;  %3957 = vmatprep.mubr.msk.bf16.mxu1 %vm4454_vm0, %v4453_v0  ;;  %v4655_v6 = vshrl.u32 %v946_v4, 7  ;;  %v4167_v9 = vld [vmem:[#allocation7 + $0x10] sm:$0xff]   ;;  %v4664_v10 = vld [vmem:[#allocation4] sm:$0xff]  ;;  %v4169_v15 = vld [vmem:[#allocation7] sm:$0xff]   ;;  %s3574_s19 = sshll.u32 %s4641_s24, 4  ;;  %s6513_s16 = scalar_lea.hbm %s6574_s8, %s3769_s23  ;;  %s6515_s19 = int_to_ptr.vmem [resolvable:$true] %s3574_s19 }
  0x71   : > { %3870 = vmatpush3.bf16.msra.mxu0 %v4162_v1  ;;  %4049 = vmatpush3.bf16.msra.mxu1 %v4162_v1  ;;  %v4168_v13 = vld [vmem:[#allocation7 + $0x8] sm:$0xff]   ;;  %v4170_v17 = vld [vmem:[#allocation2] sm:$0xff]   ;;  %v4171_v22 = vld [vmem:[#allocation2 + $0x8] sm:$0xff]   ;;  %s6764_s30 = sand.u32 1, %s4426_s28   ;;  %s4352_s25 = scalar_lea.vmem %s6515_s19, 4096 }
  0x72   : > { %3871 = vmatprep.subr.bf16.mxu0 %v4453_v0  ;;  %4042 = vmatprep.subr.bf16.mxu1 %v4453_v0  ;;  %v4660_v8 = vsub.s32 0, %v4655_v6  ;;  %v4667_v11 = vsub.s32 1, %v4655_v6  ;;  %v978_v16 = vsub.s32 2, %v4655_v6  ;;  %v4180_v18 = vld [vmem:[#allocation2 + $0x90] sm:$0xff]   ;;  %v993_v20 = vsub.s32 3, %v4655_v6  ;;  %v4182_v23 = vld [vmem:[#allocation2 + $0x98] sm:$0xff]   ;;  %p4353_p9 = scmp.ne.s32.totalorder %s6515_s19, %s4352_s25 }
  0x73   : > { %v1008_v21 = vsub.s32 4, %v4655_v6  ;;  %v1023_v26 = vsub.s32 5, %v4655_v6  ;;  %v4172_v27 = vld [vmem:[#allocation2 + $0x10] sm:$0xff]   ;;  %v4184_v28 = vld [vmem:[#allocation2 + $0xa0] sm:$0xff]   ;;  %v1038_v30 = vsub.s32 6, %v4655_v6  ;;  %v4173_v31 = vld [vmem:[#allocation2 + $0x18] sm:$0xff]  }
  0x74   : > { %v949_v12 = vrot.slane %v4664_v10, %v4660_v8  ;;  %v964_v14 = vrot.slane %v4664_v10, %v4667_v11  ;;  %v979_v19 = vrot.slane %v4664_v10, %v978_v16  ;;  %v994_v24 = vrot.slane %v4664_v10, %v993_v20  ;;  %v4186_v32 = vld [vmem:[#allocation2 + $0xa8] sm:$0xff]   ;;  %v4174_v36 = vld [vmem:[#allocation2 + $0x20] sm:$0xff]   ;;  %v4188_v37 = vld [vmem:[#allocation2 + $0xb0] sm:$0xff]   ;;  %s6521_s13 = scalar_lea.sflag [#allocation6], %s6764_s30  ;;  %p6765_p12 = scmp.ne.s32.totalorder %s6612_s15, 0 }
  0x75   : > { %3872 = vmatpush3.bf16.msra.mxu0 %v4163_v2  ;;  %4050 = vmatpush3.bf16.msra.mxu1 %v4163_v2  ;;  %v1009_v25 = vrot.slane %v4664_v10, %v1008_v21  ;;  %v1024_v29 = vrot.slane %v4664_v10, %v1023_v26  ;;  %v1039_v33 = vrot.slane %v4664_v10, %v1038_v30  ;;  %v1053_v34 = vsub.s32 7, %v4655_v6  ;;  %v944_v38 = vld [vmem:[#allocation4 + $0x8] sm:$0xff]  ;;  %v4175_v40 = vld [vmem:[#allocation2 + $0x28] sm:$0xff]   ;;  %v4176_v43 = vld [vmem:[#allocation2 + $0x30] sm:$0xff]   ;;  %s4455_s11 = smov [#allocation12]  }
  0x76   : > { %3873 = vmatprep.subr.bf16.mxu0 %v4453_v0  ;;  %4043 = vmatprep.subr.bf16.mxu1 %v4453_v0  ;;  %v1069_v39 = vrot.slane %v944_v38, %v4660_v8  ;;  %v4190_v41 = vld [vmem:[#allocation2 + $0xb8] sm:$0xff]   ;;  %v1084_v42 = vrot.slane %v944_v38, %v4667_v11  ;;  %v4192_v44 = vld [vmem:[#allocation2 + $0xc0] sm:$0xff]   ;;  %v1099_v45 = vrot.slane %v944_v38, %v978_v16  ;;  %v4194_v48 = vld [vmem:[#allocation2 + $0xc8] sm:$0xff]   ;;  %p4354_p2 = pnand %p4353_p9, %p6765_p12  ;;  %s4356_s2 = sshll.u32 %s4455_s11, 4  ;;  %s4357_s2 = int_to_ptr.vmem [resolvable:$false] %s4356_s2 }
  0x77   : > { %951 = vbcast.lane.b32.xlu0 %v949_v12, 256  ;;  %959 = vbcast.lane.b32.xlu1 %v949_v12, 272  ;;  %v1054_v35 = vrot.slane %v4664_v10, %v1053_v34  ;;  %v1114_v46 = vrot.slane %v944_v38, %v993_v20  ;;  %v4177_v47 = vld [vmem:[#allocation2 + $0x38] sm:$0xff]   ;;  %v1129_v49 = vrot.slane %v944_v38, %v1008_v21  ;;  %v4178_v50 = vld [vmem:[#allocation2 + $0x40] sm:$0xff]   ;;  %v4196_v51 = vld [vmem:[#allocation2 + $0xd0] sm:$0xff]   ;;  %s4358_s21 = scalar_lea.vmem %s4357_s2, 8192  ;;  %p4359_p4 = scmp.lt.s32.totalorder %s6515_s19, %s4357_s2 }
  0x78   : > { %v1144_v52 = vrot.slane %v944_v38, %v1023_v26  ;;  %v4179_v53 = vld [vmem:[#allocation2 + $0x48] sm:$0xff]   ;;  %v1159_v54 = vrot.slane %v944_v38, %v1038_v30  ;;  %v1174_v55 = vrot.slane %v944_v38, %v1053_v34  ;;  %v4181_v56 = vld [vmem:[#allocation2 + $0x50] sm:$0xff]   ;;  %v945_v57 = vld [vmem:[#allocation4 + $0x10] sm:$0x3]  ;;  %p4355_p0 = pneg %p4354_p2  ;;  %p4360_p8 = scmp.lt.s32.totalorder %s4358_s21, %s4352_s25 }
  0x79   : > { %3874 = vmatpush3.bf16.msra.mxu0 %v4164_v3  ;;  %4051 = vmatpush3.bf16.msra.mxu1 %v4164_v3  ;;  %v1189_v58 = vrot.slane %v945_v57, %v4660_v8  ;;  %v4183_v59 = vld [vmem:[#allocation2 + $0x58] sm:$0xff]   ;;  %v4185_v60 = vld [vmem:[#allocation2 + $0x60] sm:$0xff]   ;;  %v1204_v61 = vrot.slane %v945_v57, %v4667_v11  ;;  %v4197_v62 = vld [vmem:[#allocation10 + $0x38] sm:$0xff]  }
  0x7a   : > { %3875 = vmatprep.subr.bf16.mxu0 %v4453_v0  ;;  %4044 = vmatprep.subr.bf16.mxu1 %v4453_v0  ;;  %v4187_v63 = vld [vmem:[#allocation2 + $0x68] sm:$0xff]   ;;  %v4199_v2 = vld [vmem:[#allocation10 + $0x28] sm:$0xff]   ;;  %v4200_v6 = vld [vmem:[#allocation10 + $0x20] sm:$0xff]   ;;  %p4361_p10 = por %p4360_p8, %p4359_p4 }
  0x7b   : > { %955 = vbcast.lane.b32.xlu0 %v949_v12, 264  ;;  %966 = vbcast.lane.b32.xlu1 %v964_v14, 256  ;;  %v4198_v1 = vld [vmem:[#allocation10 + $0x30] sm:$0xff]   ;;  %v4191_v12 = vld [vmem:[#allocation2 + $0x78] sm:$0xff]   ;;  %v4203_v20 = vld [vmem:[#allocation10 + $0x8] sm:$0xff]  }
  0x7c   : > { %v4846_v57 = vld [vmem:[#allocation9 + $0x1] ss:$0 sm:$0xff]  ;;  %p4362_p11 = pnand %p4361_p10, %p4355_p0 }
  0x7d   : > { %3876 = vmatpush3.bf16.msra.mxu0 %v4165_v5  ;;  %4052 = vmatpush3.bf16.msra.mxu1 %v4165_v5  ;;  %v4189_v5 = vld [vmem:[#allocation2 + $0x70] sm:$0xff]  }
  0x7e   : > { %3877 = vmatprep.subr.bf16.mxu0 %v4453_v0  ;;  %4045 = vmatprep.subr.bf16.mxu1 %v4453_v0 }
  0x7f   : > { %970 = vbcast.lane.b32.xlu0 %v964_v14, 264  ;;  %974 = vbcast.lane.b32.xlu1 %v964_v14, 272 }
  0x81   : > { %3878 = vmatpush3.bf16.msra.mxu0 %v4166_v7  ;;  %4053 = vmatpush3.bf16.msra.mxu1 %v4166_v7 }
  0x82   : > { %3879 = vmatprep.subr.bf16.mxu0 %v4453_v0  ;;  %4046 = vmatprep.subr.bf16.mxu1 %v4453_v0 }
  0x83   : > { %981 = vbcast.lane.b32.xlu0 %v979_v19, 256  ;;  %985 = vbcast.lane.b32.xlu1 %v979_v19, 264 }
  0x85   : > { %3880 = vmatpush3.bf16.msra.mxu0 %v4167_v9  ;;  %4054 = vmatpush3.bf16.msra.mxu1 %v4167_v9  ;;  %v4201_v9 = vld [vmem:[#allocation10 + $0x18] sm:$0xff]  }
  0x86   : > { %3881 = vmatprep.subr.bf16.mxu0 %v4453_v0  ;;  %4047 = vmatprep.subr.bf16.mxu1 %v4453_v0 }
  0x87   : > { %989 = vbcast.lane.b32.xlu0 %v979_v19, 272  ;;  %996 = vbcast.lane.b32.xlu1 %v994_v24, 256 }
  0x89   : > { %3882 = vmatpush3.bf16.msra.mxu0 %v4168_v13  ;;  %4055 = vmatpush3.bf16.msra.mxu1 %v4168_v13  ;;  %v4202_v13 = vld [vmem:[#allocation10 + $0x10] sm:$0xff]  }
  0x8a   : > { %3883 = vmatprep.subr.bf16.mxu0 %v4453_v0  ;;  %4048 = vmatprep.subr.bf16.mxu1 %v4453_v0 }
  0x8b   : > { %1000 = vbcast.lane.b32.xlu0 %v994_v24, 264  ;;  %1004 = vbcast.lane.b32.xlu1 %v994_v24, 272  ;;  %v4195_v24 = vld [vmem:[#allocation2 + $0x88] sm:$0xff]  }
  0x8d   : > { %3884 = vmatpush3.bf16.msra.mxu0 %v4169_v15  ;;  %4056 = vmatpush3.bf16.msra.mxu1 %v4169_v15 }
  0x8e   : > { %3993 = vmatprep.subr.bf16.mxu1 %v4197_v62 }
  0x8f   : > { %1011 = vbcast.lane.b32.xlu0 %v1009_v25, 256  ;;  %1015 = vbcast.lane.b32.xlu1 %v1009_v25, 264 }
  0x90   : > { %3886 = vmatmul.mubr.bf16.vlgmr.msra.gmra.mxu0 %v4170_v17  ;;  %3958 = vmatmul.mubr.bf16.vlgmr.msra.gmra.mxu1 %v4180_v18  ;;  %v4193_v18 = vld [vmem:[#allocation2 + $0x80] sm:$0xff]  }
  0x91   : > { %3889 = vmatprep.mubr.msk.bf16.mxu0 %vm4454_vm0, %v4453_v0  ;;  %3961 = vmatprep.mubr.msk.bf16.mxu1 %vm4454_vm0, %v4453_v0 }
  0x92   : > { %3994 = vmatpush3.bf16.msra.mxu1 %v4197_v62 }
  0x93   : > { %1019 = vbcast.lane.b32.xlu0 %v1009_v25, 272  ;;  %1026 = vbcast.lane.b32.xlu1 %v1024_v29, 256 }
  0x94   : > { %3995 = vmatprep.subr.bf16.mxu1 %v4198_v1 }
  0x96   : > { %3996 = vmatpush3.bf16.msra.mxu1 %v4198_v1 }
  0x97   : > { %1030 = vbcast.lane.b32.xlu0 %v1024_v29, 264  ;;  %1034 = vbcast.lane.b32.xlu1 %v1024_v29, 272 }
  0x98   : > { %3890 = vmatmul.mubr.bf16.gmra.mxu0 %v4171_v22  ;;  %3962 = vmatmul.mubr.bf16.gmra.mxu1 %v4182_v23  ;;  %v4204_v23 = vld [vmem:[#allocation10] sm:$0xff]  }
  0x99   : > { %3893 = vmatprep.mubr.msk.bf16.mxu0 %vm4454_vm0, %v4453_v0  ;;  %3965 = vmatprep.mubr.msk.bf16.mxu1 %vm4454_vm0, %v4453_v0 }
  0x9a   : > { %3997 = vmatprep.subr.bf16.mxu1 %v4199_v2 }
  0x9b   : > { %1041 = vbcast.lane.b32.xlu0 %v1039_v33, 256  ;;  %1045 = vbcast.lane.b32.xlu1 %v1039_v33, 264 }
  0x9c   : > { %3998 = vmatpush3.bf16.msra.mxu1 %v4199_v2 }
  0x9d   : > { %3999 = vmatprep.subr.bf16.mxu1 %v4200_v6 }
  0x9f   : > { %1049 = vbcast.lane.b32.xlu0 %v1039_v33, 272  ;;  %1056 = vbcast.lane.b32.xlu1 %v1054_v35, 256 }
  0xa0   : > { %3894 = vmatmul.mubr.bf16.gmra.mxu0 %v4172_v27  ;;  %3966 = vmatmul.mubr.bf16.gmra.mxu1 %v4184_v28 }
  0xa1   : > { %3897 = vmatprep.mubr.msk.bf16.mxu0 %vm4454_vm0, %v4453_v0  ;;  %3969 = vmatprep.mubr.msk.bf16.mxu1 %vm4454_vm0, %v4453_v0 }
  0xa2   : > { %4000 = vmatpush3.bf16.msra.mxu1 %v4200_v6 }
  0xa3   : > { %1060 = vbcast.lane.b32.xlu0 %v1054_v35, 264  ;;  %1064 = vbcast.lane.b32.xlu1 %v1054_v35, 272 }
  0xa4   : > { %4001 = vmatprep.subr.bf16.mxu1 %v4201_v9 }
  0xa6   : > { %4002 = vmatpush3.bf16.msra.mxu1 %v4201_v9 }
  0xa7   : > { %1071 = vbcast.lane.b32.xlu0 %v1069_v39, 256  ;;  %1075 = vbcast.lane.b32.xlu1 %v1069_v39, 264 }
  0xa8   : > { %3898 = vmatmul.mubr.bf16.gmra.mxu0 %v4173_v31  ;;  %3970 = vmatmul.mubr.bf16.gmra.mxu1 %v4186_v32 }
  0xa9   : > { %3901 = vmatprep.mubr.msk.bf16.mxu0 %vm4454_vm0, %v4453_v0  ;;  %3973 = vmatprep.mubr.msk.bf16.mxu1 %vm4454_vm0, %v4453_v0 }
  0xaa   : > { %4003 = vmatprep.subr.bf16.mxu1 %v4202_v13 }
  0xab   : > { %1079 = vbcast.lane.b32.xlu0 %v1069_v39, 272  ;;  %1086 = vbcast.lane.b32.xlu1 %v1084_v42, 256 }
  0xac   : > { %4004 = vmatpush3.bf16.msra.mxu1 %v4202_v13 }
  0xad   : > { %4005 = vmatprep.subr.bf16.mxu1 %v4203_v20 }
  0xaf   : > { %1090 = vbcast.lane.b32.xlu0 %v1084_v42, 264  ;;  %1094 = vbcast.lane.b32.xlu1 %v1084_v42, 272 }
  0xb0   : > { %3902 = vmatmul.mubr.bf16.gmra.mxu0 %v4174_v36  ;;  %3974 = vmatmul.mubr.bf16.gmra.mxu1 %v4188_v37 }
  0xb1   : > { %3905 = vmatprep.mubr.msk.bf16.mxu0 %vm4454_vm0, %v4453_v0  ;;  %3977 = vmatprep.mubr.msk.bf16.mxu1 %vm4454_vm0, %v4453_v0 }
  0xb2   : > { %4006 = vmatpush3.bf16.msra.mxu1 %v4203_v20 }
  0xb3   : > { %1101 = vbcast.lane.b32.xlu0 %v1099_v45, 256  ;;  %1105 = vbcast.lane.b32.xlu1 %v1099_v45, 264 }
  0xb4   : > { %4007 = vmatprep.subr.bf16.mxu1 %v4204_v23 }
  0xb6   : > { %4008 = vmatpush3.bf16.msra.mxu1 %v4204_v23 }
  0xb7   : > { %1109 = vbcast.lane.b32.xlu0 %v1099_v45, 272  ;;  %1116 = vbcast.lane.b32.xlu1 %v1114_v46, 256 }
  0xb8   : > { %3906 = vmatmul.mubr.bf16.gmra.mxu0 %v4175_v40  ;;  %3978 = vmatmul.mubr.bf16.gmra.mxu1 %v4190_v41 }
  0xb9   : > { %3909 = vmatprep.mubr.msk.bf16.mxu0 %vm4454_vm0, %v4453_v0  ;;  %3981 = vmatprep.mubr.msk.bf16.mxu1 %vm4454_vm0, %v4453_v0 }
  0xbb   : > { %1120 = vbcast.lane.b32.xlu0 %v1114_v46, 264  ;;  %1124 = vbcast.lane.b32.xlu1 %v1114_v46, 272 }
  0xbf   : > { %1131 = vbcast.lane.b32.xlu0 %v1129_v49, 256  ;;  %1135 = vbcast.lane.b32.xlu1 %v1129_v49, 264 }
  0xc0   : > { %3910 = vmatmul.mubr.bf16.gmra.mxu0 %v4176_v43  ;;  %3982 = vmatmul.mubr.bf16.gmra.mxu1 %v4192_v44  ;;  %v4836_v44 = vld [vmem:[%s6569_s3] ss:$0 sm:$0xff] }
  0xc1   : > { %3913 = vmatprep.mubr.msk.bf16.mxu0 %vm4454_vm0, %v4453_v0  ;;  %3985 = vmatprep.mubr.msk.bf16.mxu1 %vm4454_vm0, %v4453_v0 }
  0xc3   : > { %1139 = vbcast.lane.b32.xlu0 %v1129_v49, 272  ;;  %1146 = vbcast.lane.b32.xlu1 %v1144_v52, 256 }
  0xc7   : > { %1150 = vbcast.lane.b32.xlu0 %v1144_v52, 264  ;;  %1154 = vbcast.lane.b32.xlu1 %v1144_v52, 272 }
  0xc8   : > { %3914 = vmatmul.mubr.bf16.gmra.mxu0 %v4177_v47  ;;  %3986 = vmatmul.mubr.bf16.gmra.mxu1 %v4194_v48 }
  0xc9   : > { %3917 = vmatprep.mubr.msk.bf16.mxu0 %vm4454_vm0, %v4453_v0  ;;  %3989 = vmatprep.mubr.msk.bf16.mxu1 %vm4454_vm0, %v4453_v0 }
  0xcb   : > { %1161 = vbcast.lane.b32.xlu0 %v1159_v54, 256  ;;  %1165 = vbcast.lane.b32.xlu1 %v1159_v54, 264 }
  0xcf   : > { %1169 = vbcast.lane.b32.xlu0 %v1159_v54, 272  ;;  %1176 = vbcast.lane.b32.xlu1 %v1174_v55, 256 }
  0xd0   : > { %3918 = vmatmul.mubr.bf16.gmra.mxu0 %v4178_v50  ;;  %3990 = vmatmul.mubr.bf16.gmra.mxu1 %v4196_v51 }
  0xd1   : > { %3921 = vmatprep.mubr.msk.bf16.mxu0 %vm4454_vm0, %v4453_v0 }
  0xd3   : > { %1184 = vbcast.lane.b32.xlu1 %v1174_v55, 272  ;;  %1180 = vbcast.lane.b32.xlu0 %v1174_v55, 264 }
  0xd7   : > { %1191 = vbcast.lane.b32.xlu0 %v1189_v58, 256  ;;  %1195 = vbcast.lane.b32.xlu1 %v1189_v58, 264 }
  0xd8   : > { %3922 = vmatmul.mubr.bf16.gmra.mxu0 %v4179_v53 }
  0xd9   : > { %3925 = vmatprep.mubr.msk.bf16.mxu0 %vm4454_vm0, %v4453_v0 }
  0xdb   : > { %1199 = vbcast.lane.b32.xlu0 %v1189_v58, 272  ;;  %1206 = vbcast.lane.b32.xlu1 %v1204_v61, 256 }
  0xdf   : > { %1210 = vbcast.lane.b32.xlu0 %v1204_v61, 264  ;;  %1214 = vbcast.lane.b32.xlu1 %v1204_v61, 272  ;;  %v4850_v61 = vld [vmem:[#allocation9 + $0x2] ss:$0 sm:$0xff] }
  0xe0   : > { %3926 = vmatmul.mubr.bf16.gmra.mxu0 %v4181_v56  ;;  %v4844_v56 = vld [vmem:[#allocation9] ss:$0 sm:$0xff] }
  0xe1   : > { %3929 = vmatprep.mubr.msk.bf16.mxu0 %vm4454_vm0, %v4453_v0 }
  0xe8   : > { %3930 = vmatmul.mubr.bf16.gmra.mxu0 %v4183_v59 }
  0xe9   : > { %3933 = vmatprep.mubr.msk.bf16.mxu0 %vm4454_vm0, %v4453_v0  ;;  %v4761_v3 = vpop.permute.xlu0 %951  ;;  %v4763_v4 = vpop.permute.xlu1 %959 }
  0xed   : > { %v4765_v7 = vpop.permute.xlu0 %955  ;;  %v4767_v8 = vpop.permute.xlu1 %966 }
  0xf0   : > { %3934 = vmatmul.mubr.bf16.gmra.mxu0 %v4185_v60 }
  0xf1   : > { %3937 = vmatprep.mubr.msk.bf16.mxu0 %vm4454_vm0, %v4453_v0  ;;  %v4771_v10 = vpop.permute.xlu0 %970  ;;  %v4773_v11 = vpop.permute.xlu1 %974 }
  0xf5   : > { %v4775_v14 = vpop.permute.xlu0 %981  ;;  %v4777_v15 = vpop.permute.xlu1 %985 }
  0xf8   : > { %3938 = vmatmul.mubr.bf16.gmra.mxu0 %v4187_v63 }
  0xf9   : > { %3941 = vmatprep.mubr.msk.bf16.mxu0 %vm4454_vm0, %v4453_v0  ;;  %v4781_v16 = vpop.permute.xlu0 %989  ;;  %v4783_v17 = vpop.permute.xlu1 %996 }
  0xfd   : > { %v4785_v19 = vpop.permute.xlu0 %1000  ;;  %v4787_v21 = vpop.permute.xlu1 %1004 }
 0x100   : > { %3942 = vmatmul.mubr.bf16.gmra.mxu0 %v4189_v5 }
 0x101   : > { %3945 = vmatprep.mubr.msk.bf16.mxu0 %vm4454_vm0, %v4453_v0  ;;  %v4791_v22 = vpop.permute.xlu0 %1011  ;;  %v4793_v25 = vpop.permute.xlu1 %1015 }
 0x105   : > { %v4795_v26 = vpop.permute.xlu0 %1019  ;;  %v4799_v28 = vpop.permute.xlu1 %1026 }
 0x108   : > { %3946 = vmatmul.mubr.bf16.gmra.mxu0 %v4191_v12 }
 0x109   : > { %3949 = vmatprep.mubr.msk.bf16.mxu0 %vm4454_vm0, %v4453_v0  ;;  %v4797_v27 = vpop.permute.xlu0 %1030  ;;  %v4803_v30 = vpop.permute.xlu1 %1034 }
 0x10d   : > { %v4801_v29 = vpop.permute.xlu0 %1041  ;;  %v4807_v31 = vpop.permute.xlu1 %1045 }
 0x110   : > { %3950 = vmatmul.mubr.bf16.gmra.mxu0 %v4193_v18 }
 0x111   : > { %3953 = vmatprep.mubr.msk.bf16.mxu0 %vm4454_vm0, %v4453_v0  ;;  %v4805_v0 = vpop.permute.xlu0 %1049  ;;  %v4811_v33 = vpop.permute.xlu1 %1056 }
 0x115   : > { %v4809_v32 = vpop.permute.xlu0 %1060  ;;  %v4815_v35 = vpop.permute.xlu1 %1064 }
 0x118   : > { %3954 = vmatmul.mubr.bf16.gmra.mxu0 %v4195_v24 }
 0x119   : > { %v4813_v34 = vpop.permute.xlu0 %1071  ;;  %v4819_v37 = vpop.permute.xlu1 %1075 }
 0x11a   : > { %6622 = vst [vmem:[#allocation24_spill] sm:$0xff] %v4819_v37 }
 0x11d   : > { %v4817_v36 = vpop.permute.xlu0 %1079  ;;  %v4823_v39 = vpop.permute.xlu1 %1086 }
 0x11e   : > { %6621 = vst [vmem:[#allocation23_spill] sm:$0xff] %v4817_v36  ;;  %6624 = vst [vmem:[#allocation26_spill] sm:$0xff] %v4823_v39 }
 0x121   : > { %v4821_v38 = vpop.permute.xlu0 %1090  ;;  %v4827_v41 = vpop.permute.xlu1 %1094 }
 0x122   : > { %6623 = vst [vmem:[#allocation25_spill] sm:$0xff] %v4821_v38  ;;  %6626 = vst [vmem:[#allocation28_spill] sm:$0xff] %v4827_v41 }
 0x125   : > { %v4825_v40 = vpop.permute.xlu0 %1101  ;;  %v4831_v43 = vpop.permute.xlu1 %1105 }
 0x126   : > { %6625 = vst [vmem:[#allocation27_spill] sm:$0xff] %v4825_v40  ;;  %6628 = vst [vmem:[#allocation30_spill] sm:$0xff] %v4831_v43 }
 0x129   : > { %v4829_v42 = vpop.permute.xlu0 %1109  ;;  %v4841_v49 = vpop.permute.xlu1 %1116 }
 0x12a   : > { %6627 = vst [vmem:[#allocation29_spill] sm:$0xff] %v4829_v42  ;;  %6630 = vst [vmem:[#allocation32_spill] sm:$0xff] %v4841_v49 }
 0x12d   : > { %v4838_v45 = vpop.permute.xlu0 %1120  ;;  %v4853_v6 = vpop.permute.xlu1 %1124 }
 0x12e   : > { %6629 = vst [vmem:[#allocation31_spill] sm:$0xff] %v4838_v45  ;;  %6631 = vst [vmem:[#allocation33_spill] sm:$0xff] %v4853_v6 }
 0x131   : > { %v1132_v60 = vpop.permute.xlu0 %1131 }
 0x150   : > { %v674_v46 = vpop.f32.mrf.mxu0  ;;  %v818_v47 = vpop.f32.mrf.mxu1 }
 0x151   : > { %v675_v48 = vadd.f32 %v4836_v44, %v674_v46  ;;  %v819_v53 = vadd.f32 %v4836_v44, %v818_v47 }
 0x152   : > { %v3887_v50 = vpop.f32.mrf.mxu0  ;;  %v3959_v51 = vpop.f32.mrf.mxu1 }
 0x153   : > { %v889_v52 = vmax.f32 %v675_v48, 0.0  ;;  %v925_v5 = vmax.f32 %v819_v53, 0.0 }
 0x154   : > { %v677_v54 = vpop.f32.mrf.mxu0  ;;  %v821_v55 = vpop.f32.mrf.mxu1 }
 0x155   : > { %v1216_v58 = vmul.f32 %v4761_v3, %v889_v52  ;;  %v678_v59 = vadd.f32 %v4836_v44, %v677_v54  ;;  %v822_v63 = vadd.f32 %v4836_v44, %v821_v55  ;;  %v4860_v3 = vld [vmem:[%s6571_s5] ss:$0 sm:$0xff]  ;;  %v4869_v54 = vmul.f32 %v1132_v60, %v925_v5  ;;  %v1140_v55 = vpop.permute.xlu0 %1139 }
 0x156   : > { %v3888_v62 = vpop.f32.mrf.mxu0  ;;  %v3960_v1 = vpop.f32.mrf.mxu1 }
 0x157   : > { %v890_v2 = vmax.f32 %v678_v59, 0.0  ;;  %v1282_v9 = vmul.f32 %v4844_v56, %v1216_v58  ;;  %v1351_v12 = vmul.f32 %v4846_v57, %v1216_v58  ;;  %v1597_v20 = vmul.f32 %v4850_v61, %v1216_v58  ;;  %6632 = vst [vmem:[#allocation34_spill] sm:$0xff] %v4869_v54 }
 0x158   : > { %v682_v13 = vpop.f32.mrf.mxu0  ;;  %v826_v18 = vpop.f32.mrf.mxu1  ;;  %v926_v47 = vmax.f32 %v822_v63, 0.0 }
 0x159   : > { %v1217_v23 = vmul.f32 %v4765_v7, %v890_v2  ;;  %v683_v24 = vadd.f32 %v4836_v44, %v682_v13  ;;  %v827_v48 = vadd.f32 %v4836_v44, %v826_v18  ;;  %v1314_v58 = vadd.f32 %v4860_v3, %v1282_v9 }
 0x15a   : > { %v3891_v46 = vpop.f32.mrf.mxu0  ;;  %v3963_v50 = vpop.f32.mrf.mxu1  ;;  %v1448_v7 = vrot.slane %v1351_v12, 1  ;;  %v1694_v63 = vrot.slane %v1597_v20, 2 }
 0x15b   : > { %v1283_v51 = vmul.f32 %v4844_v56, %v1217_v23  ;;  %v1352_v52 = vmul.f32 %v4846_v57, %v1217_v23  ;;  %v1598_v53 = vmul.f32 %v4850_v61, %v1217_v23  ;;  %v891_v59 = vmax.f32 %v683_v24, 0.0  ;;  %v1136_v50 = vpop.permute.xlu1 %1135 }
 0x15c   : > { %v685_v62 = vpop.f32.mrf.mxu0  ;;  %v927_v1 = vmax.f32 %v827_v48, 0.0  ;;  %v829_v2 = vpop.f32.mrf.mxu1  ;;  %v4877_v23 = vmul.f32 %v1136_v50, %v926_v47 }
 0x15d   : > { %v1449_v13 = vrot.slane %v1352_v52, 1  ;;  %v1695_v18 = vrot.slane %v1598_v53, 2  ;;  %v686_v46 = vadd.f32 %v4836_v44, %v685_v62  ;;  %v1218_v6 = vmul.f32 %v4763_v4, %v891_v59 }
 0x15e   : > { %v3892_v45 = vpop.f32.mrf.mxu0  ;;  %v4875_v60 = vadd.f32 %v4836_v44, %v829_v2  ;;  %v3964_v5 = vpop.f32.mrf.mxu1  ;;  %6634 = vst [vmem:[#allocation36_spill] sm:$0xff] %v4877_v23  ;;  %v4879_v9 = vmul.f32 %v1140_v55, %v927_v1  ;;  %v1315_v12 = vadd.f32 %v4860_v3, %v1283_v51  ;;  %v4891_v1 = vld [vmem:[#allocation9 + $0x3] ss:$0 sm:$0xff] }
 0x15f   : > { %v1450_v20 = vsel %vm1447_vm1, %v1448_v7, %v1449_v13  ;;  %v1696_v24 = vsel %vm1693_vm2, %v1694_v63, %v1695_v18  ;;  %v892_v48 = vmax.f32 %v686_v46, 0.0  ;;  %v1353_v53 = vmul.f32 %v4846_v57, %v1218_v6  ;;  %v4886_v45 = vld [vmem:[#allocation9 + $0x4] ss:$0 sm:$0xff] }
 0x160   : > { %6633 = vst [vmem:[#allocation35_spill] sm:$0xff] %v4875_v60  ;;  %6635 = vst [vmem:[#allocation37_spill] sm:$0xff] %v4879_v9  ;;  %v1560_v52 = vadd.f32 %v1450_v20, %v1314_v58  ;;  %v1599_v4 = vmul.f32 %v4850_v61, %v1218_v6  ;;  %v690_v59 = vpop.f32.mrf.mxu0  ;;  %v834_v62 = vpop.f32.mrf.mxu1  ;;  %v4898_v58 = vmul.f32 %v4846_v57, %v4879_v9 }
 0x161   : > { %v1219_v55 = vmul.f32 %v4767_v8, %v892_v48  ;;  %v691_v51 = vadd.f32 %v4836_v44, %v690_v59  ;;  %v4894_v7 = vadd.f32 %v4836_v44, %v834_v62  ;;  %v1451_v2 = vrot.slane %v1353_v53, 1 }
 0x162   : > { %6637 = vst [vmem:[#allocation39_spill] sm:$0xff] %v4898_v58  ;;  %v1806_v6 = vadd.f32 %v1696_v24, %v1560_v52  ;;  %v1697_v63 = vrot.slane %v1599_v4, 2  ;;  %v3895_v46 = vpop.f32.mrf.mxu0  ;;  %v3967_v50 = vpop.f32.mrf.mxu1  ;;  %v4902_v5 = vmul.f32 %v4850_v61, %v4879_v9  ;;  %v4910_v4 = vld [vmem:[#allocation9 + $0x5] ss:$0 sm:$0xff] }
 0x163   : > { %6636 = vst [vmem:[#allocation38_spill] sm:$0xff] %v4894_v7  ;;  %v1284_v8 = vmul.f32 %v4844_v56, %v1219_v55  ;;  %v1354_v20 = vmul.f32 %v4846_v57, %v1219_v55  ;;  %v1600_v48 = vmul.f32 %v4850_v61, %v1219_v55  ;;  %v1912_v59 = vmul.f32 %v4886_v45, %v1219_v55 }
 0x164   : > { %6638 = vst [vmem:[#allocation40_spill] sm:$0xff] %v4902_v5  ;;  %v1452_v62 = vsel %vm1447_vm1, %v1449_v13, %v1451_v2  ;;  %v1698_v24 = vsel %vm1693_vm2, %v1695_v18, %v1697_v63  ;;  %v893_v52 = vmax.f32 %v691_v51, 0.0  ;;  %v693_v53 = vpop.f32.mrf.mxu0  ;;  %v1843_v46 = vmul.f32 %v4891_v1, %v1219_v55  ;;  %v837_v50 = vpop.f32.mrf.mxu1 }
 0x165   : > { %v1561_v47 = vadd.f32 %v1452_v62, %v1315_v12  ;;  %v1316_v23 = vadd.f32 %v4860_v3, %v1284_v8  ;;  %v1453_v54 = vrot.slane %v1354_v20, 1  ;;  %v1699_v49 = vrot.slane %v1600_v48, 2 }
 0x166   : > { %v2008_v42 = vrot.slane %v1912_v59, 1  ;;  %v1220_v43 = vmul.f32 %v4771_v10, %v893_v52  ;;  %v694_v40 = vadd.f32 %v4836_v44, %v693_v53  ;;  %v3896_v13 = vpop.f32.mrf.mxu0  ;;  %v1875_v2 = vadd.f32 %v1843_v46, %v1806_v6  ;;  %v3968_v18 = vpop.f32.mrf.mxu1 }
 0x167   : > { %v1807_v51 = vadd.f32 %v1698_v24, %v1561_v47  ;;  %v2157_v63 = vmul.f32 %v4910_v4, %v1219_v55  ;;  %v4919_v38 = vadd.f32 %v4836_v44, %v837_v50 }
 0x168   : > { %v894_v12 = vmax.f32 %v694_v40, 0.0  ;;  %v1285_v8 = vmul.f32 %v4844_v56, %v1220_v43  ;;  %v1355_v20 = vmul.f32 %v4846_v57, %v1220_v43  ;;  %v1601_v10 = vmul.f32 %v4850_v61, %v1220_v43  ;;  %v698_v48 = vpop.f32.mrf.mxu0  ;;  %v4924_v59 = vpop.f32.mrf.mxu1 }
 0x169   : > { %v1913_v6 = vmul.f32 %v4886_v45, %v1220_v43  ;;  %v699_v47 = vadd.f32 %v4836_v44, %v698_v48  ;;  %v1844_v55 = vmul.f32 %v4891_v1, %v1220_v43  ;;  %v2158_v62 = vmul.f32 %v4910_v4, %v1220_v43 }
 0x16a   : > { %v1221_v24 = vmul.f32 %v4773_v11, %v894_v12  ;;  %v1317_v40 = vadd.f32 %v4860_v3, %v1285_v8  ;;  %v1454_v52 = vrot.slane %v1355_v20, 1  ;;  %v1700_v53 = vrot.slane %v1601_v10, 2  ;;  %v3899_v46 = vpop.f32.mrf.mxu0  ;;  %v3971_v50 = vpop.f32.mrf.mxu1 }
 0x16b   : > { %v2009_v13 = vrot.slane %v1913_v6, 1  ;;  %v895_v18 = vmax.f32 %v699_v47, 0.0  ;;  %v1876_v41 = vadd.f32 %v1844_v55, %v1807_v51  ;;  %v2253_v39 = vrot.slane %v2157_v63, 2  ;;  %v4945_v55 = vld [vmem:[#allocation9 + $0x6] ss:$0 sm:$0xff] }
 0x16c   : > { %v1356_v36 = vmul.f32 %v4846_v57, %v1221_v24  ;;  %v1455_v48 = vsel %vm1447_vm1, %v1453_v54, %v1454_v52  ;;  %v1602_v7 = vmul.f32 %v4850_v61, %v1221_v24  ;;  %v1701_v43 = vsel %vm1693_vm2, %v1699_v49, %v1700_v53  ;;  %v701_v60 = vpop.f32.mrf.mxu0  ;;  %v4936_v11 = vpop.f32.mrf.mxu1 }
 0x16d   : > { %6639 = vst [vmem:[#allocation41_spill] sm:$0xff] %v4936_v11  ;;  %v1562_v12 = vadd.f32 %v1455_v48, %v1316_v23  ;;  %v1914_v8 = vmul.f32 %v4886_v45, %v1221_v24  ;;  %v2159_v20 = vmul.f32 %v4910_v4, %v1221_v24  ;;  %v4941_v10 = vmul.f32 %v4775_v14, %v895_v18 }
 0x16e   : > { %v1456_v51 = vrot.slane %v1356_v36, 1  ;;  %v1702_v63 = vrot.slane %v1602_v7, 2  ;;  %v702_v6 = vadd.f32 %v4836_v44, %v701_v60  ;;  %v3900_v54 = vpop.f32.mrf.mxu0  ;;  %v2010_v47 = vsel %vm1447_vm1, %v2008_v42, %v2009_v13  ;;  %v3972_v49 = vpop.f32.mrf.mxu1  ;;  %v4951_v7 = vld [vmem:[#allocation9 + $0x7] ss:$0 sm:$0xff] }
 0x16f   : > { %v4947_v46 = vadd.f32 %v1701_v43, %v1562_v12  ;;  %v2011_v23 = vrot.slane %v1914_v8, 1  ;;  %v2256_v50 = vrot.slane %v2159_v20, 2  ;;  %v2120_v48 = vadd.f32 %v2010_v47, %v1875_v2  ;;  %v4957_v12 = vld [vmem:[#allocation9 + $0x8] ss:$0 sm:$0xff] }
 0x170   : > { %v1457_v24 = vsel %vm1447_vm1, %v1454_v52, %v1456_v51  ;;  %v1703_v14 = vsel %vm1693_vm2, %v1700_v53, %v1702_v63  ;;  %v896_v18 = vmax.f32 %v702_v6, 0.0  ;;  %v706_v36 = vpop.f32.mrf.mxu0  ;;  %v2254_v60 = vrot.slane %v2158_v62, 2  ;;  %v4953_v54 = vpop.f32.mrf.mxu1 }
 0x171   : > { %6640 = vst [vmem:[#allocation42_spill] sm:$0xff] %v4953_v54  ;;  %v1563_v42 = vadd.f32 %v1457_v24, %v1317_v40  ;;  %v2012_v11 = vsel %vm1447_vm1, %v2009_v13, %v2011_v23  ;;  %v707_v43 = vadd.f32 %v4836_v44, %v706_v36  ;;  %v2402_v2 = vmul.f32 %v4945_v55, %v4941_v10 }
 0x172   : > { %v4962_v52 = vmul.f32 %v4777_v15, %v896_v18  ;;  %v3903_v53 = vpop.f32.mrf.mxu0  ;;  %v2121_v8 = vadd.f32 %v2012_v11, %v1876_v41  ;;  %v2255_v20 = vsel %vm1693_vm2, %v2253_v39, %v2254_v60  ;;  %v2257_v62 = vsel %vm1693_vm2, %v2254_v60, %v2256_v50  ;;  %v3975_v51 = vpop.f32.mrf.mxu1 }
 0x173   : > { %v1809_v40 = vadd.f32 %v1703_v14, %v1563_v42  ;;  %v897_v63 = vmax.f32 %v707_v43, 0.0  ;;  %v2365_v13 = vadd.f32 %v2255_v20, %v2120_v48  ;;  %v2471_v6 = vmul.f32 %v4951_v7, %v4941_v10 }
 0x174   : > { %v709_v47 = vpop.f32.mrf.mxu0  ;;  %v2366_v49 = vadd.f32 %v2257_v62, %v2121_v8  ;;  %v2403_v23 = vmul.f32 %v4945_v55, %v4962_v52  ;;  %v2472_v15 = vmul.f32 %v4951_v7, %v4962_v52  ;;  %v2716_v39 = vmul.f32 %v4957_v12, %v4941_v10  ;;  %v4974_v41 = vpop.f32.mrf.mxu1 }
 0x175   : > { %6641 = vst [vmem:[#allocation43_spill] sm:$0xff] %v4974_v41  ;;  %v1224_v11 = vmul.f32 %v4781_v16, %v897_v63  ;;  %v710_v50 = vadd.f32 %v4836_v44, %v709_v47  ;;  %v2434_v48 = vadd.f32 %v2402_v2, %v2365_v13  ;;  %v2567_v24 = vrot.slane %v2471_v6, 1 }
 0x176   : > { %v3904_v14 = vpop.f32.mrf.mxu0  ;;  %v2435_v18 = vadd.f32 %v2403_v23, %v2366_v49  ;;  %v2568_v36 = vrot.slane %v2472_v15, 1  ;;  %v2717_v60 = vmul.f32 %v4957_v12, %v4962_v52  ;;  %v2812_v42 = vrot.slane %v2716_v39, 2  ;;  %v3976_v43 = vpop.f32.mrf.mxu1 }
 0x177   : > { %v4981_v53 = vmul.f32 %v4846_v57, %v1224_v11  ;;  %v4984_v8 = vmul.f32 %v4850_v61, %v1224_v11  ;;  %v1917_v16 = vmul.f32 %v4886_v45, %v1224_v11  ;;  %v4988_v20 = vmul.f32 %v4910_v4, %v1224_v11 }
 0x178   : > { %v898_v2 = vmax.f32 %v710_v50, 0.0  ;;  %v714_v62 = vpop.f32.mrf.mxu0  ;;  %v2473_v51 = vmul.f32 %v4951_v7, %v1224_v11  ;;  %v2569_v63 = vsel %vm1447_vm1, %v2567_v24, %v2568_v36  ;;  %v2718_v13 = vmul.f32 %v4957_v12, %v1224_v11  ;;  %v4993_v6 = vpop.f32.mrf.mxu1 }
 0x179   : > { %6642 = vst [vmem:[#allocation44_spill] sm:$0xff] %v4993_v6  ;;  %v2016_v23 = vrot.slane %v1917_v16, 1  ;;  %v715_v50 = vadd.f32 %v4836_v44, %v714_v62  ;;  %v2679_v41 = vadd.f32 %v2569_v63, %v2434_v48  ;;  %v2813_v54 = vrot.slane %v2717_v60, 2 }
 0x17a   : > { %v4999_v39 = vmul.f32 %v4783_v17, %v898_v2  ;;  %v3907_v14 = vpop.f32.mrf.mxu0  ;;  %v2570_v43 = vrot.slane %v2473_v51, 1  ;;  %v3979_v24 = vpop.f32.mrf.mxu1  ;;  %v2815_v11 = vrot.slane %v2718_v13, 2  ;;  %v1845_v6 = vmul.f32 %v4891_v1, %v4941_v10 }
 0x17b   : > { %v1846_v49 = vmul.f32 %v4891_v1, %v4962_v52  ;;  %v899_v16 = vmax.f32 %v715_v50, 0.0  ;;  %v1915_v17 = vmul.f32 %v4886_v45, %v4941_v10  ;;  %v1916_v2 = vmul.f32 %v4886_v45, %v4962_v52 }
 0x17c   : > { %v717_v47 = vpop.f32.mrf.mxu0  ;;  %v2571_v15 = vsel %vm1447_vm1, %v2568_v36, %v2570_v43  ;;  %v5011_v48 = vpop.f32.mrf.mxu1  ;;  %v2814_v51 = vsel %vm1693_vm2, %v2812_v42, %v2813_v54  ;;  %v2816_v63 = vsel %vm1693_vm2, %v2813_v54, %v2815_v11  ;;  %v1877_v14 = vadd.f32 %v1845_v6, %v4947_v46 }
 0x17d   : > { %6643 = vst [vmem:[#allocation45_spill] sm:$0xff] %v5011_v48  ;;  %v718_v60 = vadd.f32 %v4836_v44, %v717_v47  ;;  %v2680_v62 = vadd.f32 %v2571_v15, %v2435_v18  ;;  %v5017_v13 = vmul.f32 %v4785_v19, %v899_v16  ;;  %v2924_v36 = vadd.f32 %v2814_v51, %v2679_v41 }
 0x17e   : > { %v3908_v50 = vpop.f32.mrf.mxu0  ;;  %v1878_v43 = vadd.f32 %v1846_v49, %v1809_v40  ;;  %v3980_v24 = vpop.f32.mrf.mxu1  ;;  %v2013_v58 = vrot.slane %v1915_v17, 1  ;;  %v2014_v48 = vrot.slane %v1916_v2, 1  ;;  %v2160_v18 = vmul.f32 %v4910_v4, %v4941_v10 }
 0x17f   : > { %v900_v9 = vmax.f32 %v718_v60, 0.0  ;;  %v2925_v5 = vadd.f32 %v2816_v63, %v2680_v62  ;;  %v2956_v47 = vmax.f32 %v2924_v36, 0.0  ;;  %v2161_v54 = vmul.f32 %v4910_v4, %v4962_v52 }
 0x180   : > { %v722_v37 = vpop.f32.mrf.mxu0  ;;  %v2404_v19 = vmul.f32 %v4945_v55, %v4999_v39  ;;  %v5026_v41 = vpop.f32.mrf.mxu1  ;;  %v2015_v6 = vsel %vm1447_vm1, %v2013_v58, %v2014_v48  ;;  %v2017_v15 = vsel %vm1447_vm1, %v2014_v48, %v2016_v23  ;;  %v2258_v16 = vrot.slane %v2160_v18, 2 }
 0x181   : > { %v5029_v46 = vmul.f32 %v4787_v21, %v900_v9  ;;  %v723_v40 = vadd.f32 %v4836_v44, %v722_v37  ;;  %v2957_v42 = vmax.f32 %v2925_v5, 0.0  ;;  %v2122_v11 = vadd.f32 %v2015_v6, %v1877_v14 }
 0x182   : > { %v3911_v49 = vpop.f32.mrf.mxu0  ;;  %v2259_v17 = vrot.slane %v2161_v54, 2  ;;  %v3983_v2 = vpop.f32.mrf.mxu1  ;;  %v2123_v62 = vadd.f32 %v2017_v15, %v1878_v43  ;;  %v2405_v6 = vmul.f32 %v4945_v55, %v5017_v13 }
 0x183   : > { %v5036_v60 = vmul.f32 %v4846_v57, %v5029_v46  ;;  %v5040_v21 = vmul.f32 %v4850_v61, %v5029_v46  ;;  %v5044_v37 = vmul.f32 %v4886_v45, %v5029_v46  ;;  %v2476_v9 = vmul.f32 %v4951_v7, %v5029_v46 }
 0x184   : > { %v2721_v58 = vmul.f32 %v4957_v12, %v5029_v46  ;;  %v901_v5 = vmax.f32 %v723_v40, 0.0  ;;  %v725_v23 = vpop.f32.mrf.mxu0  ;;  %v2988_v48 = vpack.c.bf16 %v2957_v42, %v2956_v47  ;;  %v2260_v40 = vsel %vm1693_vm2, %v2258_v16, %v2259_v17 }
 0x185   : > { %v2575_v36 = vrot.slane %v2476_v9, 1  ;;  %v726_v18 = vadd.f32 %v4836_v44, %v725_v23  ;;  %v6644_v47 = vrot.slane %v4988_v20, 2  ;;  %v2367_v42 = vadd.f32 %v2260_v40, %v2122_v11 }
 0x186   : > { %v2820_v14 = vrot.slane %v2721_v58, 2  ;;  %v5054_v24 = vmul.f32 %v4791_v22, %v901_v5  ;;  %4009 = vmatprep.mubr.bf16.mxu1 %v2988_v48  ;;  %v3912_v54 = vpop.f32.mrf.mxu0  ;;  %v2474_v49 = vmul.f32 %v4951_v7, %v4999_v39  ;;  %v2475_v9 = vmul.f32 %v4951_v7, %v5017_v13 }
 0x187   : > { %v2262_v43 = vsel %vm1693_vm2, %v2259_v17, %v6644_v47  ;;  %v902_v15 = vmax.f32 %v726_v18, 0.0  ;;  %v2719_v16 = vmul.f32 %v4957_v12, %v4999_v39  ;;  %v2436_v58 = vadd.f32 %v2404_v19, %v2367_v42 }
 0x188   : > { %v730_v22 = vpop.f32.mrf.mxu0  ;;  %v2368_v2 = vadd.f32 %v2262_v43, %v2123_v62  ;;  %v2572_v17 = vrot.slane %v2474_v49, 1  ;;  %v2720_v11 = vmul.f32 %v4957_v12, %v5017_v13  ;;  %v2573_v18 = vrot.slane %v2475_v9, 1 }
 0x189   : > { %v731_v20 = vadd.f32 %v4836_v44, %v730_v22  ;;  %v5073_v5 = vmul.f32 %v4793_v25, %v902_v15  ;;  %v2817_v62 = vrot.slane %v2719_v16, 2  ;;  %v1286_v47 = vmul.f32 %v4844_v56, %v4941_v10  ;;  %v5085_v15 = vpop.f32.mrf.mxu1 }
 0x18a   : > { %v3915_v23 = vpop.f32.mrf.mxu0  ;;  %v2437_v48 = vadd.f32 %v2405_v6, %v2368_v2  ;;  %v2818_v40 = vrot.slane %v2720_v11, 2  ;;  %v1287_v43 = vmul.f32 %v4844_v56, %v4962_v52  ;;  %v2574_v42 = vsel %vm1447_vm1, %v2572_v17, %v2573_v18 }
 0x18b   : > { %v903_v54 = vmax.f32 %v731_v20, 0.0  ;;  %v2576_v49 = vsel %vm1447_vm1, %v2573_v18, %v2575_v36  ;;  %v1357_v25 = vmul.f32 %v4846_v57, %v4941_v10  ;;  %v1358_v6 = vmul.f32 %v4846_v57, %v4962_v52  ;;  %v3984_v18 = vpop.f32.mrf.mxu1 }
 0x18c   : > { %v733_v19 = vpop.f32.mrf.mxu0  ;;  %v2681_v9 = vadd.f32 %v2574_v42, %v2436_v58  ;;  %v2682_v16 = vadd.f32 %v2576_v49, %v2437_v48  ;;  %v2819_v17 = vsel %vm1693_vm2, %v2817_v62, %v2818_v40  ;;  %v2821_v36 = vsel %vm1693_vm2, %v2818_v40, %v2820_v14 }
 0x18d   : > { %v5088_v22 = vmul.f32 %v4795_v26, %v903_v54  ;;  %v734_v2 = vadd.f32 %v4836_v44, %v733_v19  ;;  %v1318_v11 = vadd.f32 %v4860_v3, %v1286_v47  ;;  %v1319_v23 = vadd.f32 %v4860_v3, %v1287_v43  ;;  %v5105_v40 = vpop.f32.mrf.mxu1 }
 0x18e   : > { %v3916_v20 = vpop.f32.mrf.mxu0  ;;  %v2926_v48 = vadd.f32 %v2819_v17, %v2681_v9  ;;  %v2927_v19 = vadd.f32 %v2821_v36, %v2682_v16  ;;  %v1458_v62 = vrot.slane %v1357_v25, 1  ;;  %v1459_v42 = vrot.slane %v1358_v6, 1 }
 0x18f   : > { %v5097_v63 = vmul.f32 %v4846_v57, %v5088_v22  ;;  %v5101_v26 = vmul.f32 %v4850_v61, %v5088_v22  ;;  %v904_v58 = vmax.f32 %v734_v2, 0.0  ;;  %v1603_v14 = vmul.f32 %v4850_v61, %v4941_v10  ;;  %v3987_v16 = vpop.f32.mrf.mxu1 }
 0x190   : > { %v738_v54 = vpop.f32.mrf.mxu0  ;;  %v2958_v2 = vmax.f32 %v2926_v48, 0.0  ;;  %v2959_v9 = vmax.f32 %v2927_v19, 0.0  ;;  %v1460_v25 = vsel %vm1447_vm1, %v1458_v62, %v1459_v42  ;;  %v6645_v6 = vrot.slane %v4981_v53, 1 }
 0x191   : > { %v5110_v49 = vmul.f32 %v4799_v28, %v904_v58  ;;  %v739_v20 = vadd.f32 %v4836_v44, %v738_v54  ;;  %v1564_v18 = vadd.f32 %v1460_v25, %v1318_v11  ;;  %v1604_v43 = vmul.f32 %v4850_v61, %v4962_v52  ;;  %v5123_v19 = vpop.f32.mrf.mxu1 }
 0x192   : > { %v3919_v17 = vpop.f32.mrf.mxu0  ;;  %v1462_v10 = vsel %vm1447_vm1, %v1459_v42, %v6645_v6  ;;  %v2989_v28 = vpack.c.bf16 %v2959_v9, %v2958_v2  ;;  %v1704_v51 = vrot.slane %v1603_v14, 2  ;;  %v1847_v48 = vmul.f32 %v4891_v1, %v4999_v39  ;;  %6646 = vst [vmem:[#allocation46_spill] sm:$0xff] %v5123_v19 }
 0x193   : > { %v905_v36 = vmax.f32 %v739_v20, 0.0  ;;  %v1565_v47 = vadd.f32 %v1462_v10, %v1319_v23  ;;  %v1848_v54 = vmul.f32 %v4891_v1, %v5017_v13  ;;  %v1705_v23 = vrot.slane %v1604_v43, 2  ;;  %v3988_v2 = vpop.f32.mrf.mxu1 }
 0x194   : > { %v741_v58 = vpop.f32.mrf.mxu0  ;;  %v1918_v52 = vmul.f32 %v4886_v45, %v4999_v39  ;;  %4010 = vmatmul.mubr.bf16.vlgmr.msra.gmra.mxu1 %v2989_v28  ;;  %v1919_v42 = vmul.f32 %v4886_v45, %v5017_v13  ;;  %v2163_v14 = vmul.f32 %v4910_v4, %v4999_v39  ;;  %v2164_v20 = vmul.f32 %v4910_v4, %v5017_v13 }
 0x195   : > { %v5126_v53 = vmul.f32 %v4797_v27, %v905_v36  ;;  %v742_v11 = vadd.f32 %v4836_v44, %v741_v58  ;;  %v2165_v27 = vmul.f32 %v4910_v4, %v5029_v46  ;;  %v1706_v43 = vsel %vm1693_vm2, %v1704_v51, %v1705_v23 }
 0x196   : > { %v3920_v62 = vpop.f32.mrf.mxu0  ;;  %v6647_v17 = vrot.slane %v4984_v8, 2  ;;  %v2018_v6 = vrot.slane %v1918_v52, 1  ;;  %v1810_v16 = vadd.f32 %v1706_v43, %v1564_v18  ;;  %v2019_v28 = vrot.slane %v1919_v42, 1 }
 0x197   : > { %v906_v9 = vmax.f32 %v742_v11, 0.0  ;;  %v2263_v58 = vrot.slane %v2163_v14, 2  ;;  %v2264_v46 = vrot.slane %v2164_v20, 2  ;;  %v2266_v2 = vrot.slane %v2165_v27, 2 }
 0x198   : > { %v1708_v25 = vsel %vm1693_vm2, %v1705_v23, %v6647_v17  ;;  %v746_v10 = vpop.f32.mrf.mxu0  ;;  %v1879_v19 = vadd.f32 %v1847_v48, %v1810_v16  ;;  %v2020_v8 = vsel %vm1447_vm1, %v2018_v6, %v2019_v28  ;;  %v6648_v23 = vrot.slane %v5044_v37, 1 }
 0x199   : > { %v1811_v36 = vadd.f32 %v1708_v25, %v1565_v47  ;;  %v5144_v62 = vmul.f32 %v4803_v30, %v906_v9  ;;  %v747_v50 = vadd.f32 %v4836_v44, %v746_v10  ;;  %v2265_v42 = vsel %vm1693_vm2, %v2263_v58, %v2264_v46 }
 0x19a   : > { %v3923_v11 = vpop.f32.mrf.mxu0  ;;  %v2022_v52 = vsel %vm1447_vm1, %v2019_v28, %v6648_v23  ;;  %v2124_v48 = vadd.f32 %v2020_v8, %v1879_v19  ;;  %v2267_v20 = vsel %vm1693_vm2, %v2264_v46, %v2266_v2  ;;  %v2406_v37 = vmul.f32 %v4945_v55, %v5054_v24 }
 0x19b   : > { %v1880_v51 = vadd.f32 %v1848_v54, %v1811_v36  ;;  %v5153_v47 = vmul.f32 %v4846_v57, %v5144_v62  ;;  %v5157_v30 = vmul.f32 %v4850_v61, %v5144_v62  ;;  %v907_v18 = vmax.f32 %v747_v50, 0.0 }
 0x19c   : > { %v749_v14 = vpop.f32.mrf.mxu0  ;;  %v2369_v50 = vadd.f32 %v2265_v42, %v2124_v48  ;;  %v2407_v19 = vmul.f32 %v4945_v55, %v5073_v5  ;;  %v2477_v6 = vmul.f32 %v4951_v7, %v5054_v24  ;;  %v2478_v36 = vmul.f32 %v4951_v7, %v5073_v5 }
 0x19d   : > { %v2125_v54 = vadd.f32 %v2022_v52, %v1880_v51  ;;  %v5166_v43 = vmul.f32 %v4801_v29, %v907_v18  ;;  %v750_v17 = vadd.f32 %v4836_v44, %v749_v14  ;;  %v2479_v28 = vmul.f32 %v4951_v7, %v5088_v22 }
 0x19e   : > { %v3924_v10 = vpop.f32.mrf.mxu0  ;;  %v2722_v29 = vmul.f32 %v4957_v12, %v5054_v24  ;;  %v2438_v58 = vadd.f32 %v2406_v37, %v2369_v50  ;;  %v2577_v2 = vrot.slane %v2477_v6, 1  ;;  %v2723_v11 = vmul.f32 %v4957_v12, %v5073_v5 }
 0x19f   : > { %v2370_v25 = vadd.f32 %v2267_v20, %v2125_v54  ;;  %v908_v16 = vmax.f32 %v750_v17, 0.0  ;;  %v2578_v23 = vrot.slane %v2478_v36, 1  ;;  %v2580_v52 = vrot.slane %v2479_v28, 1  ;;  %v5194_v36 = vpop.f32.mrf.mxu1 }
 0x1a0   : > { %v754_v51 = vpop.f32.mrf.mxu0  ;;  %v2724_v18 = vmul.f32 %v4957_v12, %v5088_v22  ;;  %v2822_v42 = vrot.slane %v2722_v29, 2  ;;  %v2823_v14 = vrot.slane %v2723_v11, 2  ;;  %v1288_v20 = vmul.f32 %v4844_v56, %v4999_v39 }
 0x1a1   : > { %v2439_v46 = vadd.f32 %v2407_v19, %v2370_v25  ;;  %v5182_v8 = vmul.f32 %v4807_v31, %v908_v16  ;;  %v755_v48 = vadd.f32 %v4836_v44, %v754_v51  ;;  %v2579_v37 = vsel %vm1447_vm1, %v2577_v2, %v2578_v23 }
 0x1a2   : > { %v3927_v54 = vpop.f32.mrf.mxu0  ;;  %v2581_v17 = vsel %vm1447_vm1, %v2578_v23, %v2580_v52  ;;  %v2825_v50 = vrot.slane %v2724_v18, 2  ;;  %v1289_v31 = vmul.f32 %v4844_v56, %v5017_v13  ;;  %v2683_v25 = vadd.f32 %v2579_v37, %v2438_v58  ;;  %v3991_v18 = vpop.f32.mrf.mxu1 }
 0x1a3   : > { %v2684_v19 = vadd.f32 %v2581_v17, %v2439_v46  ;;  %v2824_v6 = vsel %vm1693_vm2, %v2822_v42, %v2823_v14  ;;  %v909_v10 = vmax.f32 %v755_v48, 0.0  ;;  %v1320_v2 = vadd.f32 %v4860_v3, %v1288_v20 }
 0x1a4   : > { %v757_v16 = vpop.f32.mrf.mxu0  ;;  %v2826_v28 = vsel %vm1693_vm2, %v2823_v14, %v2825_v50  ;;  %v1321_v11 = vadd.f32 %v4860_v3, %v1289_v31  ;;  %v2928_v51 = vadd.f32 %v2824_v6, %v2683_v25  ;;  %v1360_v46 = vmul.f32 %v4846_v57, %v4999_v39 }
 0x1a5   : > { %v758_v29 = vadd.f32 %v4836_v44, %v757_v16  ;;  %v2929_v23 = vadd.f32 %v2826_v28, %v2684_v19  ;;  %v5201_v52 = vmul.f32 %v4805_v0, %v909_v10  ;;  %v1361_v14 = vmul.f32 %v4846_v57, %v5017_v13 }
 0x1a6   : > { %v3928_v58 = vpop.f32.mrf.mxu0  ;;  %v1606_v48 = vmul.f32 %v4850_v61, %v4999_v39  ;;  %v1607_v54 = vmul.f32 %v4850_v61, %v5017_v13  ;;  %v2960_v20 = vmax.f32 %v2928_v51, 0.0  ;;  %v1463_v39 = vrot.slane %v1360_v46, 1 }
 0x1a7   : > { %v910_v42 = vmax.f32 %v758_v29, 0.0  ;;  %v2961_v37 = vmax.f32 %v2929_v23, 0.0  ;;  %v5213_v0 = vmul.f32 %v4846_v57, %v5201_v52  ;;  %v5217_v17 = vmul.f32 %v4850_v61, %v5201_v52 }
 0x1a8   : > { %v762_v50 = vpop.f32.mrf.mxu0  ;;  %v1464_v19 = vrot.slane %v1361_v14, 1  ;;  %v1709_v16 = vrot.slane %v1606_v48, 2  ;;  %v6649_v23 = vrot.slane %v5036_v60, 1  ;;  %v1849_v46 = vmul.f32 %v4891_v1, %v5054_v24 }
 0x1a9   : > { %v5220_v31 = vmul.f32 %v4811_v33, %v910_v42  ;;  %v763_v25 = vadd.f32 %v4836_v44, %v762_v50  ;;  %v2990_v6 = vpack.c.bf16 %v2961_v37, %v2960_v20  ;;  %v1710_v33 = vrot.slane %v1607_v54, 2 }
 0x1aa   : > { %v3931_v28 = vpop.f32.mrf.mxu0  ;;  %v1465_v51 = vsel %vm1447_vm1, %v1463_v39, %v1464_v19  ;;  %v1467_v58 = vsel %vm1447_vm1, %v1464_v19, %v6649_v23  ;;  %v1850_v14 = vmul.f32 %v4891_v1, %v5073_v5  ;;  %v6650_v60 = vrot.slane %v5040_v21, 2 }
 0x1ab   : > { %v911_v29 = vmax.f32 %v763_v25, 0.0  ;;  %4013 = vmatprep.mubr.bf16.mxu1 %v2990_v6  ;;  %v1566_v18 = vadd.f32 %v1465_v51, %v1320_v2  ;;  %v1567_v42 = vadd.f32 %v1467_v58, %v1321_v11  ;;  %v1711_v37 = vsel %vm1693_vm2, %v1709_v16, %v1710_v33  ;;  %v5252_v28 = vpop.f32.mrf.mxu1 }
 0x1ac   : > { %v765_v20 = vpop.f32.mrf.mxu0  ;;  %v1713_v50 = vsel %vm1693_vm2, %v1710_v33, %v6650_v60  ;;  %v1921_v2 = vmul.f32 %v4886_v45, %v5054_v24  ;;  %v1922_v25 = vmul.f32 %v4886_v45, %v5073_v5  ;;  %v1923_v39 = vmul.f32 %v4886_v45, %v5088_v22  ;;  %6651 = vst [vmem:[#allocation47_spill] sm:$0xff] %v5252_v28 }
 0x1ad   : > { %v5234_v48 = vmul.f32 %v4809_v32, %v911_v29  ;;  %v1812_v11 = vadd.f32 %v1711_v37, %v1566_v18  ;;  %v1813_v54 = vadd.f32 %v1713_v50, %v1567_v42  ;;  %v2166_v6 = vmul.f32 %v4910_v4, %v5054_v24  ;;  %v3992_v50 = vpop.f32.mrf.mxu1 }
 0x1ae   : > { %v3932_v19 = vpop.f32.mrf.mxu0  ;;  %v2023_v32 = vrot.slane %v1921_v2, 1  ;;  %v2167_v21 = vmul.f32 %v4910_v4, %v5073_v5  ;;  %v2168_v16 = vmul.f32 %v4910_v4, %v5088_v22  ;;  %v2024_v23 = vrot.slane %v1922_v25, 1 }
 0x1af   : > { %v1881_v29 = vadd.f32 %v1849_v46, %v1812_v11  ;;  %v1882_v51 = vadd.f32 %v1850_v14, %v1813_v54  ;;  %v2026_v58 = vrot.slane %v1923_v39, 1  ;;  %v2268_v18 = vrot.slane %v2166_v6, 2 }
 0x1b0   : > { %v770_v33 = vpop.f32.mrf.mxu0  ;;  %v2269_v42 = vrot.slane %v2167_v21, 2  ;;  %v2271_v37 = vrot.slane %v2168_v16, 2  ;;  %v2408_v60 = vmul.f32 %v4945_v55, %v5110_v49  ;;  %v2025_v2 = vsel %vm1447_vm1, %v2023_v32, %v2024_v23 }
 0x1b1   : > { %v2027_v19 = vsel %vm1447_vm1, %v2024_v23, %v2026_v58  ;;  %v2409_v22 = vmul.f32 %v4945_v55, %v5126_v53  ;;  %v2480_v46 = vmul.f32 %v4951_v7, %v5110_v49  ;;  %v2126_v11 = vadd.f32 %v2025_v2, %v1881_v29 }
 0x1b2   : > { %v3935_v14 = vpop.f32.mrf.mxu0  ;;  %v2127_v54 = vadd.f32 %v2027_v19, %v1882_v51  ;;  %v2270_v25 = vsel %vm1693_vm2, %v2268_v18, %v2269_v42  ;;  %v2272_v39 = vsel %vm1693_vm2, %v2269_v42, %v2271_v37  ;;  %v2481_v6 = vmul.f32 %v4951_v7, %v5126_v53 }
 0x1b3   : > { %v2482_v32 = vmul.f32 %v4951_v7, %v5144_v62  ;;  %v2582_v21 = vrot.slane %v2480_v46, 1  ;;  %v2725_v16 = vmul.f32 %v4957_v12, %v5110_v49  ;;  %v2371_v58 = vadd.f32 %v2270_v25, %v2126_v11 }
 0x1b4   : > { %v773_v23 = vpop.f32.mrf.mxu0  ;;  %v2372_v50 = vadd.f32 %v2272_v39, %v2127_v54  ;;  %v2726_v29 = vmul.f32 %v4957_v12, %v5126_v53  ;;  %v2727_v51 = vmul.f32 %v4957_v12, %v5144_v62  ;;  %v2583_v18 = vrot.slane %v2481_v6, 1 }
 0x1b5   : > { %v2585_v42 = vrot.slane %v2482_v32, 1  ;;  %v2827_v37 = vrot.slane %v2725_v16, 2  ;;  %v766_v2 = vadd.f32 %v4836_v44, %v765_v20  ;;  %v2440_v14 = vadd.f32 %v2408_v60, %v2371_v58 }
 0x1b6   : > { %v3936_v19 = vpop.f32.mrf.mxu0  ;;  %v2441_v46 = vadd.f32 %v2409_v22, %v2372_v50  ;;  %v2828_v10 = vrot.slane %v2726_v29, 2  ;;  %v2830_v13 = vrot.slane %v2727_v51, 2  ;;  %v2584_v9 = vsel %vm1447_vm1, %v2582_v21, %v2583_v18 }
 0x1b7   : > { %v2586_v11 = vsel %vm1447_vm1, %v2583_v18, %v2585_v42  ;;  %v912_v54 = vmax.f32 %v766_v2, 0.0  ;;  %v930_v25 = vmax.f32 %v4919_v38, 0.0  ;;  %v2685_v27 = vadd.f32 %v2584_v9, %v2440_v14  ;;  %v6652_v19 = vld [vmem:[#allocation24_spill] sm:$0xff]  ;;  %v6663_v42 = vld [vmem:[#allocation38_spill] sm:$0xff] }
 0x1b8   : > { %v5278_v39 = vpop.f32.mrf.mxu0  ;;  %v2686_v6 = vadd.f32 %v2586_v11, %v2441_v46  ;;  %v2829_v32 = vsel %vm1693_vm2, %v2827_v37, %v2828_v10  ;;  %v2831_v20 = vsel %vm1693_vm2, %v2828_v10, %v2830_v13  ;;  %v771_v22 = vadd.f32 %v4836_v44, %v770_v33  ;;  %v5316_v46 = vld [vmem:[#allocation9 + $0x1] ss:$0 sm:$0xff] }
 0x1b9   : > { %v5283_v60 = vmul.f32 %v4815_v35, %v912_v54  ;;  %v5288_v21 = vadd.f32 %v4836_v44, %v4924_v59  ;;  %v774_v16 = vadd.f32 %v4836_v44, %v773_v23  ;;  %v2930_v50 = vadd.f32 %v2829_v32, %v2685_v27 }
 0x1ba   : > { %v3939_v58 = vpop.f32.mrf.mxu0  ;;  %v2931_v29 = vadd.f32 %v2831_v20, %v2686_v6  ;;  %v1290_v9 = vmul.f32 %v4844_v56, %v5054_v24  ;;  %v1291_v13 = vmul.f32 %v4844_v56, %v5073_v5  ;;  %v913_v59 = vmax.f32 %v771_v22, 0.0  ;;  %v5322_v6 = vld [vmem:[#allocation9 + $0x2] ss:$0 sm:$0xff] }
 0x1bb   : > { %v5297_v35 = vmul.f32 %v4846_v57, %v5283_v60  ;;  %v5301_v10 = vmul.f32 %v4850_v61, %v5283_v60  ;;  %v931_v44 = vmax.f32 %v5288_v21, 0.0  ;;  %v2962_v27 = vmax.f32 %v2930_v50, 0.0 }
 0x1bc   : > { %v5304_v33 = vpop.f32.mrf.mxu0  ;;  %v2963_v23 = vmax.f32 %v2931_v29, 0.0  ;;  %v914_v51 = vmax.f32 %v774_v16, 0.0  ;;  %v1322_v18 = vadd.f32 %v4860_v3, %v1290_v9  ;;  %v5310_v57 = vmul.f32 %v4813_v34, %v913_v59 }
 0x1bd   : > { %v1323_v61 = vadd.f32 %v4860_v3, %v1291_v13  ;;  %v1363_v11 = vmul.f32 %v5316_v46, %v5054_v24  ;;  %v1364_v54 = vmul.f32 %v5316_v46, %v5073_v5  ;;  %v1609_v34 = vmul.f32 %v5322_v6, %v5054_v24 }
 0x1be   : > { %v3940_v37 = vpop.f32.mrf.mxu0  ;;  %v2991_v2 = vpack.c.bf16 %v2963_v23, %v2962_v27  ;;  %v5314_v14 = vmul.f32 %v6652_v19, %v914_v51  ;;  %v1610_v3 = vmul.f32 %v5322_v6, %v5073_v5  ;;  %v1851_v32 = vmul.f32 %v4891_v1, %v5110_v49 }
 0x1bf   : > { %v1852_v20 = vmul.f32 %v4891_v1, %v5126_v53  ;;  %v1468_v16 = vrot.slane %v1363_v11, 1  ;;  %v1469_v58 = vrot.slane %v1364_v54, 1  ;;  %v1924_v50 = vmul.f32 %v4886_v45, %v5110_v49 }
 0x1c0   : > { %v5332_v22 = vpop.f32.mrf.mxu0  ;;  %4014 = vmatmul.mubr.bf16.gmra.mxu1 %v2991_v2  ;;  %v1925_v24 = vmul.f32 %v4886_v45, %v5126_v53  ;;  %v1714_v29 = vrot.slane %v1609_v34, 2  ;;  %v1715_v9 = vrot.slane %v1610_v3, 2  ;;  %v1926_v5 = vmul.f32 %v4886_v45, %v5144_v62 }
 0x1c1   : > { %v2169_v13 = vmul.f32 %v4910_v4, %v5110_v49  ;;  %v1470_v59 = vsel %vm1447_vm1, %v1468_v16, %v1469_v58  ;;  %v6653_v27 = vrot.slane %v5097_v63, 1  ;;  %v2028_v51 = vrot.slane %v1924_v50, 1 }
 0x1c2   : > { %v3943_v1 = vpop.f32.mrf.mxu0  ;;  %v2029_v37 = vrot.slane %v1925_v24, 1  ;;  %v1568_v2 = vadd.f32 %v1470_v59, %v1322_v18  ;;  %v1716_v11 = vsel %vm1693_vm2, %v1714_v29, %v1715_v9  ;;  %v6654_v54 = vrot.slane %v5101_v26, 2 }
 0x1c3   : > { %v1472_v23 = vsel %vm1447_vm1, %v1469_v58, %v6653_v27  ;;  %v2031_v1 = vrot.slane %v1926_v5, 1  ;;  %v2170_v63 = vmul.f32 %v4910_v4, %v5126_v53  ;;  %v2171_v16 = vmul.f32 %v4910_v4, %v5144_v62  ;;  %v1147_v62 = vpop.permute.xlu1 %1146 }
 0x1c4   : > { %v1569_v19 = vadd.f32 %v1472_v23, %v1323_v61  ;;  %v1718_v45 = vsel %vm1693_vm2, %v1715_v9, %v6654_v54  ;;  %v5350_v34 = vpop.f32.mrf.mxu0  ;;  %v2030_v3 = vsel %vm1447_vm1, %v2028_v51, %v2029_v37  ;;  %v1814_v58 = vadd.f32 %v1716_v11, %v1568_v2 }
 0x1c5   : > { %v2273_v61 = vrot.slane %v2169_v13, 2  ;;  %v2410_v50 = vmul.f32 %v4945_v55, %v5166_v43  ;;  %v2032_v24 = vsel %vm1447_vm1, %v2029_v37, %v2031_v1  ;;  %v2274_v29 = vrot.slane %v2170_v63, 2 }
 0x1c6   : > { %v1815_v18 = vadd.f32 %v1718_v45, %v1569_v19  ;;  %v3944_v26 = vpop.f32.mrf.mxu0  ;;  %v2276_v9 = vrot.slane %v2171_v16, 2  ;;  %v2411_v5 = vmul.f32 %v4945_v55, %v5182_v8  ;;  %v1883_v59 = vadd.f32 %v1851_v32, %v1814_v58  ;;  %v1151_v58 = vpop.permute.xlu0 %1150 }
 0x1c7   : > { %v2483_v23 = vmul.f32 %v4951_v7, %v5166_v43  ;;  %v2484_v4 = vmul.f32 %v4951_v7, %v5182_v8  ;;  %v2275_v51 = vsel %vm1693_vm2, %v2273_v61, %v2274_v29  ;;  %v2485_v2 = vmul.f32 %v4951_v7, %v5201_v52  ;;  %v5518_v26 = vld [vmem:[#allocation9 + $0x5] ss:$0 sm:$0xff] }
 0x1c8   : > { %v1884_v27 = vadd.f32 %v1852_v20, %v1815_v18  ;;  %v5366_v13 = vpop.f32.mrf.mxu0  ;;  %v2277_v37 = vsel %vm1693_vm2, %v2274_v29, %v2276_v9  ;;  %v2728_v55 = vmul.f32 %v4957_v12, %v5166_v43  ;;  %v2128_v32 = vadd.f32 %v2030_v3, %v1883_v59 }
 0x1c9   : > { %v2587_v19 = vrot.slane %v2483_v23, 1  ;;  %v2588_v11 = vrot.slane %v2484_v4, 1  ;;  %v2590_v45 = vrot.slane %v2485_v2, 1  ;;  %v2729_v1 = vmul.f32 %v4957_v12, %v5182_v8  ;;  %v5469_v23 = vld [vmem:[#allocation9] ss:$0 sm:$0xff] }
 0x1ca   : > { %v2129_v20 = vadd.f32 %v2032_v24, %v1884_v27  ;;  %v3947_v54 = vpop.f32.mrf.mxu0  ;;  %v2730_v63 = vmul.f32 %v4957_v12, %v5201_v52  ;;  %v2832_v16 = vrot.slane %v2728_v55, 2  ;;  %v2373_v18 = vadd.f32 %v2275_v51, %v2128_v32  ;;  %v6657_v12 = vld [vmem:[#allocation37_spill] sm:$0xff] }
 0x1cb   : > { %v2589_v7 = vsel %vm1447_vm1, %v2587_v19, %v2588_v11  ;;  %v2591_v24 = vsel %vm1447_vm1, %v2588_v11, %v2590_v45  ;;  %v2833_v9 = vrot.slane %v2729_v1, 2  ;;  %v5384_v54 = vld [vmem:[#allocation9 + $0x4] ss:$0 sm:$0xff]  ;;  %v6660_v11 = vld [vmem:[#allocation35_spill] sm:$0xff] }
 0x1cc   : > { %v2374_v61 = vadd.f32 %v2277_v37, %v2129_v20  ;;  %v5380_v3 = vpop.f32.mrf.mxu0  ;;  %v2835_v59 = vrot.slane %v2730_v63, 2  ;;  %v2442_v4 = vadd.f32 %v2410_v50, %v2373_v18  ;;  %v5388_v51 = vmul.f32 %v5384_v54, %v6657_v12  ;;  %v5393_v37 = vld [vmem:[%s6569_s3] ss:$0 sm:$0xff]  ;;  %v6659_v55 = vld [vmem:[#allocation41_spill] sm:$0xff]  ;;  %v1155_v20 = vpop.permute.xlu1 %1154 }
 0x1cd   : > { %v5397_v32 = vadd.f32 %v5393_v37, %v6659_v55  ;;  %v2834_v50 = vsel %vm1693_vm2, %v2832_v16, %v2833_v9  ;;  %v6661_v45 = vmax.f32 %v6660_v11, 0.0  ;;  %v779_v63 = vadd.f32 %v5393_v37, %v5278_v39  ;;  %v5493_v55 = vld [vmem:[#allocation9 + $0x3] ss:$0 sm:$0xff] }
 0x1ce   : > { %v2443_v2 = vadd.f32 %v2411_v5, %v2374_v61  ;;  %6658 = vst [vmem:[#allocation24_spill] sm:$0xff] %v5388_v51  ;;  %v3948_v19 = vpop.f32.mrf.mxu0  ;;  %v2836_v5 = vsel %vm1693_vm2, %v2833_v9, %v2835_v59  ;;  %v2687_v18 = vadd.f32 %v2589_v7, %v2442_v4  ;;  %v6664_v16 = vmax.f32 %v6663_v42, 0.0  ;;  %v6666_v9 = vld [vmem:[#allocation42_spill] sm:$0xff]  ;;  %v1162_v7 = vpop.permute.xlu0 %1161 }
 0x1cf   : > { %v5403_v1 = vmul.f32 %v1147_v62, %v6661_v45  ;;  %v915_v19 = vmax.f32 %v779_v63, 0.0  ;;  %v5417_v62 = vadd.f32 %v5393_v37, %v6666_v9  ;;  %v5421_v39 = vmul.f32 %v1155_v20, %v930_v25  ;;  %v6675_v9 = vld [vmem:[#allocation26_spill] sm:$0xff] }
 0x1d0   : > { %v2688_v61 = vadd.f32 %v2591_v24, %v2443_v2  ;;  %v5409_v29 = vpop.f32.mrf.mxu0  ;;  %v5413_v56 = vmul.f32 %v1151_v58, %v6664_v16  ;;  %v2932_v24 = vadd.f32 %v2834_v50, %v2687_v18  ;;  %v782_v4 = vadd.f32 %v5393_v37, %v5304_v33  ;;  %v6669_v58 = vld [vmem:[#allocation23_spill] sm:$0xff] }
 0x1d1   : > { %6662 = vst [vmem:[#allocation41_spill] sm:$0xff] %v5403_v1  ;;  %6667 = vst [vmem:[#allocation38_spill] sm:$0xff] %v5421_v39  ;;  %v5427_v2 = vmul.f32 %v1162_v7, %v931_v44  ;;  %v5430_v11 = vmul.f32 %v6669_v58, %v915_v19  ;;  %v5435_v38 = vmul.f32 %v5316_v46, %v5421_v39 }
 0x1d2   : > { %6665 = vst [vmem:[#allocation35_spill] sm:$0xff] %v5413_v56  ;;  %v2933_v59 = vadd.f32 %v2836_v5, %v2688_v61  ;;  %v3951_v42 = vpop.f32.mrf.mxu0  ;;  %v5439_v25 = vmul.f32 %v5322_v6, %v5421_v39  ;;  %v2964_v20 = vmax.f32 %v2932_v24, 0.0  ;;  %v5443_v21 = vmul.f32 %v5384_v54, %v5421_v39  ;;  %v6676_v24 = vld [vmem:[#allocation43_spill] sm:$0xff]  ;;  %v5485_v61 = vld [vmem:[%s6571_s5] ss:$0 sm:$0xff] }
 0x1d3   : > { %6668 = vst [vmem:[#allocation42_spill] sm:$0xff] %v5427_v2  ;;  %6670 = vst [vmem:[#allocation23_spill] sm:$0xff] %v5435_v38  ;;  %v916_v44 = vmax.f32 %v782_v4, 0.0  ;;  %v5449_v5 = vmul.f32 %v5316_v46, %v5430_v11  ;;  %v5453_v63 = vmul.f32 %v5322_v6, %v5430_v11  ;;  %v787_v18 = vadd.f32 %v5393_v37, %v5332_v22  ;;  %v6677_v38 = vld [vmem:[#allocation25_spill] sm:$0xff] }
 0x1d4   : > { %6671 = vst [vmem:[#allocation48_spill] sm:$0xff] %v5439_v25  ;;  %v2965_v33 = vmax.f32 %v2933_v59, 0.0  ;;  %6672 = vst [vmem:[#allocation49_spill] sm:$0xff] %v5443_v21  ;;  %v5445_v50 = vpop.f32.mrf.mxu0  ;;  %v5463_v59 = vadd.f32 %v5393_v37, %v6676_v24  ;;  %v1367_v24 = vmul.f32 %v5316_v46, %v5126_v53  ;;  %v1612_v16 = vmul.f32 %v5322_v6, %v5110_v49 }
 0x1d5   : > { %6673 = vst [vmem:[#allocation50_spill] sm:$0xff] %v5449_v5  ;;  %6674 = vst [vmem:[#allocation51_spill] sm:$0xff] %v5453_v63  ;;  %v5459_v7 = vmul.f32 %v6675_v9, %v916_v44  ;;  %v1293_v44 = vmul.f32 %v5469_v23, %v5126_v53  ;;  %v1366_v9 = vmul.f32 %v5316_v46, %v5110_v49  ;;  %v917_v22 = vmax.f32 %v787_v18, 0.0 }
 0x1d6   : > { %v2992_v19 = vpack.c.bf16 %v2965_v33, %v2964_v20  ;;  %v3952_v4 = vpop.f32.mrf.mxu0  ;;  %v1292_v20 = vmul.f32 %v5469_v23, %v5110_v49  ;;  %v1613_v58 = vmul.f32 %v5322_v6, %v5126_v53  ;;  %v1474_v45 = vrot.slane %v1367_v24, 1 }
 0x1d7   : > { %v1325_v42 = vadd.f32 %v5485_v61, %v1293_v44  ;;  %v1473_v33 = vrot.slane %v1366_v9, 1  ;;  %v1853_v18 = vmul.f32 %v5493_v55, %v5166_v43  ;;  %v5498_v2 = vmul.f32 %v6677_v38, %v917_v22 }
 0x1d8   : > { %4017 = vmatprep.mubr.bf16.mxu1 %v2992_v19  ;;  %v5480_v4 = vpop.f32.mrf.mxu0  ;;  %v1324_v19 = vadd.f32 %v5485_v61, %v1292_v20  ;;  %v1719_v20 = vrot.slane %v1612_v16, 2  ;;  %v1720_v21 = vrot.slane %v1613_v58, 2  ;;  %v1854_v49 = vmul.f32 %v5493_v55, %v5182_v8 }
 0x1d9   : > { %v1475_v53 = vsel %vm1447_vm1, %v1473_v33, %v1474_v45  ;;  %v6678_v44 = vrot.slane %v5153_v47, 1  ;;  %v1927_v24 = vmul.f32 %v5384_v54, %v5166_v43  ;;  %v6680_v22 = vrot.slane %v5157_v30, 2 }
 0x1da   : > { %v3955_v25 = vpop.f32.mrf.mxu0  ;;  %v1570_v38 = vadd.f32 %v1475_v53, %v1324_v19  ;;  %v1721_v58 = vsel %vm1693_vm2, %v1719_v20, %v1720_v21  ;;  %v1929_v47 = vmul.f32 %v5384_v54, %v5201_v52  ;;  %v2172_v39 = vmul.f32 %v5518_v26, %v5166_v43 }
 0x1db   : > { %v1477_v9 = vsel %vm1447_vm1, %v1474_v45, %v6678_v44  ;;  %v1928_v25 = vmul.f32 %v5384_v54, %v5182_v8  ;;  %v1723_v33 = vsel %vm1693_vm2, %v1720_v21, %v6680_v22  ;;  %v2033_v45 = vrot.slane %v1927_v24, 1 }
 0x1dc   : > { %v5510_v27 = vpop.f32.mrf.mxu0  ;;  %v1571_v16 = vadd.f32 %v1477_v9, %v1325_v42  ;;  %v1816_v56 = vadd.f32 %v1721_v58, %v1570_v38  ;;  %v2173_v42 = vmul.f32 %v5518_v26, %v5182_v8  ;;  %v2174_v30 = vmul.f32 %v5518_v26, %v5201_v52  ;;  %v5527_v9 = vld [vmem:[#allocation9 + $0x6] ss:$0 sm:$0xff]  ;;  %v5534_v52 = vld [vmem:[#allocation9 + $0x7] ss:$0 sm:$0xff] }
 0x1dd   : > { %6679 = vst [vmem:[#allocation26_spill] sm:$0xff] %v5510_v27  ;;  %v2034_v44 = vrot.slane %v1928_v25, 1  ;;  %v2036_v20 = vrot.slane %v1929_v47, 1  ;;  %v2278_v53 = vrot.slane %v2172_v39, 2  ;;  %v2412_v24 = vmul.f32 %v5527_v9, %v5220_v31  ;;  %v6683_v27 = vld [vmem:[#allocation44_spill] sm:$0xff] }
 0x1de   : > { %v3956_v51 = vpop.f32.mrf.mxu0  ;;  %v1817_v19 = vadd.f32 %v1723_v33, %v1571_v16  ;;  %v1885_v25 = vadd.f32 %v1853_v18, %v1816_v56  ;;  %v2281_v38 = vrot.slane %v2174_v30, 2  ;;  %v1166_v16 = vpop.permute.xlu1 %1165  ;;  %v2413_v33 = vmul.f32 %v5527_v9, %v5234_v48 }
 0x1df   : > { %v2035_v21 = vsel %vm1447_vm1, %v2033_v45, %v2034_v44  ;;  %v2279_v51 = vrot.slane %v2173_v42, 2  ;;  %v2037_v58 = vsel %vm1447_vm1, %v2034_v44, %v2036_v20  ;;  %v2486_v39 = vmul.f32 %v5534_v52, %v5220_v31  ;;  %v5544_v42 = vld [vmem:[#allocation9 + $0x8] ss:$0 sm:$0xff] }
 0x1e0   : > { %v1886_v22 = vadd.f32 %v1854_v49, %v1817_v19  ;;  %v2487_v47 = vmul.f32 %v5534_v52, %v5234_v48  ;;  %v2130_v45 = vadd.f32 %v2035_v21, %v1885_v25  ;;  %v2488_v49 = vmul.f32 %v5534_v52, %v5283_v60  ;;  %v1170_v25 = vpop.permute.xlu0 %1169 }
 0x1e1   : > { %v2280_v56 = vsel %vm1693_vm2, %v2278_v53, %v2279_v51  ;;  %v2282_v18 = vsel %vm1693_vm2, %v2279_v51, %v2281_v38  ;;  %v2592_v44 = vrot.slane %v2486_v39, 1  ;;  %v2731_v30 = vmul.f32 %v5544_v42, %v5220_v31 }
 0x1e2   : > { %v2131_v1 = vadd.f32 %v2037_v58, %v1886_v22  ;;  %v2593_v19 = vrot.slane %v2487_v47, 1  ;;  %v2375_v20 = vadd.f32 %v2280_v56, %v2130_v45  ;;  %v2732_v21 = vmul.f32 %v5544_v42, %v5234_v48 }
 0x1e3   : > { %v2733_v53 = vmul.f32 %v5544_v42, %v5283_v60  ;;  %v2595_v51 = vrot.slane %v2488_v49, 1  ;;  %v2837_v38 = vrot.slane %v2731_v30, 2  ;;  %v6681_v58 = vmax.f32 %v5397_v32, 0.0 }
 0x1e4   : > { %v2376_v12 = vadd.f32 %v2282_v18, %v2131_v1  ;;  %v2594_v22 = vsel %vm1447_vm1, %v2592_v44, %v2593_v19  ;;  %v2444_v47 = vadd.f32 %v2412_v24, %v2375_v20  ;;  %v2838_v5 = vrot.slane %v2732_v21, 2  ;;  %v1177_v1 = vpop.permute.xlu1 %1176 }
 0x1e5   : > { %v5555_v39 = vmul.f32 %v1166_v16, %v6681_v58  ;;  %v2840_v45 = vrot.slane %v2733_v53, 2  ;;  %v2596_v56 = vsel %vm1447_vm1, %v2593_v19, %v2595_v51  ;;  %v6682_v18 = vmax.f32 %v5417_v62, 0.0  ;;  %v6688_v51 = vld [vmem:[#allocation45_spill] sm:$0xff] }
 0x1e6   : > { %v2445_v63 = vadd.f32 %v2413_v33, %v2376_v12  ;;  %v859_v44 = vadd.f32 %v5393_v37, %v6683_v27  ;;  %v790_v49 = vadd.f32 %v5393_v37, %v5350_v34  ;;  %v2689_v32 = vadd.f32 %v2594_v22, %v2444_v47 }
 0x1e7   : > { %v5560_v28 = vmul.f32 %v1170_v25, %v6682_v18  ;;  %v2839_v24 = vsel %vm1693_vm2, %v2837_v38, %v2838_v5  ;;  %v2841_v12 = vsel %vm1693_vm2, %v2838_v5, %v2840_v45  ;;  %v6687_v20 = vmax.f32 %v5463_v59, 0.0  ;;  %v1181_v5 = vpop.permute.xlu0 %1180  ;;  %v6689_v45 = vld [vmem:[#allocation28_spill] sm:$0xff] }
 0x1e8   : > { %v2690_v16 = vadd.f32 %v2596_v56, %v2445_v63  ;;  %v935_v19 = vmax.f32 %v859_v44, 0.0  ;;  %v2934_v34 = vadd.f32 %v2839_v24, %v2689_v32  ;;  %v918_v63 = vmax.f32 %v790_v49, 0.0 }
 0x1e9   : > { %v5570_v33 = vmul.f32 %v5316_v46, %v5560_v28  ;;  %v5574_v62 = vmul.f32 %v5322_v6, %v5560_v28  ;;  %v5578_v27 = vmul.f32 %v5384_v54, %v5560_v28  ;;  %v5582_v21 = vmul.f32 %v1177_v1, %v6687_v20  ;;  %v1185_v1 = vpop.permute.xlu1 %1184  ;;  %v6691_v20 = vld [vmem:[#allocation27_spill] sm:$0xff] }
 0x1ea   : > { %v2935_v30 = vadd.f32 %v2841_v12, %v2690_v16  ;;  %v862_v38 = vadd.f32 %v5393_v37, %v6688_v51  ;;  %v2966_v58 = vmax.f32 %v2934_v34, 0.0  ;;  %v5590_v56 = vmul.f32 %v6689_v45, %v918_v63  ;;  %v6693_v45 = vld [vmem:[#allocation30_spill] sm:$0xff] }
 0x1eb   : > { %6684 = vst [vmem:[#allocation43_spill] sm:$0xff] %v5570_v33  ;;  %6685 = vst [vmem:[#allocation25_spill] sm:$0xff] %v5574_v62  ;;  %v795_v59 = vadd.f32 %v5393_v37, %v5366_v13  ;;  %v5594_v44 = vmul.f32 %v1181_v5, %v935_v19  ;;  %v5598_v49 = vadd.f32 %v5393_v37, %v5026_v41  ;;  %v6695_v33 = vrot.slane %v5217_v17, 2 }
 0x1ec   : > { %6686 = vst [vmem:[#allocation44_spill] sm:$0xff] %v5578_v27  ;;  %v2967_v47 = vmax.f32 %v2935_v30, 0.0  ;;  %v936_v18 = vmax.f32 %v862_v38, 0.0  ;;  %v798_v32 = vadd.f32 %v5393_v37, %v5380_v3  ;;  %v5604_v24 = vmul.f32 %v5316_v46, %v5590_v56 }
 0x1ed   : > { %v5608_v12 = vmul.f32 %v5322_v6, %v5590_v56  ;;  %v919_v13 = vmax.f32 %v795_v59, 0.0  ;;  %v1294_v41 = vmul.f32 %v5469_v23, %v5166_v43  ;;  %v1295_v51 = vmul.f32 %v5469_v23, %v5182_v8 }
 0x1ee   : > { %v2993_v16 = vpack.c.bf16 %v2967_v47, %v2966_v58  ;;  %v5610_v34 = vmul.f32 %v1185_v1, %v936_v18  ;;  %v920_v30 = vmax.f32 %v798_v32, 0.0  ;;  %v1369_v32 = vmul.f32 %v5316_v46, %v5166_v43 }
 0x1ef   : > { %v5618_v5 = vmul.f32 %v6691_v20, %v919_v13  ;;  %v1326_v1 = vadd.f32 %v5485_v61, %v1294_v41  ;;  %v1327_v18 = vadd.f32 %v5485_v61, %v1295_v51  ;;  %v1616_v41 = vmul.f32 %v5322_v6, %v5182_v8 }
 0x1f0   : > { %6690 = vst [vmem:[#allocation45_spill] sm:$0xff] %v5610_v34  ;;  %4018 = vmatmul.mubr.bf16.gmra.mxu1 %v2993_v16  ;;  %v5624_v38 = vmul.f32 %v5316_v46, %v5610_v34  ;;  %v5628_v58 = vmul.f32 %v5322_v6, %v5610_v34  ;;  %v5632_v47 = vmul.f32 %v5384_v54, %v5610_v34 }
 0x1f1   : > { %v5635_v59 = vmul.f32 %v6693_v45, %v920_v30  ;;  %v1370_v16 = vmul.f32 %v5316_v46, %v5182_v8  ;;  %v1615_v30 = vmul.f32 %v5322_v6, %v5166_v43  ;;  %v1478_v45 = vrot.slane %v1369_v32, 1 }
 0x1f2   : > { %6692 = vst [vmem:[#allocation28_spill] sm:$0xff] %v5632_v47  ;;  %v1855_v51 = vmul.f32 %v5493_v55, %v5220_v31  ;;  %v1856_v63 = vmul.f32 %v5493_v55, %v5234_v48  ;;  %v1930_v3 = vmul.f32 %v5384_v54, %v5220_v31  ;;  %v1931_v25 = vmul.f32 %v5384_v54, %v5234_v48 }
 0x1f3   : > { %v1479_v53 = vrot.slane %v1370_v16, 1  ;;  %v1724_v22 = vrot.slane %v1615_v30, 2  ;;  %v6694_v32 = vrot.slane %v5213_v0, 1  ;;  %v1725_v8 = vrot.slane %v1616_v41, 2 }
 0x1f4   : > { %v1932_v20 = vmul.f32 %v5384_v54, %v5283_v60  ;;  %v2038_v19 = vrot.slane %v1930_v3, 1  ;;  %v2039_v47 = vrot.slane %v1931_v25, 1  ;;  %v2175_v0 = vmul.f32 %v5518_v26, %v5220_v31 }
 0x1f5   : > { %v1480_v43 = vsel %vm1447_vm1, %v1478_v45, %v1479_v53  ;;  %v1482_v16 = vsel %vm1447_vm1, %v1479_v53, %v6694_v32  ;;  %v1726_v62 = vsel %vm1693_vm2, %v1724_v22, %v1725_v8  ;;  %v1728_v34 = vsel %vm1693_vm2, %v1725_v8, %v6695_v33 }
 0x1f6   : > { %v1572_v30 = vadd.f32 %v1480_v43, %v1326_v1  ;;  %v1573_v13 = vadd.f32 %v1482_v16, %v1327_v18  ;;  %v2041_v27 = vrot.slane %v1932_v20, 1  ;;  %v2040_v41 = vsel %vm1447_vm1, %v2038_v19, %v2039_v47 }
 0x1f7   : > { %v2176_v1 = vmul.f32 %v5518_v26, %v5234_v48  ;;  %v2177_v25 = vmul.f32 %v5518_v26, %v5283_v60  ;;  %v2283_v22 = vrot.slane %v2175_v0, 2  ;;  %v2414_v17 = vmul.f32 %v5527_v9, %v5310_v57 }
 0x1f8   : > { %v1818_v45 = vadd.f32 %v1726_v62, %v1572_v30  ;;  %v1819_v53 = vadd.f32 %v1728_v34, %v1573_v13  ;;  %v2042_v3 = vsel %vm1447_vm1, %v2039_v47, %v2041_v27  ;;  %v2415_v62 = vmul.f32 %v5527_v9, %v5314_v14 }
 0x1f9   : > { %v2284_v20 = vrot.slane %v2176_v1, 2  ;;  %v2286_v34 = vrot.slane %v2177_v25, 2  ;;  %v2489_v19 = vmul.f32 %v5534_v52, %v5310_v57  ;;  %v2490_v27 = vmul.f32 %v5534_v52, %v5314_v14 }
 0x1fa   : > { %v1887_v33 = vadd.f32 %v1855_v51, %v1818_v45  ;;  %v1888_v18 = vadd.f32 %v1856_v63, %v1819_v53  ;;  %v2491_v60 = vmul.f32 %v5534_v52, %v5430_v11  ;;  %v2734_v63 = vmul.f32 %v5544_v42, %v5310_v57 }
 0x1fb   : > { %v2285_v43 = vsel %vm1693_vm2, %v2283_v22, %v2284_v20  ;;  %v2287_v51 = vsel %vm1693_vm2, %v2284_v20, %v2286_v34  ;;  %v2597_v32 = vrot.slane %v2489_v19, 1  ;;  %v2598_v16 = vrot.slane %v2490_v27, 1 }
 0x1fc   : > { %v2132_v47 = vadd.f32 %v2040_v41, %v1887_v33  ;;  %v2133_v13 = vadd.f32 %v2042_v3, %v1888_v18  ;;  %v2600_v8 = vrot.slane %v2491_v60, 1  ;;  %v2735_v45 = vmul.f32 %v5544_v42, %v5314_v14 }
 0x1fd   : > { %v2736_v53 = vmul.f32 %v5544_v42, %v5430_v11  ;;  %v2599_v41 = vsel %vm1447_vm1, %v2597_v32, %v2598_v16  ;;  %v2842_v3 = vrot.slane %v2734_v63, 2  ;;  %v5698_v25 = vadd.f32 %v5393_v37, %v5085_v15 }
 0x1fe   : > { %v2377_v30 = vadd.f32 %v2285_v43, %v2132_v47  ;;  %v2378_v0 = vadd.f32 %v2287_v51, %v2133_v13  ;;  %v2601_v1 = vsel %vm1447_vm1, %v2598_v16, %v2600_v8  ;;  %v2843_v18 = vrot.slane %v2735_v45, 2  ;;  %v6697_v8 = vld [vmem:[#allocation46_spill] sm:$0xff] }
 0x1ff   : > { %v2845_v20 = vrot.slane %v2736_v53, 2  ;;  %v938_v34 = vmax.f32 %v5698_v25, 0.0  ;;  %v803_v19 = vadd.f32 %v5393_v37, %v5409_v29  ;;  %v5705_v27 = vadd.f32 %v5393_v37, %v5105_v40  ;;  %v6699_v53 = vld [vmem:[#allocation32_spill] sm:$0xff] }
 0x200   : > { %v2446_v22 = vadd.f32 %v2414_v17, %v2377_v30  ;;  %v2447_v33 = vadd.f32 %v2415_v62, %v2378_v0  ;;  %v806_v60 = vadd.f32 %v5393_v37, %v5445_v50  ;;  %v2844_v15 = vsel %vm1693_vm2, %v2842_v3, %v2843_v18  ;;  %v1192_v62 = vpop.permute.xlu0 %1191  ;;  %v6698_v0 = vld [vmem:[#allocation29_spill] sm:$0xff] }
 0x201   : > { %v2846_v17 = vsel %vm1693_vm2, %v2843_v18, %v2845_v20  ;;  %v921_v43 = vmax.f32 %v803_v19, 0.0  ;;  %v6696_v29 = vmax.f32 %v5598_v49, 0.0  ;;  %v5718_v50 = vadd.f32 %v5393_v37, %v6697_v8 }
 0x202   : > { %v2691_v47 = vadd.f32 %v2599_v41, %v2446_v22  ;;  %v2692_v13 = vadd.f32 %v2601_v1, %v2447_v33  ;;  %v922_v51 = vmax.f32 %v806_v60, 0.0  ;;  %v811_v30 = vadd.f32 %v5393_v37, %v5480_v4 }
 0x203   : > { %v5714_v32 = vmul.f32 %v1192_v62, %v6696_v29  ;;  %v5723_v45 = vmul.f32 %v6698_v0, %v921_v43  ;;  %v1296_v49 = vmul.f32 %v5469_v23, %v5220_v31  ;;  %v1297_v1 = vmul.f32 %v5469_v23, %v5234_v48 }
 0x204   : > { %v2936_v40 = vadd.f32 %v2844_v15, %v2691_v47  ;;  %v2937_v16 = vadd.f32 %v2846_v17, %v2692_v13  ;;  %v5726_v41 = vmul.f32 %v6699_v53, %v922_v51  ;;  %v923_v18 = vmax.f32 %v811_v30, 0.0  ;;  %v6700_v13 = vld [vmem:[#allocation31_spill] sm:$0xff] }
 0x205   : > { %v5735_v4 = vmul.f32 %v5316_v46, %v5723_v45  ;;  %v5739_v20 = vmul.f32 %v5322_v6, %v5723_v45  ;;  %v1328_v19 = vadd.f32 %v5485_v61, %v1296_v49  ;;  %v1329_v60 = vadd.f32 %v5485_v61, %v1297_v1 }
 0x206   : > { %v2968_v3 = vmax.f32 %v2936_v40, 0.0  ;;  %v2969_v22 = vmax.f32 %v2937_v16, 0.0  ;;  %v5744_v15 = vmul.f32 %v6700_v13, %v923_v18  ;;  %v1372_v17 = vmul.f32 %v5316_v46, %v5220_v31 }
 0x207   : > { %v1373_v62 = vmul.f32 %v5316_v46, %v5234_v48  ;;  %v1618_v29 = vmul.f32 %v5322_v6, %v5220_v31  ;;  %v1619_v40 = vmul.f32 %v5322_v6, %v5234_v48  ;;  %v1857_v30 = vmul.f32 %v5493_v55, %v5310_v57 }
 0x208   : > { %v2994_v47 = vpack.c.bf16 %v2969_v22, %v2968_v3  ;;  %v1483_v16 = vrot.slane %v1372_v17, 1  ;;  %v1858_v0 = vmul.f32 %v5493_v55, %v5314_v14  ;;  %v1933_v1 = vmul.f32 %v5384_v54, %v5310_v57 }
 0x209   : > { %v1484_v8 = vrot.slane %v1373_v62, 1  ;;  %v1729_v53 = vrot.slane %v1618_v29, 2  ;;  %v1730_v49 = vrot.slane %v1619_v40, 2  ;;  %v1934_v31 = vmul.f32 %v5384_v54, %v5314_v14 }
 0x20a   : > { %4021 = vmatprep.mubr.bf16.mxu1 %v2994_v47  ;;  %v6701_v48 = vrot.slane %v5297_v35, 1  ;;  %v1935_v18 = vmul.f32 %v5384_v54, %v5430_v11  ;;  %v2178_v47 = vmul.f32 %v5518_v26, %v5310_v57  ;;  %v6702_v29 = vrot.slane %v5301_v10, 2 }
 0x20b   : > { %v1485_v3 = vsel %vm1447_vm1, %v1483_v16, %v1484_v8  ;;  %v1731_v62 = vsel %vm1693_vm2, %v1729_v53, %v1730_v49  ;;  %v2043_v51 = vrot.slane %v1933_v1, 1  ;;  %v2044_v16 = vrot.slane %v1934_v31, 1 }
 0x20c   : > { %v1487_v22 = vsel %vm1447_vm1, %v1484_v8, %v6701_v48  ;;  %v1574_v13 = vadd.f32 %v1485_v3, %v1328_v19  ;;  %v1733_v40 = vsel %vm1693_vm2, %v1730_v49, %v6702_v29  ;;  %v2046_v43 = vrot.slane %v1935_v18, 1  ;;  %v1200_v29 = vpop.permute.xlu0 %1199 }
 0x20d   : > { %v1575_v17 = vadd.f32 %v1487_v22, %v1329_v60  ;;  %v2179_v35 = vmul.f32 %v5518_v26, %v5314_v14  ;;  %v2180_v33 = vmul.f32 %v5518_v26, %v5430_v11  ;;  %v2288_v63 = vrot.slane %v2178_v47, 2  ;;  %v1196_v22 = vpop.permute.xlu1 %1195 }
 0x20e   : > { %v1820_v8 = vadd.f32 %v1731_v62, %v1574_v13  ;;  %v2045_v19 = vsel %vm1447_vm1, %v2043_v51, %v2044_v16  ;;  %v2047_v60 = vsel %vm1447_vm1, %v2044_v16, %v2046_v43  ;;  %v2416_v10 = vmul.f32 %v5527_v9, %v5459_v7 }
 0x20f   : > { %v1821_v48 = vadd.f32 %v1733_v40, %v1575_v17  ;;  %v2289_v53 = vrot.slane %v2179_v35, 2  ;;  %v2291_v31 = vrot.slane %v2180_v33, 2  ;;  %v2417_v3 = vmul.f32 %v5527_v9, %v5498_v2 }
 0x210   : > { %v1889_v49 = vadd.f32 %v1857_v30, %v1820_v8  ;;  %v2492_v11 = vmul.f32 %v5534_v52, %v5459_v7  ;;  %v2493_v51 = vmul.f32 %v5534_v52, %v5498_v2  ;;  %v2494_v43 = vmul.f32 %v5534_v52, %v5590_v56 }
 0x211   : > { %v1890_v1 = vadd.f32 %v1858_v0, %v1821_v48  ;;  %v2290_v18 = vsel %vm1693_vm2, %v2288_v63, %v2289_v53  ;;  %v2292_v30 = vsel %vm1693_vm2, %v2289_v53, %v2291_v31  ;;  %v2737_v33 = vmul.f32 %v5544_v42, %v5459_v7 }
 0x212   : > { %v2134_v47 = vadd.f32 %v2045_v19, %v1889_v49  ;;  %v2602_v0 = vrot.slane %v2492_v11, 1  ;;  %v2603_v17 = vrot.slane %v2493_v51, 1  ;;  %v2605_v62 = vrot.slane %v2494_v43, 1  ;;  %v1207_v51 = vpop.permute.xlu1 %1206 }
 0x213   : > { %v2135_v13 = vadd.f32 %v2047_v60, %v1890_v1  ;;  %v2738_v63 = vmul.f32 %v5544_v42, %v5498_v2  ;;  %v2739_v35 = vmul.f32 %v5544_v42, %v5590_v56  ;;  %v2847_v8 = vrot.slane %v2737_v33, 2 }
 0x214   : > { %v2379_v40 = vadd.f32 %v2290_v18, %v2134_v47  ;;  %v2604_v48 = vsel %vm1447_vm1, %v2602_v0, %v2603_v17  ;;  %v2606_v19 = vsel %vm1447_vm1, %v2603_v17, %v2605_v62  ;;  %v5804_v53 = vmul.f32 %v1196_v22, %v938_v34 }
 0x215   : > { %v2380_v16 = vadd.f32 %v2292_v30, %v2135_v13  ;;  %v2848_v60 = vrot.slane %v2738_v63, 2  ;;  %v2850_v31 = vrot.slane %v2739_v35, 2  ;;  %v6703_v11 = vmax.f32 %v5705_v27, 0.0  ;;  %v6704_v13 = vld [vmem:[#allocation26_spill] sm:$0xff] }
 0x216   : > { %v2448_v49 = vadd.f32 %v2416_v10, %v2379_v40  ;;  %v883_v47 = vadd.f32 %v5393_v37, %v5194_v36  ;;  %v814_v30 = vadd.f32 %v5393_v37, %v6704_v13  ;;  %v6705_v33 = vmax.f32 %v5718_v50, 0.0 }
 0x217   : > { %v2449_v1 = vadd.f32 %v2417_v3, %v2380_v16  ;;  %v1266_v18 = vmul.f32 %v1200_v29, %v6703_v11  ;;  %v2849_v43 = vsel %vm1693_vm2, %v2847_v8, %v2848_v60  ;;  %v2851_v10 = vsel %vm1693_vm2, %v2848_v60, %v2850_v31  ;;  %v6708_v60 = vld [vmem:[#allocation33_spill] sm:$0xff] }
 0x218   : > { %v1267_v25 = vmul.f32 %v1207_v51, %v6705_v33  ;;  %v2693_v34 = vadd.f32 %v2604_v48, %v2448_v49  ;;  %v941_v17 = vmax.f32 %v883_v47, 0.0  ;;  %v924_v29 = vmax.f32 %v814_v30, 0.0 }
 0x219   : > { %v2694_v22 = vadd.f32 %v2606_v19, %v2449_v1  ;;  %v5817_v3 = vmul.f32 %v5384_v54, %v1266_v18  ;;  %v5820_v27 = vmul.f32 %v5518_v26, %v1266_v18  ;;  %v5823_v0 = vmul.f32 %v5534_v52, %v1266_v18 }
 0x21a   : > { %v5826_v36 = vmul.f32 %v5544_v42, %v1266_v18  ;;  %v2938_v62 = vadd.f32 %v2849_v43, %v2693_v34  ;;  %v1312_v8 = vmul.f32 %v5469_v23, %v5582_v21  ;;  %v5835_v49 = vmul.f32 %v6708_v60, %v924_v29  ;;  %v1211_v60 = vpop.permute.xlu0 %1210 }
 0x21b   : > { %6706 = vst [vmem:[#allocation27_spill] sm:$0xff] %v5823_v0  ;;  %v2939_v50 = vadd.f32 %v2851_v10, %v2694_v22  ;;  %v2086_v63 = vrot.slane %v5817_v3, 1  ;;  %v2331_v40 = vrot.slane %v5820_v27, 2  ;;  %v1396_v1 = vmul.f32 %v5316_v46, %v5582_v21  ;;  %v6709_v3 = vld [vmem:[#allocation47_spill] sm:$0xff] }
 0x21c   : > { %6707 = vst [vmem:[#allocation30_spill] sm:$0xff] %v5826_v36  ;;  %v2970_v48 = vmax.f32 %v2938_v62, 0.0  ;;  %v1344_v31 = vadd.f32 %v5485_v61, %v1312_v8  ;;  %v1397_v11 = vmul.f32 %v5316_v46, %v5594_v44  ;;  %v1642_v18 = vmul.f32 %v5322_v6, %v5582_v21 }
 0x21d   : > { %v2971_v19 = vmax.f32 %v2939_v50, 0.0  ;;  %v1643_v51 = vmul.f32 %v5322_v6, %v5594_v44  ;;  %v5848_v47 = vmul.f32 %v5316_v46, %v5835_v49  ;;  %v5852_v13 = vmul.f32 %v5322_v6, %v5835_v49 }
 0x21e   : > { %v1523_v30 = vrot.slane %v1396_v1, 1  ;;  %v1524_v33 = vrot.slane %v1397_v11, 1  ;;  %v1769_v34 = vrot.slane %v1642_v18, 2  ;;  %v1873_v10 = vmul.f32 %v5493_v55, %v5714_v32 }
 0x21f   : > { %v2995_v43 = vpack.c.bf16 %v2971_v19, %v2970_v48  ;;  %v1770_v22 = vrot.slane %v1643_v51, 2  ;;  %v1957_v62 = vmul.f32 %v5384_v54, %v5714_v32  ;;  %v1958_v50 = vmul.f32 %v5384_v54, %v5804_v53 }
 0x220   : > { %v1525_v29 = vsel %vm1447_vm1, %v1523_v30, %v1524_v33  ;;  %v2202_v48 = vmul.f32 %v5518_v26, %v5714_v32  ;;  %v2203_v19 = vmul.f32 %v5518_v26, %v5804_v53  ;;  %v2432_v51 = vmul.f32 %v5527_v9, %v1267_v25 }
 0x221   : > { %4022 = vmatmul.mubr.bf16.gmra.mxu1 %v2995_v43  ;;  %v1771_v8 = vsel %vm1693_vm2, %v1769_v34, %v1770_v22  ;;  %v1590_v1 = vadd.f32 %v1525_v29, %v1344_v31  ;;  %v2083_v11 = vrot.slane %v1957_v62, 1  ;;  %v2084_v18 = vrot.slane %v1958_v50, 1  ;;  %v1215_v29 = vpop.permute.xlu1 %1214 }
 0x222   : > { %v2328_v43 = vrot.slane %v2202_v48, 2  ;;  %v2329_v35 = vrot.slane %v2203_v19, 2  ;;  %v5870_v16 = vmul.f32 %v5534_v52, %v1267_v25  ;;  %v5873_v30 = vmul.f32 %v5544_v42, %v1267_v25 }
 0x223   : > { %v1836_v34 = vadd.f32 %v1771_v8, %v1590_v1  ;;  %v2085_v27 = vsel %vm1447_vm1, %v2083_v11, %v2084_v18  ;;  %v886_v36 = vadd.f32 %v5393_v37, %v6709_v3  ;;  %v1268_v0 = vmul.f32 %v1211_v60, %v941_v17 }
 0x224   : > { %v2330_v31 = vsel %vm1693_vm2, %v2328_v43, %v2329_v35  ;;  %v1313_v48 = vmul.f32 %v5469_v23, %v5594_v44  ;;  %v6710_v8 = vrot.slane %v5624_v38, 1  ;;  %v6711_v11 = vrot.slane %v5628_v58, 2 }
 0x225   : > { %v1905_v19 = vadd.f32 %v1873_v10, %v1836_v34  ;;  %v942_v25 = vmax.f32 %v886_v36, 0.0  ;;  %v1874_v3 = vmul.f32 %v5493_v55, %v5804_v53  ;;  %v2087_v60 = vsel %vm1447_vm1, %v2084_v18, %v2086_v63 }
 0x226   : > { %v1527_v1 = vsel %vm1447_vm1, %v1524_v33, %v6710_v8  ;;  %v1773_v37 = vsel %vm1693_vm2, %v1770_v22, %v6711_v11  ;;  %v1345_v17 = vadd.f32 %v5485_v61, %v1313_v48  ;;  %v2332_v43 = vsel %vm1693_vm2, %v2329_v35, %v2331_v40 }
 0x227   : > { %v2150_v50 = vadd.f32 %v2085_v27, %v1905_v19  ;;  %v1269_v10 = vmul.f32 %v1215_v29, %v942_v25  ;;  %v2433_v36 = vmul.f32 %v5527_v9, %v1268_v0  ;;  %v5896_v38 = vmul.f32 %v5534_v52, %v1268_v0 }
 0x228   : > { %v1591_v33 = vadd.f32 %v1527_v1, %v1345_v17  ;;  %v5899_v58 = vmul.f32 %v5544_v42, %v1268_v0  ;;  %v1298_v22 = vmul.f32 %v5469_v23, %v5310_v57  ;;  %v1299_v34 = vmul.f32 %v5469_v23, %v5314_v14 }
 0x229   : > { %v2395_v63 = vadd.f32 %v2330_v31, %v2150_v50  ;;  %v5906_v40 = vmul.f32 %v5534_v52, %v1269_v10  ;;  %v5909_v35 = vmul.f32 %v5544_v42, %v1269_v10  ;;  %v1375_v50 = vmul.f32 %v5316_v46, %v5310_v57  ;;  %v6713_v31 = vld [vmem:[#allocation50_spill] sm:$0xff] }
 0x22a   : > { %v1837_v18 = vadd.f32 %v1773_v37, %v1591_v33  ;;  %v1330_v0 = vadd.f32 %v5485_v61, %v1298_v22  ;;  %v1331_v48 = vadd.f32 %v5485_v61, %v1299_v34  ;;  %v1376_v1 = vmul.f32 %v5316_v46, %v5314_v14 }
 0x22b   : > { %6712 = vst [vmem:[#allocation46_spill] sm:$0xff] %v5909_v35  ;;  %v5915_v19 = vadd.f32 %v2432_v51, %v2395_v63  ;;  %v1621_v11 = vmul.f32 %v5322_v6, %v5310_v57  ;;  %v1622_v37 = vmul.f32 %v5322_v6, %v5314_v14  ;;  %v1488_v17 = vrot.slane %v1375_v50, 1 }
 0x22c   : > { %v1906_v8 = vadd.f32 %v1874_v3, %v1837_v18  ;;  %v1859_v51 = vmul.f32 %v5493_v55, %v5459_v7  ;;  %v1860_v10 = vmul.f32 %v5493_v55, %v5498_v2  ;;  %v1936_v33 = vmul.f32 %v5384_v54, %v5459_v7 }
 0x22d   : > { %v1489_v22 = vrot.slane %v1376_v1, 1  ;;  %v1734_v34 = vrot.slane %v1621_v11, 2  ;;  %v1735_v46 = vrot.slane %v1622_v37, 2  ;;  %v1937_v57 = vmul.f32 %v5384_v54, %v5498_v2  ;;  %v6715_v37 = vld [vmem:[#allocation51_spill] sm:$0xff] }
 0x22e   : > { %v2151_v3 = vadd.f32 %v2087_v60, %v1906_v8  ;;  %v1938_v14 = vmul.f32 %v5384_v54, %v5590_v56  ;;  %v2048_v6 = vrot.slane %v1936_v33, 1  ;;  %v2181_v63 = vmul.f32 %v5518_v26, %v5459_v7 }
 0x22f   : > { %v1490_v50 = vsel %vm1447_vm1, %v1488_v17, %v1489_v22  ;;  %v6714_v29 = vrot.slane %v6713_v31, 1  ;;  %v1736_v8 = vsel %vm1693_vm2, %v1734_v34, %v1735_v46  ;;  %v6716_v25 = vrot.slane %v6715_v37, 2 }
 0x230   : > { %v2396_v18 = vadd.f32 %v2332_v43, %v2151_v3  ;;  %v1576_v1 = vadd.f32 %v1490_v50, %v1330_v0  ;;  %v2049_v27 = vrot.slane %v1937_v57, 1  ;;  %v2051_v35 = vrot.slane %v1938_v14, 1 }
 0x231   : > { %v1492_v60 = vsel %vm1447_vm1, %v1489_v22, %v6714_v29  ;;  %v1738_v62 = vsel %vm1693_vm2, %v1735_v46, %v6716_v25  ;;  %v2182_v43 = vmul.f32 %v5518_v26, %v5498_v2  ;;  %v2183_v31 = vmul.f32 %v5518_v26, %v5590_v56 }
 0x232   : > { %v1577_v11 = vadd.f32 %v1492_v60, %v1331_v48  ;;  %v5947_v33 = vadd.f32 %v2433_v36, %v2396_v18  ;;  %v1822_v17 = vadd.f32 %v1736_v8, %v1576_v1  ;;  %v2050_v3 = vsel %vm1447_vm1, %v2048_v6, %v2049_v27 }
 0x233   : > { %v2293_v0 = vrot.slane %v2181_v63, 2  ;;  %v2052_v48 = vsel %vm1447_vm1, %v2049_v27, %v2051_v35  ;;  %v2294_v22 = vrot.slane %v2182_v43, 2  ;;  %v2296_v34 = vrot.slane %v2183_v31, 2 }
 0x234   : > { %v1823_v29 = vadd.f32 %v1738_v62, %v1577_v11  ;;  %v2418_v36 = vmul.f32 %v5527_v9, %v5618_v5  ;;  %v1891_v25 = vadd.f32 %v1859_v51, %v1822_v17  ;;  %v2419_v57 = vmul.f32 %v5527_v9, %v5635_v59 }
 0x235   : > { %v2495_v56 = vmul.f32 %v5534_v52, %v5618_v5  ;;  %v2295_v62 = vsel %vm1693_vm2, %v2293_v0, %v2294_v22  ;;  %v2297_v14 = vsel %vm1693_vm2, %v2294_v22, %v2296_v34  ;;  %v2496_v35 = vmul.f32 %v5534_v52, %v5635_v59 }
 0x236   : > { %v1892_v46 = vadd.f32 %v1860_v10, %v1823_v29  ;;  %v2497_v27 = vmul.f32 %v5534_v52, %v5723_v45  ;;  %v2136_v6 = vadd.f32 %v2050_v3, %v1891_v25  ;;  %v2740_v10 = vmul.f32 %v5544_v42, %v5618_v5 }
 0x237   : > { %v2607_v51 = vrot.slane %v2495_v56, 1  ;;  %v2608_v18 = vrot.slane %v2496_v35, 1  ;;  %v2741_v60 = vmul.f32 %v5544_v42, %v5635_v59  ;;  %v2742_v8 = vmul.f32 %v5544_v42, %v5723_v45  ;;  %v5982_v56 = vld [vmem:[#allocation9 + $0x1] ss:$0 sm:$0xff] }
 0x238   : > { %v2137_v63 = vadd.f32 %v2052_v48, %v1892_v46  ;;  %v2610_v50 = vrot.slane %v2497_v27, 1  ;;  %v2381_v1 = vadd.f32 %v2295_v62, %v2136_v6  ;;  %v2852_v37 = vrot.slane %v2740_v10, 2  ;;  %v5989_v27 = vld [vmem:[#allocation9 + $0x2] ss:$0 sm:$0xff] }
 0x239   : > { %v1300_v43 = vmul.f32 %v5469_v23, %v5459_v7  ;;  %v2609_v31 = vsel %vm1447_vm1, %v2607_v51, %v2608_v18  ;;  %v2853_v29 = vrot.slane %v2741_v60, 2  ;;  %v2855_v3 = vrot.slane %v2742_v8, 2 }
 0x23a   : > { %v2382_v11 = vadd.f32 %v2297_v14, %v2137_v63  ;;  %v2611_v17 = vsel %vm1447_vm1, %v2608_v18, %v2610_v50  ;;  %v2450_v0 = vadd.f32 %v2418_v36, %v2381_v1  ;;  %v1301_v22 = vmul.f32 %v5469_v23, %v5498_v2 }
 0x23b   : > { %v1332_v34 = vadd.f32 %v5485_v61, %v1300_v43  ;;  %v2854_v25 = vsel %vm1693_vm2, %v2852_v37, %v2853_v29  ;;  %v2856_v46 = vsel %vm1693_vm2, %v2853_v29, %v2855_v3  ;;  %v1378_v62 = vmul.f32 %v5982_v56, %v5459_v7 }
 0x23c   : > { %v2451_v48 = vadd.f32 %v2419_v57, %v2382_v11  ;;  %v1379_v14 = vmul.f32 %v5982_v56, %v5498_v2  ;;  %v2695_v35 = vadd.f32 %v2609_v31, %v2450_v0  ;;  %v1333_v57 = vadd.f32 %v5485_v61, %v1301_v22 }
 0x23d   : > { %v1624_v6 = vmul.f32 %v5989_v27, %v5459_v7  ;;  %v1493_v63 = vrot.slane %v1378_v62, 1  ;;  %v1625_v10 = vmul.f32 %v5989_v27, %v5498_v2  ;;  %v1861_v18 = vmul.f32 %v5493_v55, %v5618_v5 }
 0x23e   : > { %v2696_v36 = vadd.f32 %v2611_v17, %v2451_v48  ;;  %v1494_v51 = vrot.slane %v1379_v14, 1  ;;  %v2940_v50 = vadd.f32 %v2854_v25, %v2695_v35  ;;  %v1862_v1 = vmul.f32 %v5493_v55, %v5635_v59 }
 0x23f   : > { %v1739_v8 = vrot.slane %v1624_v6, 2  ;;  %v6717_v37 = vrot.slane %v5604_v24, 1  ;;  %v1740_v43 = vrot.slane %v1625_v10, 2  ;;  %v1939_v31 = vmul.f32 %v5384_v54, %v5618_v5 }
 0x240   : > { %v2941_v60 = vadd.f32 %v2856_v46, %v2696_v36  ;;  %v1495_v11 = vsel %vm1447_vm1, %v1493_v63, %v1494_v51  ;;  %v2972_v2 = vmax.f32 %v2940_v50, 0.0  ;;  %v6718_v48 = vrot.slane %v5608_v12, 2 }
 0x241   : > { %v1497_v7 = vsel %vm1447_vm1, %v1494_v51, %v6717_v37  ;;  %v1578_v29 = vadd.f32 %v1495_v11, %v1332_v34  ;;  %v1741_v0 = vsel %vm1693_vm2, %v1739_v8, %v1740_v43  ;;  %v1940_v25 = vmul.f32 %v5384_v54, %v5635_v59 }
 0x242   : > { %v2973_v17 = vmax.f32 %v2941_v60, 0.0  ;;  %v1579_v3 = vadd.f32 %v1497_v7, %v1333_v57  ;;  %v1743_v22 = vsel %vm1693_vm2, %v1740_v43, %v6718_v48  ;;  %v1941_v24 = vmul.f32 %v5384_v54, %v5723_v45 }
 0x243   : > { %v1824_v62 = vadd.f32 %v1741_v0, %v1578_v29  ;;  %v2053_v35 = vrot.slane %v1939_v31, 1  ;;  %v2054_v36 = vrot.slane %v1940_v25, 1  ;;  %v2184_v34 = vmul.f32 %v5518_v26, %v5618_v5 }
 0x244   : > { %v2996_v46 = vpack.c.bf16 %v2973_v17, %v2972_v2  ;;  %v1825_v14 = vadd.f32 %v1743_v22, %v1579_v3  ;;  %v2056_v6 = vrot.slane %v1941_v24, 1  ;;  %v2185_v12 = vmul.f32 %v5518_v26, %v5635_v59 }
 0x245   : > { %v1893_v57 = vadd.f32 %v1861_v18, %v1824_v62  ;;  %v2186_v51 = vmul.f32 %v5518_v26, %v5723_v45  ;;  %v2420_v54 = vmul.f32 %v5527_v9, %v5726_v41  ;;  %v2055_v10 = vsel %vm1447_vm1, %v2053_v35, %v2054_v36 }
 0x246   : > { %4025 = vmatprep.mubr.bf16.mxu1 %v2996_v46  ;;  %v1894_v63 = vadd.f32 %v1862_v1, %v1825_v14  ;;  %v2057_v50 = vsel %vm1447_vm1, %v2054_v36, %v2056_v6  ;;  %v2298_v60 = vrot.slane %v2184_v34, 2  ;;  %v2299_v8 = vrot.slane %v2185_v12, 2 }
 0x247   : > { %v2138_v11 = vadd.f32 %v2055_v10, %v1893_v57  ;;  %v2301_v7 = vrot.slane %v2186_v51, 2  ;;  %v2421_v43 = vmul.f32 %v5527_v9, %v5744_v15  ;;  %v2498_v45 = vmul.f32 %v5534_v52, %v5726_v41 }
 0x248   : > { %v2139_v37 = vadd.f32 %v2057_v50, %v1894_v63  ;;  %v2300_v18 = vsel %vm1693_vm2, %v2298_v60, %v2299_v8  ;;  %v2499_v1 = vmul.f32 %v5534_v52, %v5744_v15  ;;  %v2500_v31 = vmul.f32 %v5534_v52, %v5835_v49 }
 0x249   : > { %v2302_v2 = vsel %vm1693_vm2, %v2299_v8, %v2301_v7  ;;  %v2383_v17 = vadd.f32 %v2300_v18, %v2138_v11  ;;  %v2743_v29 = vmul.f32 %v5544_v42, %v5726_v41  ;;  %v2744_v3 = vmul.f32 %v5544_v42, %v5744_v15 }
 0x24a   : > { %v2384_v0 = vadd.f32 %v2302_v2, %v2139_v37  ;;  %v2612_v48 = vrot.slane %v2498_v45, 1  ;;  %v2613_v22 = vrot.slane %v2499_v1, 1  ;;  %v2615_v25 = vrot.slane %v2500_v31, 1 }
 0x24b   : > { %v2452_v24 = vadd.f32 %v2420_v54, %v2383_v17  ;;  %v2745_v46 = vmul.f32 %v5544_v42, %v5835_v49  ;;  %v2857_v62 = vrot.slane %v2743_v29, 2  ;;  %v2858_v14 = vrot.slane %v2744_v3, 2 }
 0x24c   : > { %v2453_v35 = vadd.f32 %v2421_v43, %v2384_v0  ;;  %v2614_v36 = vsel %vm1447_vm1, %v2612_v48, %v2613_v22  ;;  %v2616_v6 = vsel %vm1447_vm1, %v2613_v22, %v2615_v25  ;;  %v1302_v34 = vmul.f32 %v5469_v23, %v5618_v5  ;;  %v6065_v25 = vld [vmem:[#allocation9 + $0x4] ss:$0 sm:$0xff] }
 0x24d   : > { %v2697_v12 = vadd.f32 %v2614_v36, %v2452_v24  ;;  %v2859_v57 = vsel %vm1693_vm2, %v2857_v62, %v2858_v14  ;;  %v2860_v63 = vrot.slane %v2745_v46, 2  ;;  %v1303_v51 = vmul.f32 %v5469_v23, %v5635_v59 }
 0x24e   : > { %v2698_v54 = vadd.f32 %v2616_v6, %v2453_v35  ;;  %v1334_v10 = vadd.f32 %v5485_v61, %v1302_v34  ;;  %v1381_v50 = vmul.f32 %v5982_v56, %v5618_v5  ;;  %v1382_v60 = vmul.f32 %v5982_v56, %v5635_v59 }
 0x24f   : > { %v2861_v8 = vsel %vm1693_vm2, %v2858_v14, %v2860_v63  ;;  %v2942_v11 = vadd.f32 %v2859_v57, %v2697_v12  ;;  %v1335_v37 = vadd.f32 %v5485_v61, %v1303_v51  ;;  %v1627_v7 = vmul.f32 %v5989_v27, %v5618_v5  ;;  %v6079_v63 = vld [vmem:[#allocation9 + $0x5] ss:$0 sm:$0xff] }
 0x250   : > { %v2943_v43 = vadd.f32 %v2861_v8, %v2698_v54  ;;  %v1498_v18 = vrot.slane %v1381_v50, 1  ;;  %v1499_v23 = vrot.slane %v1382_v60, 1  ;;  %v1628_v45 = vmul.f32 %v5989_v27, %v5635_v59  ;;  %v6721_v60 = vld [vmem:[#allocation34_spill] sm:$0xff] }
 0x251   : > { %v2974_v1 = vmax.f32 %v2942_v11, 0.0  ;;  %v1744_v31 = vrot.slane %v1627_v7, 2  ;;  %v1863_v2 = vmul.f32 %v5493_v55, %v5726_v41  ;;  %v1864_v17 = vmul.f32 %v5493_v55, %v5744_v15 }
 0x252   : > { %v2975_v29 = vmax.f32 %v2943_v43, 0.0  ;;  %v1500_v61 = vsel %vm1447_vm1, %v1498_v18, %v1499_v23  ;;  %v6719_v3 = vrot.slane %v5735_v4, 1  ;;  %v1745_v0 = vrot.slane %v1628_v45, 2  ;;  %v6722_v45 = vld [vmem:[#allocation36_spill] sm:$0xff] }
 0x253   : > { %v1580_v48 = vadd.f32 %v1500_v61, %v1334_v10  ;;  %v1942_v59 = vmul.f32 %v6065_v25, %v5726_v41  ;;  %v1943_v24 = vmul.f32 %v6065_v25, %v5744_v15  ;;  %v6720_v62 = vrot.slane %v5739_v20, 2 }
 0x254   : > { %v1502_v5 = vsel %vm1447_vm1, %v1499_v23, %v6719_v3  ;;  %v2997_v46 = vpack.c.bf16 %v2975_v29, %v2974_v1  ;;  %v1746_v55 = vsel %vm1693_vm2, %v1744_v31, %v1745_v0  ;;  %v1944_v14 = vmul.f32 %v6065_v25, %v5835_v49  ;;  %v6089_v23 = vld [vmem:[#allocation9 + $0x6] ss:$0 sm:$0xff] }
 0x255   : > { %v1581_v22 = vadd.f32 %v1502_v5, %v1335_v37  ;;  %v1748_v4 = vsel %vm1693_vm2, %v1745_v0, %v6720_v62  ;;  %v1826_v35 = vadd.f32 %v1746_v55, %v1580_v48  ;;  %v2058_v6 = vrot.slane %v1942_v59, 1  ;;  %v6723_v29 = vld [vmem:[#allocation37_spill] sm:$0xff] }
 0x256   : > { %v2059_v34 = vrot.slane %v1943_v24, 1  ;;  %4026 = vmatmul.mubr.bf16.gmra.mxu1 %v2997_v46  ;;  %v2061_v12 = vrot.slane %v1944_v14, 1  ;;  %v2187_v57 = vmul.f32 %v5518_v26, %v5726_v41  ;;  %v2188_v51 = vmul.f32 %v6079_v63, %v5744_v15 }
 0x257   : > { %v1827_v36 = vadd.f32 %v1748_v4, %v1581_v22  ;;  %v2189_v20 = vmul.f32 %v6079_v63, %v5835_v49  ;;  %v1895_v54 = vadd.f32 %v1863_v2, %v1826_v35  ;;  %v2422_v8 = vmul.f32 %v5527_v9, %v6721_v60  ;;  %v6109_v4 = vld [vmem:[#allocation9] ss:$0 sm:$0xff] }
 0x258   : > { %v2060_v50 = vsel %vm1447_vm1, %v2058_v6, %v2059_v34  ;;  %v2062_v11 = vsel %vm1447_vm1, %v2059_v34, %v2061_v12  ;;  %v2303_v37 = vrot.slane %v2187_v57, 2  ;;  %v2304_v7 = vrot.slane %v2188_v51, 2 }
 0x259   : > { %v1896_v10 = vadd.f32 %v1864_v17, %v1827_v36  ;;  %v2306_v26 = vrot.slane %v2189_v20, 2  ;;  %v2140_v43 = vadd.f32 %v2060_v50, %v1895_v54  ;;  %v2423_v1 = vmul.f32 %v6089_v23, %v6722_v45  ;;  %v6099_v17 = vld [vmem:[#allocation9 + $0x7] ss:$0 sm:$0xff] }
 0x25a   : > { %v2501_v49 = vmul.f32 %v5534_v52, %v6721_v60  ;;  %v2305_v31 = vsel %vm1693_vm2, %v2303_v37, %v2304_v7  ;;  %v2502_v9 = vmul.f32 %v5534_v52, %v6722_v45  ;;  %v2503_v61 = vmul.f32 %v6099_v17, %v6723_v29 }
 0x25b   : > { %v2141_v18 = vadd.f32 %v2062_v11, %v1896_v10  ;;  %v2307_v2 = vsel %vm1693_vm2, %v2304_v7, %v2306_v26  ;;  %v2385_v3 = vadd.f32 %v2305_v31, %v2140_v43  ;;  %v2746_v48 = vmul.f32 %v5544_v42, %v6721_v60 }
 0x25c   : > { %v2617_v0 = vrot.slane %v2501_v49, 1  ;;  %v2618_v22 = vrot.slane %v2502_v9, 1  ;;  %v2620_v59 = vrot.slane %v2503_v61, 1  ;;  %v2747_v24 = vmul.f32 %v5544_v42, %v6722_v45  ;;  %v6134_v49 = vld [vmem:[#allocation9 + $0x3] ss:$0 sm:$0xff] }
 0x25d   : > { %v2386_v5 = vadd.f32 %v2307_v2, %v2141_v18  ;;  %v2748_v46 = vmul.f32 %v5544_v42, %v6723_v29  ;;  %v2454_v52 = vadd.f32 %v2422_v8, %v2385_v3  ;;  %v2862_v62 = vrot.slane %v2746_v48, 2  ;;  %v6120_v42 = vld [vmem:[%s6571_s5] ss:$0 sm:$0xff] }
 0x25e   : > { %v1304_v14 = vmul.f32 %v6109_v4, %v5726_v41  ;;  %v2619_v35 = vsel %vm1447_vm1, %v2617_v0, %v2618_v22  ;;  %v2621_v36 = vsel %vm1447_vm1, %v2618_v22, %v2620_v59  ;;  %v2863_v6 = vrot.slane %v2747_v24, 2 }
 0x25f   : > { %v2455_v55 = vadd.f32 %v2423_v1, %v2386_v5  ;;  %v2865_v34 = vrot.slane %v2748_v46, 2  ;;  %v2699_v12 = vadd.f32 %v2619_v35, %v2454_v52  ;;  %v1305_v51 = vmul.f32 %v6109_v4, %v5744_v15 }
 0x260   : > { %v1336_v20 = vadd.f32 %v6120_v42, %v1304_v14  ;;  %v2864_v54 = vsel %vm1693_vm2, %v2862_v62, %v2863_v6  ;;  %v1384_v50 = vmul.f32 %v5982_v56, %v5726_v41  ;;  %v1385_v8 = vmul.f32 %v5982_v56, %v5744_v15 }
 0x261   : > { %v2700_v57 = vadd.f32 %v2621_v36, %v2455_v55  ;;  %v2866_v10 = vsel %vm1693_vm2, %v2863_v6, %v2865_v34  ;;  %v2944_v11 = vadd.f32 %v2864_v54, %v2699_v12  ;;  %v1337_v7 = vadd.f32 %v6120_v42, %v1305_v51  ;;  %v6726_v51 = vld [vmem:[#allocation41_spill] sm:$0xff] }
 0x262   : > { %v1630_v26 = vmul.f32 %v5989_v27, %v5726_v41  ;;  %v1503_v43 = vrot.slane %v1384_v50, 1  ;;  %v1504_v18 = vrot.slane %v1385_v8, 1  ;;  %v1631_v1 = vmul.f32 %v5989_v27, %v5744_v15 }
 0x263   : > { %v2945_v37 = vadd.f32 %v2866_v10, %v2700_v57  ;;  %v1865_v31 = vmul.f32 %v6134_v49, %v6721_v60  ;;  %v2976_v2 = vmax.f32 %v2944_v11, 0.0  ;;  %v1866_v3 = vmul.f32 %v6134_v49, %v6722_v45  ;;  %v6728_v11 = vld [vmem:[#allocation24_spill] sm:$0xff] }
 0x264   : > { %v1749_v61 = vrot.slane %v1630_v26, 2  ;;  %v1505_v5 = vsel %vm1447_vm1, %v1503_v43, %v1504_v18  ;;  %v6724_v41 = vrot.slane %v5848_v47, 1  ;;  %v1750_v48 = vrot.slane %v1631_v1, 2 }
 0x265   : > { %v2977_v9 = vmax.f32 %v2945_v37, 0.0  ;;  %v1945_v15 = vmul.f32 %v6065_v25, %v6721_v60  ;;  %v1582_v59 = vadd.f32 %v1505_v5, %v1336_v20  ;;  %v1946_v46 = vmul.f32 %v6065_v25, %v6722_v45  ;;  %v6727_v20 = vld [vmem:[#allocation35_spill] sm:$0xff] }
 0x266   : > { %v1507_v0 = vsel %vm1447_vm1, %v1504_v18, %v6724_v41  ;;  %v1751_v52 = vsel %vm1693_vm2, %v1749_v61, %v1750_v48  ;;  %v6725_v55 = vrot.slane %v5852_v13, 2  ;;  %v2190_v47 = vmul.f32 %v6079_v63, %v6721_v60  ;;  %v6172_v61 = vld [vmem:[#allocation9 + $0x8] ss:$0 sm:$0xff] }
 0x267   : > { %v2998_v22 = vpack.c.bf16 %v2977_v9, %v2976_v2  ;;  %v1583_v24 = vadd.f32 %v1507_v0, %v1337_v7  ;;  %v2063_v14 = vrot.slane %v1945_v15, 1  ;;  %v1828_v35 = vadd.f32 %v1751_v52, %v1582_v59  ;;  %v6730_v9 = vld [vmem:[#allocation38_spill] sm:$0xff] }
 0x268   : > { %v1753_v62 = vsel %vm1693_vm2, %v1750_v48, %v6725_v55  ;;  %v2064_v6 = vrot.slane %v1946_v46, 1  ;;  %v2191_v34 = vmul.f32 %v6079_v63, %v6722_v45  ;;  %v2192_v12 = vmul.f32 %v6079_v63, %v6723_v29 }
 0x269   : > { %4029 = vmatprep.mubr.bf16.mxu1 %v2998_v22  ;;  %v1829_v36 = vadd.f32 %v1753_v62, %v1583_v24  ;;  %v2308_v57 = vrot.slane %v2190_v47, 2  ;;  %v2424_v13 = vmul.f32 %v6089_v23, %v6726_v51  ;;  %v2425_v54 = vmul.f32 %v6089_v23, %v6727_v20 }
 0x26a   : > { %v1897_v10 = vadd.f32 %v1865_v31, %v1828_v35  ;;  %v2065_v8 = vsel %vm1447_vm1, %v2063_v14, %v2064_v6  ;;  %v6729_v37 = vrot.slane %v6728_v11, 1  ;;  %v2309_v26 = vrot.slane %v2191_v34, 2 }
 0x26b   : > { %v1898_v50 = vadd.f32 %v1866_v3, %v1829_v36  ;;  %v2311_v43 = vrot.slane %v2192_v12, 2  ;;  %v2504_v29 = vmul.f32 %v6099_v17, %v6726_v51  ;;  %v2505_v18 = vmul.f32 %v6099_v17, %v6727_v20 }
 0x26c   : > { %v2067_v7 = vsel %vm1447_vm1, %v2064_v6, %v6729_v37  ;;  %v2142_v1 = vadd.f32 %v2065_v8, %v1897_v10  ;;  %v2506_v31 = vmul.f32 %v6099_v17, %v6730_v9  ;;  %v2749_v3 = vmul.f32 %v6172_v61, %v6726_v51 }
 0x26d   : > { %v2143_v2 = vadd.f32 %v2067_v7, %v1898_v50  ;;  %v2310_v5 = vsel %vm1693_vm2, %v2308_v57, %v2309_v26  ;;  %v2312_v41 = vsel %vm1693_vm2, %v2309_v26, %v2311_v43  ;;  %v2622_v0 = vrot.slane %v2504_v29, 1 }
 0x26e   : > { %v2623_v48 = vrot.slane %v2505_v18, 1  ;;  %v2387_v15 = vadd.f32 %v2310_v5, %v2142_v1  ;;  %v2625_v59 = vrot.slane %v2506_v31, 1  ;;  %v2750_v24 = vmul.f32 %v6172_v61, %v6727_v20 }
 0x26f   : > { %v2388_v22 = vadd.f32 %v2312_v41, %v2143_v2  ;;  %v2751_v52 = vmul.f32 %v6172_v61, %v6730_v9  ;;  %v2867_v55 = vrot.slane %v2749_v3, 2  ;;  %v1306_v62 = vmul.f32 %v6109_v4, %v6721_v60 }
 0x270   : > { %v2624_v46 = vsel %vm1447_vm1, %v2622_v0, %v2623_v48  ;;  %v2456_v14 = vadd.f32 %v2424_v13, %v2387_v15  ;;  %v2626_v35 = vsel %vm1447_vm1, %v2623_v48, %v2625_v59  ;;  %v2868_v36 = vrot.slane %v2750_v24, 2  ;;  %v6731_v0 = vld [vmem:[#allocation39_spill] sm:$0xff] }
 0x271   : > { %v2457_v47 = vadd.f32 %v2425_v54, %v2388_v22  ;;  %v2870_v6 = vrot.slane %v2751_v52, 2  ;;  %v1307_v34 = vmul.f32 %v6109_v4, %v6722_v45  ;;  %v1338_v12 = vadd.f32 %v6120_v42, %v1306_v62 }
 0x272   : > { %v1387_v57 = vmul.f32 %v5982_v56, %v6721_v60  ;;  %v2701_v10 = vadd.f32 %v2624_v46, %v2456_v14  ;;  %v2869_v8 = vsel %vm1693_vm2, %v2867_v55, %v2868_v36  ;;  %v1388_v13 = vmul.f32 %v5982_v56, %v6722_v45 }
 0x273   : > { %v2702_v50 = vadd.f32 %v2626_v35, %v2457_v47  ;;  %v2871_v54 = vsel %vm1693_vm2, %v2868_v36, %v2870_v6  ;;  %v1339_v11 = vadd.f32 %v6120_v42, %v1307_v34  ;;  %v1633_v7 = vmul.f32 %v5989_v27, %v6721_v60  ;;  %v6733_v47 = vld [vmem:[#allocation40_spill] sm:$0xff] }
 0x274   : > { %v1508_v37 = vrot.slane %v1387_v57, 1  ;;  %v2946_v26 = vadd.f32 %v2869_v8, %v2701_v10  ;;  %v1509_v29 = vrot.slane %v1388_v13, 1  ;;  %v1634_v18 = vmul.f32 %v5989_v27, %v6722_v45  ;;  %v6735_v13 = vld [vmem:[#allocation49_spill] sm:$0xff] }
 0x275   : > { %v2947_v43 = vadd.f32 %v2871_v54, %v2702_v50  ;;  %v1754_v1 = vrot.slane %v1633_v7, 2  ;;  %v1867_v2 = vmul.f32 %v6134_v49, %v6726_v51  ;;  %v1868_v31 = vmul.f32 %v6134_v49, %v6727_v20  ;;  %v6737_v7 = vld [vmem:[#allocation42_spill] sm:$0xff] }
 0x276   : > { %v1948_v3 = vmul.f32 %v6065_v25, %v6726_v51  ;;  %v2978_v5 = vmax.f32 %v2946_v26, 0.0  ;;  %v1510_v60 = vsel %vm1447_vm1, %v1508_v37, %v1509_v29  ;;  %v6732_v48 = vrot.slane %v6731_v0, 1 }
 0x277   : > { %v2979_v41 = vmax.f32 %v2947_v43, 0.0  ;;  %v1584_v22 = vadd.f32 %v1510_v60, %v1338_v12  ;;  %v1755_v59 = vrot.slane %v1634_v18, 2  ;;  %v1949_v24 = vmul.f32 %v6065_v25, %v6727_v20 }
 0x278   : > { %v1512_v15 = vsel %vm1447_vm1, %v1509_v29, %v6732_v48  ;;  %v2068_v52 = vrot.slane %v1948_v3, 1  ;;  %v2193_v55 = vmul.f32 %v6079_v63, %v6726_v51  ;;  %v2194_v62 = vmul.f32 %v6079_v63, %v6727_v20 }
 0x279   : > { %v1585_v45 = vadd.f32 %v1512_v15, %v1339_v11  ;;  %v2999_v46 = vpack.c.bf16 %v2979_v41, %v2978_v5  ;;  %v1756_v14 = vsel %vm1693_vm2, %v1754_v1, %v1755_v59  ;;  %v6734_v35 = vrot.slane %v6733_v47, 2 }
 0x27a   : > { %v2069_v6 = vrot.slane %v1949_v24, 1  ;;  %v2195_v34 = vmul.f32 %v6079_v63, %v6730_v9  ;;  %v1830_v12 = vadd.f32 %v1756_v14, %v1584_v22  ;;  %v2313_v10 = vrot.slane %v2193_v55, 2 }
 0x27b   : > { %v1758_v36 = vsel %vm1693_vm2, %v1755_v59, %v6734_v35  ;;  %4030 = vmatmul.mubr.bf16.gmra.mxu1 %v2999_v46  ;;  %v2314_v50 = vrot.slane %v2194_v62, 2  ;;  %v6736_v54 = vrot.slane %v6735_v13, 1  ;;  %v2426_v26 = vmul.f32 %v6089_v23, %v6737_v7 }
 0x27c   : > { %v1831_v57 = vadd.f32 %v1758_v36, %v1585_v45  ;;  %v2070_v8 = vsel %vm1447_vm1, %v2068_v52, %v2069_v6  ;;  %v2316_v37 = vrot.slane %v2195_v34, 2  ;;  %v1899_v43 = vadd.f32 %v1867_v2, %v1830_v12 }
 0x27d   : > { %v2072_v11 = vsel %vm1447_vm1, %v2069_v6, %v6736_v54  ;;  %v2315_v18 = vsel %vm1693_vm2, %v2313_v10, %v2314_v50  ;;  %v2427_v9 = vmul.f32 %v6089_v23, %v5555_v39  ;;  %v2507_v3 = vmul.f32 %v6099_v17, %v6737_v7 }
 0x27e   : > { %v1900_v29 = vadd.f32 %v1868_v31, %v1831_v57  ;;  %v2317_v1 = vsel %vm1693_vm2, %v2314_v50, %v2316_v37  ;;  %v2508_v5 = vmul.f32 %v6099_v17, %v5555_v39  ;;  %v2509_v41 = vmul.f32 %v6099_v17, %v5560_v28 }
 0x27f   : > { %v2144_v60 = vadd.f32 %v2070_v8, %v1899_v43  ;;  %v2752_v2 = vmul.f32 %v6172_v61, %v6737_v7  ;;  %v2753_v31 = vmul.f32 %v6172_v61, %v5555_v39  ;;  %v2627_v48 = vrot.slane %v2507_v3, 1 }
 0x280   : > { %v2145_v0 = vadd.f32 %v2072_v11, %v1900_v29  ;;  %v2628_v15 = vrot.slane %v2508_v5, 1  ;;  %v2630_v22 = vrot.slane %v2509_v41, 1  ;;  %v2754_v45 = vmul.f32 %v6172_v61, %v5560_v28  ;;  %v6738_v41 = vld [vmem:[#allocation23_spill] sm:$0xff] }
 0x281   : > { %v2389_v59 = vadd.f32 %v2315_v18, %v2144_v60  ;;  %v2872_v46 = vrot.slane %v2752_v2, 2  ;;  %v2873_v52 = vrot.slane %v2753_v31, 2  ;;  %v1308_v47 = vmul.f32 %v6109_v4, %v6726_v51 }
 0x282   : > { %v2390_v24 = vadd.f32 %v2317_v1, %v2145_v0  ;;  %v2629_v55 = vsel %vm1447_vm1, %v2627_v48, %v2628_v15  ;;  %v2631_v62 = vsel %vm1447_vm1, %v2628_v15, %v2630_v22  ;;  %v2875_v14 = vrot.slane %v2754_v45, 2  ;;  %v6740_v45 = vld [vmem:[#allocation48_spill] sm:$0xff] }
 0x283   : > { %v2458_v35 = vadd.f32 %v2426_v26, %v2389_v59  ;;  %v2874_v6 = vsel %vm1693_vm2, %v2872_v46, %v2873_v52  ;;  %v1309_v34 = vmul.f32 %v6109_v4, %v6727_v20  ;;  %v1340_v57 = vadd.f32 %v6120_v42, %v1308_v47 }
 0x284   : > { %v2459_v36 = vadd.f32 %v2427_v9, %v2390_v24  ;;  %v2876_v12 = vsel %vm1693_vm2, %v2873_v52, %v2875_v14  ;;  %v1390_v10 = vmul.f32 %v5982_v56, %v6726_v51  ;;  %v1391_v50 = vmul.f32 %v5982_v56, %v6727_v20 }
 0x285   : > { %v2703_v8 = vadd.f32 %v2629_v55, %v2458_v35  ;;  %v1341_v54 = vadd.f32 %v6120_v42, %v1309_v34  ;;  %v1636_v11 = vmul.f32 %v5989_v27, %v6726_v51  ;;  %v1637_v43 = vmul.f32 %v5989_v27, %v6727_v20 }
 0x286   : > { %v2704_v13 = vadd.f32 %v2631_v62, %v2459_v36  ;;  %v1513_v37 = vrot.slane %v1390_v10, 1  ;;  %v1514_v26 = vrot.slane %v1391_v50, 1  ;;  %v1869_v29 = vmul.f32 %v6134_v49, %v6737_v7 }
 0x287   : > { %v2948_v18 = vadd.f32 %v2874_v6, %v2703_v8  ;;  %v1759_v1 = vrot.slane %v1636_v11, 2  ;;  %v1870_v3 = vmul.f32 %v6134_v49, %v5555_v39  ;;  %v6739_v60 = vrot.slane %v6738_v41, 1 }
 0x288   : > { %v2949_v9 = vadd.f32 %v2876_v12, %v2704_v13  ;;  %v1515_v5 = vsel %vm1447_vm1, %v1513_v37, %v1514_v26  ;;  %v1760_v0 = vrot.slane %v1637_v43, 2  ;;  %v1951_v2 = vmul.f32 %v6065_v25, %v6737_v7  ;;  %v6742_v13 = vld [vmem:[#allocation44_spill] sm:$0xff] }
 0x289   : > { %v1517_v51 = vsel %vm1447_vm1, %v1514_v26, %v6739_v60  ;;  %v2980_v20 = vmax.f32 %v2948_v18, 0.0  ;;  %v1586_v48 = vadd.f32 %v1515_v5, %v1340_v57  ;;  %v6741_v59 = vrot.slane %v6740_v45, 2 }
 0x28a   : > { %v2981_v31 = vmax.f32 %v2949_v9, 0.0  ;;  %v1587_v15 = vadd.f32 %v1517_v51, %v1341_v54  ;;  %v1761_v22 = vsel %vm1693_vm2, %v1759_v1, %v1760_v0  ;;  %v1952_v46 = vmul.f32 %v6065_v25, %v5555_v39 }
 0x28b   : > { %v1763_v24 = vsel %vm1693_vm2, %v1760_v0, %v6741_v59  ;;  %v2073_v52 = vrot.slane %v1951_v2, 1  ;;  %v1832_v62 = vadd.f32 %v1761_v22, %v1586_v48  ;;  %v2196_v47 = vmul.f32 %v6079_v63, %v6737_v7 }
 0x28c   : > { %v3000_v55 = vpack.c.bf16 %v2981_v31, %v2980_v20  ;;  %v1833_v14 = vadd.f32 %v1763_v24, %v1587_v15  ;;  %v2074_v35 = vrot.slane %v1952_v46, 1  ;;  %v2197_v36 = vmul.f32 %v6079_v63, %v5555_v39  ;;  %v6309_v46 = vpop.f32.mrf.mxu1 }
 0x28d   : > { %v2198_v6 = vmul.f32 %v6079_v63, %v5560_v28  ;;  %v2428_v34 = vmul.f32 %v6089_v23, %v5582_v21  ;;  %v1901_v12 = vadd.f32 %v1869_v29, %v1832_v62  ;;  %v2318_v10 = vrot.slane %v2196_v47, 2 }
 0x28e   : > { %4033 = vmatprep.mubr.bf16.mxu1 %v3000_v55  ;;  %v1902_v57 = vadd.f32 %v1870_v3, %v1833_v14  ;;  %v2429_v50 = vmul.f32 %v6089_v23, %v5594_v44  ;;  %v2075_v8 = vsel %vm1447_vm1, %v2073_v52, %v2074_v35  ;;  %v6743_v54 = vrot.slane %v6742_v13, 1  ;;  %v6744_v3 = vld [vmem:[#allocation45_spill] sm:$0xff] }
 0x28f   : > { %v2319_v37 = vrot.slane %v2197_v36, 2  ;;  %v2321_v26 = vrot.slane %v2198_v6, 2  ;;  %v2146_v43 = vadd.f32 %v2075_v8, %v1901_v12  ;;  %v2510_v18 = vmul.f32 %v6099_v17, %v5582_v21 }
 0x290   : > { %v2077_v11 = vsel %vm1447_vm1, %v2074_v35, %v6743_v54  ;;  %v2511_v29 = vmul.f32 %v6099_v17, %v5594_v44  ;;  %v2512_v5 = vmul.f32 %v6099_v17, %v6744_v3  ;;  %v2755_v41 = vmul.f32 %v6172_v61, %v5582_v21  ;;  %v6324_v54 = vpop.f32.mrf.mxu1 }
 0x291   : > { %v2147_v28 = vadd.f32 %v2077_v11, %v1902_v57  ;;  %v2320_v9 = vsel %vm1693_vm2, %v2318_v10, %v2319_v37  ;;  %v2322_v1 = vsel %vm1693_vm2, %v2319_v37, %v2321_v26  ;;  %v2632_v0 = vrot.slane %v2510_v18, 1 }
 0x292   : > { %v2391_v60 = vadd.f32 %v2320_v9, %v2146_v43  ;;  %v2633_v2 = vrot.slane %v2511_v29, 1  ;;  %v2635_v20 = vrot.slane %v2512_v5, 1  ;;  %v2756_v31 = vmul.f32 %v6172_v61, %v5594_v44  ;;  %v6745_v29 = vld [vmem:[#allocation43_spill] sm:$0xff] }
 0x293   : > { %v2392_v51 = vadd.f32 %v2322_v1, %v2147_v28  ;;  %v2757_v48 = vmul.f32 %v6172_v61, %v6744_v3  ;;  %v2877_v15 = vrot.slane %v2755_v41, 2  ;;  %v1310_v24 = vmul.f32 %v6109_v4, %v6737_v7 }
 0x294   : > { %v2460_v22 = vadd.f32 %v2428_v34, %v2391_v60  ;;  %v2634_v59 = vsel %vm1447_vm1, %v2632_v0, %v2633_v2  ;;  %v2636_v52 = vsel %vm1447_vm1, %v2633_v2, %v2635_v20  ;;  %v2878_v55 = vrot.slane %v2756_v31, 2  ;;  %v6747_v2 = vld [vmem:[#allocation25_spill] sm:$0xff] }
 0x295   : > { %v2461_v45 = vadd.f32 %v2429_v50, %v2392_v51  ;;  %v2880_v62 = vrot.slane %v2757_v48, 2  ;;  %v1311_v14 = vmul.f32 %v6109_v4, %v5555_v39  ;;  %v1342_v36 = vadd.f32 %v6120_v42, %v1310_v24  ;;  %v6340_v51 = vpop.f32.mrf.mxu1 }
 0x296   : > { %v2705_v47 = vadd.f32 %v2634_v59, %v2460_v22  ;;  %v1393_v6 = vmul.f32 %v5982_v56, %v6737_v7  ;;  %v2879_v34 = vsel %vm1693_vm2, %v2877_v15, %v2878_v55  ;;  %v1394_v10 = vmul.f32 %v5982_v56, %v5555_v39 }
 0x297   : > { %v2706_v35 = vadd.f32 %v2636_v52, %v2461_v45  ;;  %v2881_v12 = vsel %vm1693_vm2, %v2878_v55, %v2880_v62  ;;  %v1343_v57 = vadd.f32 %v6120_v42, %v1311_v14  ;;  %v1639_v4 = vmul.f32 %v5989_v27, %v6737_v7  ;;  %v6749_v52 = vld [vmem:[#allocation28_spill] sm:$0xff] }
 0x298   : > { %v2950_v50 = vadd.f32 %v2879_v34, %v2705_v47  ;;  %v1518_v13 = vrot.slane %v1393_v6, 1  ;;  %v1519_v11 = vrot.slane %v1394_v10, 1  ;;  %v1640_v37 = vmul.f32 %v5989_v27, %v5555_v39  ;;  %v6358_v34 = vpop.f32.mrf.mxu1 }
 0x299   : > { %v2951_v8 = vadd.f32 %v2881_v12, %v2706_v35  ;;  %v1871_v26 = vmul.f32 %v6134_v49, %v5582_v21  ;;  %v1872_v42 = vmul.f32 %v6134_v49, %v5594_v44  ;;  %v1764_v28 = vrot.slane %v1639_v4, 2 }
 0x29a   : > { %v2982_v43 = vmax.f32 %v2950_v50, 0.0  ;;  %v1954_v18 = vmul.f32 %v6065_v25, %v5582_v21  ;;  %v1520_v7 = vsel %vm1447_vm1, %v1518_v13, %v1519_v11  ;;  %v6746_v9 = vrot.slane %v6745_v29, 1  ;;  %v6370_v13 = vpop.f32.mrf.mxu1  ;;  %v6755_v29 = vld [vmem:[#allocation27_spill] sm:$0xff] }
 0x29b   : > { %v2983_v56 = vmax.f32 %v2951_v8, 0.0  ;;  %v1765_v5 = vrot.slane %v1640_v37, 2  ;;  %v1955_v39 = vmul.f32 %v6065_v25, %v5594_v44  ;;  %v1588_v41 = vadd.f32 %v1520_v7, %v1342_v36 }
 0x29c   : > { %v1522_v1 = vsel %vm1447_vm1, %v1519_v11, %v6746_v9  ;;  %v2078_v49 = vrot.slane %v1954_v18, 1  ;;  %v6748_v20 = vrot.slane %v6747_v2, 2  ;;  %v2199_v15 = vmul.f32 %v6079_v63, %v5582_v21 }
 0x29d   : > { %v3001_v27 = vpack.c.bf16 %v2983_v56, %v2982_v43  ;;  %v1589_v60 = vadd.f32 %v1522_v1, %v1343_v57  ;;  %v1766_v0 = vsel %vm1693_vm2, %v1764_v28, %v1765_v5  ;;  %v2079_v48 = vrot.slane %v1955_v39, 1 }
 0x29e   : > { %v1768_v31 = vsel %vm1693_vm2, %v1765_v5, %v6748_v20  ;;  %v1834_v22 = vadd.f32 %v1766_v0, %v1588_v41  ;;  %v2200_v25 = vmul.f32 %v6079_v63, %v5594_v44  ;;  %v2201_v59 = vmul.f32 %v6079_v63, %v6744_v3  ;;  %v6398_v41 = vld [vmem:[%s6573_s7] ss:$0 sm:$0xff] }
 0x29f   : > { %4034 = vmatmul.mubr.bf16.gmra.mxu1 %v3001_v27  ;;  %v1835_v45 = vadd.f32 %v1768_v31, %v1589_v60  ;;  %v2080_v24 = vsel %vm1447_vm1, %v2078_v49, %v2079_v48  ;;  %v6750_v55 = vrot.slane %v6749_v52, 1  ;;  %v2323_v14 = vrot.slane %v2199_v15, 2  ;;  %v3802_v60 = vld [vmem:[#allocation2 + $0x18] sm:$0xff]   ;;  %v3125_v49 = vpop.f32.mrf.mxu1 }
 0x2a0   : > { %v2430_v47 = vmul.f32 %v6089_v23, %v5714_v32  ;;  %v1903_v21 = vadd.f32 %v1871_v26, %v1834_v22  ;;  %v2324_v36 = vrot.slane %v2200_v25, 2  ;;  %v2326_v6 = vrot.slane %v2201_v59, 2  ;;  %v3237_v22 = vld [vmem:[#allocation2 + $0xc] sm:$0xff]  }
 0x2a1   : > { %v2082_v62 = vsel %vm1447_vm1, %v2079_v48, %v6750_v55  ;;  %v1904_v35 = vadd.f32 %v1872_v42, %v1835_v45  ;;  %v2431_v44 = vmul.f32 %v6089_v23, %v5804_v53  ;;  %v2513_v63 = vmul.f32 %v6099_v17, %v5714_v32 }
 0x2a2   : > { %v2514_v3 = vmul.f32 %v6099_v17, %v5804_v53  ;;  %v2758_v12 = vmul.f32 %v6172_v61, %v5714_v32  ;;  %v2148_v57 = vadd.f32 %v2080_v24, %v1903_v21  ;;  %v2325_v50 = vsel %vm1693_vm2, %v2323_v14, %v2324_v36 }
 0x2a3   : > { %v2149_v10 = vadd.f32 %v2082_v62, %v1904_v35  ;;  %v2327_v8 = vsel %vm1693_vm2, %v2324_v36, %v2326_v6  ;;  %v2637_v4 = vrot.slane %v2513_v63, 1  ;;  %v2759_v23 = vmul.f32 %v6172_v61, %v5804_v53  ;;  %v3242_v36 = vld [vmem:[#allocation2 + $0x20] sm:$0x1]  ;;  %v4016_v6 = vpop.f32.mrf.mxu1 }
 0x2a4   : > { %v2638_v11 = vrot.slane %v2514_v3, 1  ;;  %v2882_v37 = vrot.slane %v2758_v12, 2  ;;  %v2393_v26 = vadd.f32 %v2325_v50, %v2148_v57  ;;  %v6751_v17 = vrot.slane %v5896_v38, 1  ;;  %v3239_v12 = vld [vmem:[#allocation2 + $0x14] sm:$0x1] }
 0x2a5   : > { %v2394_v42 = vadd.f32 %v2327_v8, %v2149_v10  ;;  %v6752_v32 = vrot.slane %v5870_v16, 1  ;;  %v6753_v56 = vrot.slane %v5906_v40, 1  ;;  %v6756_v9 = vrot.slane %v6755_v29, 1  ;;  %v3803_v8 = vld [vmem:[#allocation2 + $0x30] sm:$0xff]  }
 0x2a6   : > { %v6754_v28 = vmov %v6751_v17  ;;  %v2639_v7 = vsel %vm1447_vm1, %v2637_v4, %v2638_v11  ;;  %v2883_v61 = vrot.slane %v2759_v23, 2  ;;  %v2462_v5 = vadd.f32 %v2430_v47, %v2393_v26  ;;  %v3243_v26 = vld [vmem:[#allocation2 + $0x24] sm:$0xff]  }
 0x2a7   : > { %v2644_v43 = vsel %vm1447_vm1, %v6752_v32, %v6751_v17  ;;  %v2646_v18 = vsel %vm1447_vm1, %v6754_v28, %v6753_v56  ;;  %v2641_v53 = vsel %vm1447_vm1, %v2638_v11, %v6756_v9  ;;  %v2463_v39 = vadd.f32 %v2431_v44, %v2394_v42 }
 0x2a8   : > { %v2709_v1 = vadd.f32 %v2644_v43, %v5915_v19  ;;  %v2710_v16 = vadd.f32 %v2646_v18, %v5947_v33  ;;  %v6757_v27 = vrot.slane %v5899_v58, 2  ;;  %v6758_v40 = vrot.slane %v5873_v30, 2  ;;  %v6759_v19 = vld [vmem:[#allocation30_spill] sm:$0xff]  ;;  %v3128_v43 = vpop.f32.mrf.mxu1 }
 0x2a9   : > { %v2884_v0 = vsel %vm1693_vm2, %v2882_v37, %v2883_v61  ;;  %v6760_v2 = vrot.slane %v6759_v19, 2  ;;  %v6761_v33 = vld [vmem:[#allocation46_spill] sm:$0xff]  ;;  %v2707_v45 = vadd.f32 %v2639_v7, %v2462_v5  ;;  %v2708_v25 = vadd.f32 %v2641_v53, %v2463_v39 }
 0x2aa   : > { %v2889_v38 = vsel %vm1693_vm2, %v6758_v40, %v6757_v27  ;;  %v6762_v31 = vrot.slane %v6761_v33, 2  ;;  %v6763_v48 = vmov %v6757_v27  ;;  %v3118_v52 = vadd.f32 %v6309_v46, %v6398_v41  ;;  %v3245_v27 = vld [vmem:[#allocation2 + $0x2c] sm:$0x1] }
 0x2ab   : > { %v2886_v20 = vsel %vm1693_vm2, %v2883_v61, %v6760_v2  ;;  %v2954_v15 = vadd.f32 %v2889_v38, %v2709_v1  ;;  %v3772_v55 = vunpack.c.l.bf16 %v3802_v60  ;;  %v3773_v62 = vunpack.c.h.bf16 %v3802_v60  ;;  %v3248_v61 = vld [vmem:[#allocation2 + $0x38] sm:$0x1] }
 0x2ac   : > { %v2891_v30 = vsel %vm1693_vm2, %v6763_v48, %v6762_v31  ;;  %v2952_v14 = vadd.f32 %v2884_v0, %v2707_v45  ;;  %v2953_v47 = vadd.f32 %v2886_v20, %v2708_v25  ;;  %v3285_v35 = vunpack.c.l.bf16 %v3237_v22  ;;  %v3249_v48 = vld [vmem:[#allocation2 + $0x3c] sm:$0xff]  }
 0x2ad   : > { %v2955_v59 = vadd.f32 %v2891_v30, %v2710_v16  ;;  %v2986_v24 = vmax.f32 %v2954_v15, 0.0  ;;  %v3386_v58 = vrot.slane %v3772_v55, 1  ;;  %v3387_v44 = vrot.slane %v3773_v62, 1 }
 0x2ae   : > { %v3110_v63 = vadd.f32 %v6398_v41, %v6324_v54  ;;  %v3286_v3 = vunpack.c.h.bf16 %v3237_v22  ;;  %v2984_v57 = vmax.f32 %v2952_v14, 0.0  ;;  %v2985_v10 = vmax.f32 %v2953_v47, 0.0 }
 0x2af   : > { %v2987_v21 = vmax.f32 %v2955_v59, 0.0  ;;  %v3381_v50 = vrot.slane %v3285_v35, 1  ;;  %v3121_v46 = vadd.f32 %v6340_v51, %v6398_v41  ;;  %v3388_v11 = vsel %vm1447_vm1, %v3386_v58, %v3387_v44 }
 0x2b0   : > { %v3382_v23 = vrot.slane %v3286_v3, 1  ;;  %v3290_v37 = vunpack.c.l.bf16 %v3242_v36  ;;  %v3002_v42 = vpack.c.bf16 %v2985_v10, %v2984_v57  ;;  %v3495_v17 = vadd.f32 %v3388_v11, %v3118_v52  ;;  %v4019_v1 = vpop.f32.mrf.mxu1 }
 0x2b1   : > { %v3003_v4 = vpack.c.bf16 %v2987_v21, %v2986_v24  ;;  %v3113_v54 = vadd.f32 %v6398_v41, %v6358_v34  ;;  %v3287_v32 = vunpack.c.l.bf16 %v3239_v12  ;;  %v3776_v18 = vunpack.c.l.bf16 %v3803_v8  ;;  %v3254_v21 = vld [vmem:[#allocation2 + $0x50] sm:$0x1] }
 0x2b2   : > { %v3383_v56 = vsel %vm1447_vm1, %v3381_v50, %v3382_v23  ;;  %v3389_v28 = vrot.slane %v3290_v37, 1  ;;  %v3777_v51 = vunpack.c.h.bf16 %v3803_v8  ;;  %4037 = vmatprep.mubr.bf16.mxu1 %v3002_v42  ;;  %3527 = vst [vmem:[%s4641_s24 + $0x10] sm:$0xff] %v3495_v17  ;;  %v3134_v9 = vadd.f32 %v6370_v13, %v6398_v41  ;;  %v3804_v13 = vld [vmem:[#allocation2 + $0x48] sm:$0xff]   ;;  %v3141_v19 = vpop.f32.mrf.mxu1 }
 0x2b3   : > { %v3493_v7 = vadd.f32 %v3383_v56, %v3110_v63  ;;  %v3384_v29 = vrot.slane %v3287_v32, 1  ;;  %v3291_v53 = vunpack.c.l.bf16 %v3243_v26  ;;  %4038 = vmatmul.mubr.bf16.gmra.mxu1 %v3003_v4  ;;  %v3396_v5 = vrot.slane %v3776_v18, 1 }
 0x2b4   : > { %v3390_v34 = vsel %vm1447_vm1, %v3387_v44, %v3389_v28  ;;  %v3397_v39 = vrot.slane %v3777_v51, 1  ;;  %v3292_v16 = vunpack.c.h.bf16 %v3243_v26  ;;  %v3126_v60 = vadd.f32 %v6398_v41, %v3125_v49  ;;  %v4020_v25 = vpop.f32.mrf.mxu1  ;;  %v3251_v44 = vld [vmem:[#allocation2 + $0x44] sm:$0x1] }
 0x2b5   : > { %3525 = vst [vmem:[%s4641_s24] sm:$0xff] %v3493_v7  ;;  %v3496_v40 = vadd.f32 %v3390_v34, %v3121_v46  ;;  %v3385_v38 = vsel %vm1447_vm1, %v3382_v23, %v3384_v29  ;;  %v3391_v0 = vrot.slane %v3291_v53, 1  ;;  %v3296_v31 = vunpack.c.l.bf16 %v3248_v61  ;;  %v3805_v51 = vld [vmem:[#allocation2 + $0x60] sm:$0xff]   ;;  %v3255_v7 = vld [vmem:[#allocation2 + $0x54] sm:$0xff]   ;;  %v3260_v53 = vld [vmem:[#allocation2 + $0x68] sm:$0x1] }
 0x2b6   : > { %v3494_v2 = vadd.f32 %v3385_v38, %v3113_v54  ;;  %v3398_v20 = vsel %vm1447_vm1, %v3396_v5, %v3397_v39  ;;  %v3392_v33 = vrot.slane %v3292_v16, 1  ;;  %v3137_v15 = vadd.f32 %v4016_v6, %v6398_v41  ;;  %v3144_v10 = vpop.f32.mrf.mxu1  ;;  %v3257_v34 = vld [vmem:[#allocation2 + $0x5c] sm:$0x1] }
 0x2b7   : > { %3528 = vst [vmem:[%s4641_s24 + $0x18] sm:$0xff] %v3496_v40  ;;  %v3499_v30 = vadd.f32 %v3398_v20, %v3134_v9  ;;  %v3129_v22 = vadd.f32 %v6398_v41, %v3128_v43  ;;  %v3293_v45 = vunpack.c.l.bf16 %v3245_v27  ;;  %v3399_v59 = vrot.slane %v3296_v31, 1 }
 0x2b8   : > { %3526 = vst [vmem:[%s4641_s24 + $0x8] sm:$0xff] %v3494_v2  ;;  %v3393_v49 = vsel %vm1447_vm1, %v3391_v0, %v3392_v33  ;;  %v3780_v24 = vunpack.c.l.bf16 %v3804_v13  ;;  %v3781_v52 = vunpack.c.h.bf16 %v3804_v13  ;;  %v3150_v14 = vadd.f32 %v4019_v1, %v6398_v41 }
 0x2b9   : > { %3531 = vst [vmem:[%s4641_s24 + $0x30] sm:$0xff] %v3499_v30  ;;  %v3497_v55 = vadd.f32 %v3393_v49, %v3126_v60  ;;  %v3394_v62 = vrot.slane %v3293_v45, 1  ;;  %v3297_v47 = vunpack.c.l.bf16 %v3249_v48  ;;  %v3400_v35 = vsel %vm1447_vm1, %v3397_v39, %v3399_v59 }
 0x2ba   : > { %v3406_v36 = vrot.slane %v3780_v24, 1  ;;  %v3407_v6 = vrot.slane %v3781_v52, 1  ;;  %v3298_v58 = vunpack.c.h.bf16 %v3249_v48  ;;  %v3500_v63 = vadd.f32 %v3400_v35, %v3137_v15 }
 0x2bb   : > { %3529 = vst [vmem:[%s4641_s24 + $0x20] sm:$0xff] %v3497_v55  ;;  %v3395_v3 = vsel %vm1447_vm1, %v3392_v33, %v3394_v62  ;;  %v3142_v12 = vadd.f32 %v6398_v41, %v3141_v19  ;;  %v3401_v57 = vrot.slane %v3297_v47, 1  ;;  %v3302_v4 = vunpack.c.l.bf16 %v3254_v21  ;;  %v3806_v55 = vld [vmem:[#allocation2 + $0x78] sm:$0xff]   ;;  %v3261_v62 = vld [vmem:[#allocation2 + $0x6c] sm:$0xff]   ;;  %v3266_v21 = vld [vmem:[#allocation2 + $0x80] sm:$0x1] }
 0x2bc   : > { %v3498_v50 = vadd.f32 %v3395_v3, %v3129_v22  ;;  %v3408_v46 = vsel %vm1447_vm1, %v3406_v36, %v3407_v6  ;;  %v3402_v8 = vrot.slane %v3298_v58, 1  ;;  %3532 = vst [vmem:[%s4641_s24 + $0x38] sm:$0xff] %v3500_v63  ;;  %v3153_v23 = vadd.f32 %v4020_v25, %v6398_v41 }
 0x2bd   : > { %v3503_v11 = vadd.f32 %v3408_v46, %v3150_v14  ;;  %v3299_v37 = vunpack.c.l.bf16 %v3251_v44  ;;  %v3409_v42 = vrot.slane %v3302_v4, 1  ;;  %v3145_v17 = vadd.f32 %v6398_v41, %v3144_v10 }
 0x2be   : > { %3530 = vst [vmem:[%s4641_s24 + $0x28] sm:$0xff] %v3498_v50  ;;  %v3403_v26 = vsel %vm1447_vm1, %v3401_v57, %v3402_v8  ;;  %v3784_v29 = vunpack.c.l.bf16 %v3805_v51  ;;  %v3785_v9 = vunpack.c.h.bf16 %v3805_v51  ;;  %v3303_v61 = vunpack.c.l.bf16 %v3255_v7 }
 0x2bf   : > { %3535 = vst [vmem:[%s4641_s24 + $0x50] sm:$0xff] %v3503_v11  ;;  %v3501_v54 = vadd.f32 %v3403_v26, %v3142_v12  ;;  %v3404_v32 = vrot.slane %v3299_v37, 1  ;;  %v3410_v43 = vsel %vm1447_vm1, %v3407_v6, %v3409_v42  ;;  %v3304_v1 = vunpack.c.h.bf16 %v3255_v7  ;;  %v3263_v6 = vld [vmem:[#allocation2 + $0x74] sm:$0x1] }
 0x2c0   : > { %v3504_v56 = vadd.f32 %v3410_v43, %v3153_v23  ;;  %v3416_v5 = vrot.slane %v3784_v29, 1  ;;  %v3417_v39 = vrot.slane %v3785_v9, 1  ;;  %v3308_v16 = vunpack.c.l.bf16 %v3260_v53  ;;  %v3807_v7 = vld [vmem:[#allocation2 + $0x90] sm:$0xff]   ;;  %v3267_v29 = vld [vmem:[#allocation2 + $0x84] sm:$0xff]  }
 0x2c1   : > { %3533 = vst [vmem:[%s4641_s24 + $0x40] sm:$0xff] %v3501_v54  ;;  %v3405_v28 = vsel %vm1447_vm1, %v3402_v8, %v3404_v32  ;;  %v3411_v27 = vrot.slane %v3303_v61, 1  ;;  %v3412_v40 = vrot.slane %v3304_v1, 1  ;;  %v3305_v38 = vunpack.c.l.bf16 %v3257_v34  ;;  %v3272_v61 = vld [vmem:[#allocation2 + $0x98] sm:$0x1] }
 0x2c2   : > { %v3502_v18 = vadd.f32 %v3405_v28, %v3145_v17  ;;  %3536 = vst [vmem:[%s4641_s24 + $0x58] sm:$0xff] %v3504_v56  ;;  %v3418_v0 = vsel %vm1447_vm1, %v3416_v5, %v3417_v39  ;;  %v3419_v13 = vrot.slane %v3308_v16, 1  ;;  %v3788_v14 = vunpack.c.l.bf16 %v3806_v55  ;;  %v3269_v5 = vld [vmem:[#allocation2 + $0x8c] sm:$0x1] }
 0x2c3   : > { %v3413_v20 = vsel %vm1447_vm1, %v3411_v27, %v3412_v40  ;;  %v3414_v33 = vrot.slane %v3305_v38, 1  ;;  %v3789_v47 = vunpack.c.h.bf16 %v3806_v55  ;;  %v3309_v35 = vunpack.c.l.bf16 %v3261_v62 }
 0x2c4   : > { %3534 = vst [vmem:[%s4641_s24 + $0x48] sm:$0xff] %v3502_v18  ;;  %v3420_v15 = vsel %vm1447_vm1, %v3417_v39, %v3419_v13  ;;  %v3310_v36 = vunpack.c.h.bf16 %v3261_v62  ;;  %v3426_v58 = vrot.slane %v3788_v14, 1  ;;  %v3314_v63 = vunpack.c.l.bf16 %v3266_v21  ;;  %v3808_v62 = vld [vmem:[#allocation2 + $0xa8] sm:$0xff]   ;;  %v3273_v14 = vld [vmem:[#allocation2 + $0x9c] sm:$0xff]  }
 0x2c5   : > { %v3415_v49 = vsel %vm1447_vm1, %v3412_v40, %v3414_v33  ;;  %v3427_v44 = vrot.slane %v3789_v47, 1  ;;  %v3421_v3 = vrot.slane %v3309_v35, 1  ;;  %v3311_v57 = vunpack.c.l.bf16 %v3263_v6  ;;  %v3278_v35 = vld [vmem:[#allocation2 + $0xb0] sm:$0x1] }
 0x2c6   : > { %v3422_v12 = vrot.slane %v3310_v36, 1  ;;  %v3429_v46 = vrot.slane %v3314_v63, 1  ;;  %v3792_v9 = vunpack.c.l.bf16 %v3807_v7  ;;  %v3793_v53 = vunpack.c.h.bf16 %v3807_v7  ;;  %v3809_v7 = vld [vmem:[#allocation2 + $0xc0] sm:$0xff]  }
 0x2c7   : > { %v3428_v50 = vsel %vm1447_vm1, %v3426_v58, %v3427_v44  ;;  %v3424_v23 = vrot.slane %v3311_v57, 1  ;;  %v3315_v1 = vunpack.c.l.bf16 %v3267_v29  ;;  %v3316_v34 = vunpack.c.h.bf16 %v3267_v29  ;;  %v3275_v58 = vld [vmem:[#allocation2 + $0xa4] sm:$0x1] }
 0x2c8   : > { %v3423_v11 = vsel %vm1447_vm1, %v3421_v3, %v3422_v12  ;;  %v3430_v17 = vsel %vm1447_vm1, %v3427_v44, %v3429_v46  ;;  %v3436_v39 = vrot.slane %v3792_v9, 1  ;;  %v3437_v16 = vrot.slane %v3793_v53, 1  ;;  %v3279_v9 = vld [vmem:[#allocation2 + $0xb4] sm:$0xff]  }
 0x2c9   : > { %v3425_v56 = vsel %vm1447_vm1, %v3422_v12, %v3424_v23  ;;  %v3320_v27 = vunpack.c.l.bf16 %v3272_v61  ;;  %v3431_v40 = vrot.slane %v3315_v1, 1  ;;  %v3432_v38 = vrot.slane %v3316_v34, 1  ;;  %v3284_v1 = vld [vmem:[#allocation2 + $0xc8] sm:$0x1] }
 0x2ca   : > { %v3438_v13 = vsel %vm1447_vm1, %v3436_v39, %v3437_v16  ;;  %v3796_v47 = vunpack.c.l.bf16 %v3808_v62  ;;  %v3797_v21 = vunpack.c.h.bf16 %v3808_v62  ;;  %v3321_v36 = vunpack.c.l.bf16 %v3273_v14  ;;  %v3281_v39 = vld [vmem:[#allocation2 + $0xbc] sm:$0x1] }
 0x2cb   : > { %v3433_v33 = vsel %vm1447_vm1, %v3431_v40, %v3432_v38  ;;  %v3322_v6 = vunpack.c.h.bf16 %v3273_v14  ;;  %v3326_v3 = vunpack.c.l.bf16 %v3278_v35  ;;  %v3800_v53 = vunpack.c.l.bf16 %v3809_v7 }
 0x2cc   : > { %v3446_v44 = vrot.slane %v3796_v47, 1  ;;  %v3447_v63 = vrot.slane %v3797_v21, 1  ;;  %v3441_v12 = vrot.slane %v3321_v36, 1  ;;  %v3801_v61 = vunpack.c.h.bf16 %v3809_v7 }
 0x2cd   : > { %v3442_v57 = vrot.slane %v3322_v6, 1  ;;  %v3327_v34 = vunpack.c.l.bf16 %v3279_v9  ;;  %v3332_v40 = vunpack.c.l.bf16 %v3284_v1 }
 0x2ce   : > { %v3448_v46 = vsel %vm1447_vm1, %v3446_v44, %v3447_v63 }
 0x2cf   : > { %v3443_v23 = vsel %vm1447_vm1, %v3441_v12, %v3442_v57 }
 0x2e1   : > { %v4023_v60 = vpop.f32.mrf.mxu1 }
 0x2e2   : > { %v3166_v19 = vadd.f32 %v4023_v60, %v6398_v41  ;;  %v3317_v60 = vunpack.c.l.bf16 %v3269_v5  ;;  %v3328_v5 = vunpack.c.h.bf16 %v3279_v9 }
 0x2e3   : > { %v3157_v2 = vpop.f32.mrf.mxu1 }
 0x2e4   : > { %v3507_v31 = vadd.f32 %v3418_v0, %v3166_v19  ;;  %v3158_v48 = vadd.f32 %v6398_v41, %v3157_v2  ;;  %v3439_v19 = vrot.slane %v3320_v27, 1  ;;  %v3457_v27 = vrot.slane %v3801_v61, 1 }
 0x2e5   : > { %v4024_v30 = vpop.f32.mrf.mxu1 }
 0x2e6   : > { %3539 = vst [vmem:[%s4641_s24 + $0x70] sm:$0xff] %v3507_v31  ;;  %v3505_v22 = vadd.f32 %v3413_v20, %v3158_v48  ;;  %v3169_v45 = vadd.f32 %v4024_v30, %v6398_v41  ;;  %v3434_v31 = vrot.slane %v3317_v60, 1  ;;  %v3452_v60 = vrot.slane %v3328_v5, 1 }
 0x2e7   : > { %v3160_v25 = vpop.f32.mrf.mxu1 }
 0x2e8   : > { %3537 = vst [vmem:[%s4641_s24 + $0x60] sm:$0xff] %v3505_v22  ;;  %v3508_v59 = vadd.f32 %v3420_v15, %v3169_v45  ;;  %v3161_v24 = vadd.f32 %v6398_v41, %v3160_v25  ;;  %v3440_v22 = vsel %vm1447_vm1, %v3437_v16, %v3439_v19  ;;  %v3456_v16 = vrot.slane %v3800_v53, 1 }
 0x2ea   : > { %3540 = vst [vmem:[%s4641_s24 + $0x78] sm:$0xff] %v3508_v59  ;;  %v3506_v52 = vadd.f32 %v3415_v49, %v3161_v24  ;;  %v3435_v59 = vsel %vm1447_vm1, %v3432_v38, %v3434_v31  ;;  %v3451_v38 = vrot.slane %v3327_v34, 1  ;;  %v3458_v19 = vsel %vm1447_vm1, %v3456_v16, %v3457_v27 }
 0x2ec   : > { %3538 = vst [vmem:[%s4641_s24 + $0x68] sm:$0xff] %v3506_v52  ;;  %v3453_v31 = vsel %vm1447_vm1, %v3451_v38, %v3452_v60 }
 0x316   : > { %v4027_v10 = vpop.f32.mrf.mxu1 }
 0x317   : > { %v3182_v8 = vadd.f32 %v4027_v10, %v6398_v41  ;;  %v3323_v10 = vunpack.c.l.bf16 %v3275_v58 }
 0x318   : > { %v3173_v4 = vpop.f32.mrf.mxu1 }
 0x319   : > { %v3511_v37 = vadd.f32 %v3428_v50, %v3182_v8  ;;  %v3174_v26 = vadd.f32 %v6398_v41, %v3173_v4  ;;  %v3449_v8 = vrot.slane %v3326_v3, 1 }
 0x31a   : > { %v4028_v42 = vpop.f32.mrf.mxu1 }
 0x31b   : > { %3543 = vst [vmem:[%s4641_s24 + $0x90] sm:$0xff] %v3511_v37  ;;  %v3509_v54 = vadd.f32 %v3423_v11, %v3174_v26  ;;  %v3185_v32 = vadd.f32 %v4028_v42, %v6398_v41  ;;  %v3444_v37 = vrot.slane %v3323_v10, 1 }
 0x31c   : > { %v3176_v43 = vpop.f32.mrf.mxu1 }
 0x31d   : > { %3541 = vst [vmem:[%s4641_s24 + $0x80] sm:$0xff] %v3509_v54  ;;  %v3512_v28 = vadd.f32 %v3430_v17, %v3185_v32  ;;  %v3177_v18 = vadd.f32 %v6398_v41, %v3176_v43  ;;  %v3450_v54 = vsel %vm1447_vm1, %v3447_v63, %v3449_v8 }
 0x31f   : > { %3544 = vst [vmem:[%s4641_s24 + $0x98] sm:$0xff] %v3512_v28  ;;  %v3510_v51 = vadd.f32 %v3425_v56, %v3177_v18  ;;  %v3445_v28 = vsel %vm1447_vm1, %v3442_v57, %v3444_v37 }
 0x321   : > { %3542 = vst [vmem:[%s4641_s24 + $0x88] sm:$0xff] %v3510_v51 }
 0x33b   : > { %v4031_v0 = vpop.f32.mrf.mxu1 }
 0x33c   : > { %v3198_v2 = vadd.f32 %v4031_v0, %v6398_v41  ;;  %v3329_v0 = vunpack.c.l.bf16 %v3281_v39 }
 0x33d   : > { %v3189_v20 = vpop.f32.mrf.mxu1 }
 0x33e   : > { %v3515_v48 = vadd.f32 %v3438_v13, %v3198_v2  ;;  %v3190_v30 = vadd.f32 %v6398_v41, %v3189_v20  ;;  %v3459_v2 = vrot.slane %v3332_v40, 1 }
 0x33f   : > { %v4032_v15 = vpop.f32.mrf.mxu1 }
 0x340   : > { %3547 = vst [vmem:[%s4641_s24 + $0xb0] sm:$0xff] %v3515_v48  ;;  %v3513_v45 = vadd.f32 %v3433_v33, %v3190_v30  ;;  %v3201_v25 = vadd.f32 %v4032_v15, %v6398_v41  ;;  %v3454_v48 = vrot.slane %v3329_v0, 1 }
 0x341   : > { %v3192_v49 = vpop.f32.mrf.mxu1 }
 0x342   : > { %3545 = vst [vmem:[%s4641_s24 + $0xa0] sm:$0xff] %v3513_v45  ;;  %v3516_v24 = vadd.f32 %v3440_v22, %v3201_v25  ;;  %v3193_v52 = vadd.f32 %v6398_v41, %v3192_v49  ;;  %v3460_v45 = vsel %vm1447_vm1, %v3457_v27, %v3459_v2 }
 0x344   : > { %3548 = vst [vmem:[%s4641_s24 + $0xb8] sm:$0xff] %v3516_v24  ;;  %v3514_v55 = vadd.f32 %v3435_v59, %v3193_v52  ;;  %v3455_v24 = vsel %vm1447_vm1, %v3452_v60, %v3454_v48 }
 0x346   : > { %3546 = vst [vmem:[%s4641_s24 + $0xa8] sm:$0xff] %v3514_v55 }
 0x35f   : > { %v4035_v50 = vpop.f32.mrf.mxu1 }
 0x360   : > { %v3214_v4 = vadd.f32 %v4035_v50, %v6398_v41 }
 0x361   : > { %v3205_v11 = vpop.f32.mrf.mxu1 }
 0x362   : > { %v3519_v26 = vadd.f32 %v3448_v46, %v3214_v4  ;;  %v3206_v42 = vadd.f32 %v6398_v41, %v3205_v11 }
 0x363   : > { %v4036_v17 = vpop.f32.mrf.mxu1 }
 0x364   : > { %3551 = vst [vmem:[%s4641_s24 + $0xd0] sm:$0xff] %v3519_v26  ;;  %v3517_v32 = vadd.f32 %v3443_v23, %v3206_v42  ;;  %v3217_v43 = vadd.f32 %v4036_v17, %v6398_v41 }
 0x365   : > { %v3208_v56 = vpop.f32.mrf.mxu1 }
 0x366   : > { %3549 = vst [vmem:[%s4641_s24 + $0xc0] sm:$0xff] %v3517_v32  ;;  %v3520_v18 = vadd.f32 %v3450_v54, %v3217_v43  ;;  %v3209_v51 = vadd.f32 %v6398_v41, %v3208_v56 }
 0x368   : > { %3552 = vst [vmem:[%s4641_s24 + $0xd8] sm:$0xff] %v3520_v18  ;;  %v3518_v29 = vadd.f32 %v3445_v28, %v3209_v51 }
 0x36a   : > { %3550 = vst [vmem:[%s4641_s24 + $0xc8] sm:$0xff] %v3518_v29 }
 0x373   : > { %v4039_v13 = vpop.f32.mrf.mxu1 }
 0x374   : > { %v3230_v20 = vadd.f32 %v4039_v13, %v6398_v41 }
 0x375   : > { %v3221_v33 = vpop.f32.mrf.mxu1 }
 0x376   : > { %v3523_v30 = vadd.f32 %v3458_v19, %v3230_v20  ;;  %v3222_v15 = vadd.f32 %v6398_v41, %v3221_v33 }
 0x377   : > { %v4040_v22 = vpop.f32.mrf.mxu1 }
 0x378   : > { %3555 = vst [vmem:[%s4641_s24 + $0xf0] sm:$0xff] %v3523_v30  ;;  %v3521_v25 = vadd.f32 %v3453_v31, %v3222_v15  ;;  %v3233_v49 = vadd.f32 %v4040_v22, %v6398_v41 }
 0x379   : > { %v3224_v59 = vpop.f32.mrf.mxu1 }
 0x37a   : > { %3553 = vst [vmem:[%s4641_s24 + $0xe0] sm:$0xff] %v3521_v25  ;;  %v3524_v52 = vadd.f32 %v3460_v45, %v3233_v49  ;;  %v3225_v55 = vadd.f32 %v6398_v41, %v3224_v59 }
 0x37c   : > { %3556 = vst [vmem:[%s4641_s24 + $0xf8] sm:$0xff] %v3524_v52  ;;  %v3522_v62 = vadd.f32 %v3455_v24, %v3225_v55 }
 0x37e   : > { %3554 = vst [vmem:[%s4641_s24 + $0xe8] sm:$0xff] %v3522_v62 }
 0x37f   : > { %4365 = shalt.err (!%p4362_p11)
}
 0x380   : > { %s4366_s24 = scalar_lea.hbm %s6513_s16, 4096  ;;  %s4370_s22 = scalar_lea.hbm %s6574_s8, 8192 }
 0x381   : > { %p4367_p13 = scmp.ne.s32.totalorder %s6513_s16, %s4366_s24  ;;  %p4371_p5 = scmp.lt.s32.totalorder %s6513_s16, %s6574_s8 }
 0x382   : > { %p4372_p6 = scmp.lt.s32.totalorder %s4370_s22, %s4366_s24 }
 0x383   : > { %p4368_p1 = pnand %p4367_p13, %p6765_p12 }
 0x384   : > { %p4373_p7 = por %p4372_p6, %p4371_p5 }
 0x385   : > { %p4369_p3 = pneg %p4368_p1 }
 0x387   : > { %p4374_p9 = pnand %p4373_p7, %p4369_p3 }
 0x389   : > { %4377 = shalt.err (!%p4374_p9)
}
 0x38a   : > { %s4456_s26 = smov 128   ;;  %s4457_s30 = smov 8  }
 0x38b   : > { %4073 = dma.vmem_to_hbm [thread:$0]  (%p6765_p12), %s6515_s19, 4096, %s6513_s16, %s6521_s13, %s4456_s26, %s4456_s26, %s4457_s30  }
 0x38c PF: > { %p4100_p2 = scmp.ge.s32.totalorder %s4442_s10, 2  ;;  %s3589_s25 = sand.u32 1, %s4422_s27  }
 0x38d   : > { %p6766_p0 = scmp.ne.s32.totalorder %s6613_s17, 0  ;;  %s3590_s11 = scalar_lea.sflag [#allocation6], %s3589_s25 }
 0x38f   : > { %p4089_p4 = pnand %p4100_p2, %p6766_p0 }
 0x391   : > { %p4090_p8 = pneg %p4089_p4 }
 0x393   : > { %4417 = dma.done.wait (%p4090_p8), %s3590_s11, 4096  }
 0x394   : > { %4419 = vsyncadd (%p4090_p8), %s3590_s11, 4294963200  ;;  %s24_s10 = sadd.s32 1, %s4442_s10   ;;  %s6767_s15 = sld [smem:[#allocation22_spill]] }
 0x395   : > { %p21_p10 = scmp.ge.s32.totalorder %s24_s10, 4   ;;  %s6768_s27 = smov %s4426_s28 }
 0x396   : > { %s6769_s28 = smov %s4430_s29  ;;  %s6770_s29 = smov %s4556_s18 }
 0x397   : > { %s6771_s30 = smov %s4438_s9  ;;  %23 = sbr.rel (!%p21_p10) target bundleno = 9 (0x9), region = 104 }
 0x39a   : > { %s6772_s9 = smov %s6767_s15 }
 0x39c   :  { %3595 = vsyncpa [#allocation5], 1 }
 0x39d   :  { %3597 = vsyncpa [#allocation5 + $0x1], 1 }
 0x39e   :  { %3598 = vsyncpa [#allocation8], 1 }
 0x39f   :  { %3599 = vsyncpa [#allocation11], 1 }
 0x3a0   :  { %3600 = vsyncpa [#allocation6], 1 }
 0x3a1   :  { %3602 = vsyncpa [#allocation6 + $0x1], 1 }
 0x3a2   :  { %3603 = vsyncmov [#allocation3] }
 0x3a5   :  { %s3604_s17 = vpop.sfrf %3603 }
 0x3a6   :  { %p3766_p12 = scmp.ne.s32.totalorder %s3604_s17, 0 }
 0x3a8   :  { %3608 = shalt.err (%p3766_p12)  }
 0x3a9   :  { %3610 = vsyncmov [#allocation3 + $0x1] }
 0x3ac   :  { %s3611_s19 = vpop.sfrf %3610 }
 0x3ad   :  { %p3767_p11 = scmp.ne.s32.totalorder %s3611_s19, 0 }
 0x3af   :  { %3615 = shalt.err (%p3767_p11)  }

</bundles_post_ra>
